<compile_context>
chip_gen: v5e
topology: v5e:2x2
jax: 0.10.0
libtpu: 0.0.40
codegen_flags: <defaults>
</compile_context>

<pallas_src>
import functools

import jax
import jax.numpy as jnp
from jax.experimental import pallas as pl
from jax.experimental.pallas import tpu as pltpu

LEAKY_SLOPE = 0.2
BN_EPS = 1e-5

# Matmul tile sizes (lane dim 128-aligned; K left whole when K <= TK).
TM = 512
TN = 512
TK = 1024
BN_TM = 2048
VMEM_LIMIT = 32 * 1024 * 1024  # safe on v5e/v6e (128 MiB phys) and v7x (64 MiB phys)


def _round_up(x, m):
    return (x + m - 1) // m * m


# ----------------------------- Pallas kernels ------------------------------

def _bmm_kernel(x_ref, w_ref, b_ref, o_ref, acc_ref, *, pre_act, post_act):
    """acc += pre_act(x_tile) @ w_tile; last k-step: out = post_act(acc + b)."""
    @pl.when(pl.program_id(3) == 0)
    def _init():
        acc_ref[...] = jnp.zeros_like(acc_ref)

    x = x_ref[...]                                     # bf16 tile
    if pre_act == "leaky":
        x = jnp.where(x > 0, x, LEAKY_SLOPE * x)
    elif pre_act == "relu":
        x = jnp.maximum(x, 0)
    acc_ref[...] += jnp.dot(x, w_ref[...], preferred_element_type=jnp.float32)

    @pl.when(pl.program_id(3) == pl.num_programs(3) - 1)
    def _finalize():
        y = acc_ref[...] + b_ref[...]
        if post_act == "tanh":
            y = jnp.tanh(y)
        o_ref[...] = y.astype(o_ref.dtype)


def _bmm_stats_kernel(x_ref, w_ref, b_ref, o_ref, s_ref, q_ref, acc_ref, *,
                      pre_act):
    """Same as _bmm_kernel (no post_act) + fused per-tile channel sum/sumsq."""
    @pl.when(pl.program_id(3) == 0)
    def _init():
        acc_ref[...] = jnp.zeros_like(acc_ref)

    x = x_ref[...]
    if pre_act == "leaky":
        x = jnp.where(x > 0, x, LEAKY_SLOPE * x)
    elif pre_act == "relu":
        x = jnp.maximum(x, 0)
    acc_ref[...] += jnp.dot(x, w_ref[...], preferred_element_type=jnp.float32)

    @pl.when(pl.program_id(3) == pl.num_programs(3) - 1)
    def _finalize():
        y = acc_ref[...] + b_ref[...]
        o_ref[...] = y.astype(o_ref.dtype)
        s_ref[...] = jnp.sum(y, axis=0, keepdims=True)
        q_ref[...] = jnp.sum(y * y, axis=0, keepdims=True)


def _bn_apply_kernel(x_ref, scale_ref, shift_ref, o_ref):
    o_ref[...] = (x_ref[...].astype(jnp.float32) * scale_ref[...]
                  + shift_ref[...]).astype(o_ref.dtype)


# ----------------------------- batched tiled matmul -------------------------

def pallas_bmm(x, w, b=None, pre_act="none", post_act="none",
               out_dtype=jnp.bfloat16, emit_stats=False):
    """For each group g: post_act(pre_act(x[g]) @ w[g] + b), MXU-tiled.

    x: (G, M, K), w: (G, K, N), b: (N,) or None.  Inputs are cast to bf16 for
    the MXU; accumulation and the epilogue are f32.  M/K/N are zero-padded to
    tile-friendly sizes (N padded to a multiple of 128 for lane-dense stores);
    padding is sliced off the result.  With emit_stats, also returns the
    per-channel sum and sum-of-squares over all G*M rows (for fused BN stats).
    """
    G, M, K = x.shape
    _, Kw, N = w.shape
    assert K == Kw

    Np = _round_up(N, 128)
    tn = min(TN, Np)
    Np = _round_up(Np, tn)
    Mp = _round_up(M, 8)
    tm = min(TM, Mp)
    Mp = _round_up(Mp, tm)
    if K <= TK:
        tk, Kp = K, K
    else:
        tk, Kp = TK, _round_up(K, TK)

    # Megacore: if the (row, col) parallel plane collapsed to a single block
    # and there is no group parallelism, split the channel axis (no duplicated
    # weight traffic) or, failing that, the row axis so both v7x cores work.
    if G == 1 and Mp == tm and Np == tn:
        if Np % 256 == 0:
            tn = Np // 2
        elif Mp >= 16 and Mp % 16 == 0:
            tm = Mp // 2
    gm, gn, gk = Mp // tm, Np // tn, Kp // tk

    xp = x.astype(jnp.bfloat16)
    if (Mp, Kp) != (M, K):
        xp = jnp.pad(xp, ((0, 0), (0, Mp - M), (0, Kp - K)))
    wp = w.astype(jnp.bfloat16)
    if (Kp, Np) != (K, N):
        wp = jnp.pad(wp, ((0, 0), (0, Kp - K), (0, Np - N)))
    if b is None:
        bp = jnp.zeros((1, Np), jnp.float32)
    else:
        bp = jnp.pad(b.astype(jnp.float32).reshape(1, N), ((0, 0), (0, Np - N)))

    grid = (G, gm, gn, gk)
    in_specs = [
        pl.BlockSpec((None, tm, tk), lambda g, i, j, k: (g, i, k)),
        pl.BlockSpec((None, tk, tn), lambda g, i, j, k: (g, k, j)),
        pl.BlockSpec((1, tn), lambda g, i, j, k: (0, j)),
    ]
    cost = pl.CostEstimate(
        flops=2 * G * Mp * Np * Kp,
        transcendentals=G * Mp * Np if post_act == "tanh" else 0,
        bytes_accessed=G * (2 * Mp * Kp * gn + 2 * Kp * Np * gm
                            + Mp * Np * jnp.dtype(out_dtype).itemsize),
    )
    cparams = pltpu.CompilerParams(
        dimension_semantics=("parallel", "parallel", "parallel", "arbitrary"),
        vmem_limit_bytes=VMEM_LIMIT,
    )

    if emit_stats:
        kern = functools.partial(_bmm_stats_kernel, pre_act=pre_act)
        out_shape = (
            jax.ShapeDtypeStruct((G, Mp, Np), out_dtype),
            jax.ShapeDtypeStruct((G, gm, 1, Np), jnp.float32),
            jax.ShapeDtypeStruct((G, gm, 1, Np), jnp.float32),
        )
        out_specs = (
            pl.BlockSpec((None, tm, tn), lambda g, i, j, k: (g, i, j)),
            pl.BlockSpec((None, None, 1, tn), lambda g, i, j, k: (g, i, 0, j)),
            pl.BlockSpec((None, None, 1, tn), lambda g, i, j, k: (g, i, 0, j)),
        )
    else:
        kern = functools.partial(_bmm_kernel, pre_act=pre_act, post_act=post_act)
        out_shape = jax.ShapeDtypeStruct((G, Mp, Np), out_dtype)
        out_specs = pl.BlockSpec((None, tm, tn), lambda g, i, j, k: (g, i, j))

    res = pl.pallas_call(
        kern,
        out_shape=out_shape,
        grid_spec=pltpu.PrefetchScalarGridSpec(
            num_scalar_prefetch=0,
            grid=grid,
            in_specs=in_specs,
            out_specs=out_specs,
            scratch_shapes=[pltpu.VMEM((tm, tn), jnp.float32)],
        ),
        compiler_params=cparams,
        cost_estimate=cost,
    )(xp, wp, bp)

    if emit_stats:
        out, s, q = res
        if (Mp, Np) != (M, N):
            out = out[:, :M, :N]
        # Padded rows are zero (bias=None for all BN'd convs), padded channel
        # columns are zero (zero-padded weights); both are harmless / sliced.
        csum = jnp.sum(s, axis=(0, 1, 2))[:N]
        csq = jnp.sum(q, axis=(0, 1, 2))[:N]
        return out, csum, csq

    out = res
    if (Mp, Np) != (M, N):
        out = out[:, :M, :N]
    return out


# ----------------------------- BatchNorm (train mode) -----------------------

def batchnorm_apply(y_nhwc, csum, csumsq, gamma, beta):
    """Train-mode BatchNorm2d apply; per-channel sums come fused from the conv.

    TODO(synk): variance is E[x^2]-E[x]^2 from a single fused pass; a centered
    second pass would be safer for large-mean activations.  running_mean/var
    are not tracked (pure forward).
    """
    N, H, W, C = y_nhwc.shape
    M = N * H * W
    mean = csum / M
    var = jnp.maximum(csumsq / M - mean * mean, 0.0)
    scale = gamma * jax.lax.rsqrt(var + BN_EPS)
    shift = beta - mean * scale

    # Lane-density: fold rows into lanes when C < 128 so stores are unmasked.
    f = 1
    if C < 128 and 128 % C == 0 and M % (128 // C) == 0:
        f = 128 // C
    M2, C2 = M // f, C * f
    x2 = y_nhwc.reshape(M2, C2)
    scale2 = jnp.tile(scale.reshape(1, C).astype(jnp.float32), (1, f))
    shift2 = jnp.tile(shift.reshape(1, C).astype(jnp.float32), (1, f))

    Mp = _round_up(M2, 8)
    tm = min(BN_TM, Mp)
    Mp = _round_up(Mp, tm)
    if Mp != M2:
        x2 = jnp.pad(x2, ((0, Mp - M2), (0, 0)))
    grid = (Mp // tm,)

    y = pl.pallas_call(
        _bn_apply_kernel,
        out_shape=jax.ShapeDtypeStruct((Mp, C2), jnp.bfloat16),
        grid_spec=pltpu.PrefetchScalarGridSpec(
            num_scalar_prefetch=0,
            grid=grid,
            in_specs=[pl.BlockSpec((tm, C2), lambda i: (i, 0)),
                      pl.BlockSpec((1, C2), lambda i: (0, 0)),
                      pl.BlockSpec((1, C2), lambda i: (0, 0))],
            out_specs=pl.BlockSpec((tm, C2), lambda i: (i, 0)),
        ),
        compiler_params=pltpu.CompilerParams(
            dimension_semantics=("parallel",),
            vmem_limit_bytes=VMEM_LIMIT,
        ),
    )(x2, scale2, shift2)

    if Mp != M2:
        y = y[:M2]
    return y.reshape(N, H, W, C)


# ----------------------------- conv glue ------------------------------------

def _im2col(x, k, stride, pad):
    """x: (N,H,W,C) -> patches (N*Ho*Wo, k*k*C); feature idx = (kh*k+kw)*C + c."""
    N, H, W, C = x.shape
    xp = jnp.pad(x, ((0, 0), (pad, pad), (pad, pad), (0, 0)))
    Ho = (H + 2 * pad - k) // stride + 1
    Wo = (W + 2 * pad - k) // stride + 1
    cols = []
    for kh in range(k):
        for kw in range(k):
            cols.append(xp[:, kh:kh + stride * Ho:stride,
                           kw:kw + stride * Wo:stride, :])
    patches = jnp.concatenate(cols, axis=-1)
    return patches.reshape(N * Ho * Wo, k * k * C), Ho, Wo


def conv_down(x, w, pre_act, emit_stats=False):
    """Conv2d(kernel=4, stride=2, pad=1, bias=False). w: (Cout, Cin, 4, 4)."""
    # TODO(synk): the outermost layer has Cin=1 (K=16), leaving the MXU
    # contraction depth mostly idle; a space-to-depth fold would not increase
    # K for k=4/s=2, so this small-K case is left as-is.
    N = x.shape[0]
    Cout, Cin = w.shape[0], w.shape[1]
    patches, Ho, Wo = _im2col(x.astype(jnp.bfloat16), 4, 2, 1)  # bf16 patches
    wmat = jnp.transpose(w, (2, 3, 1, 0)).reshape(16 * Cin, Cout)
    # pre_act is elementwise with act(0) == 0, so applying it to the zero-padded
    # patches inside the kernel is equivalent to applying it before the conv.
    res = pallas_bmm(patches[None], wmat[None], None, pre_act=pre_act,
                     emit_stats=emit_stats)
    if emit_stats:
        y, ssum, ssq = res
        return y[0].reshape(N, Ho, Wo, Cout), ssum, ssq
    return res[0].reshape(N, Ho, Wo, Cout)


def conv_up(x, w, bias, pre_act, post_act="none", out_dtype=jnp.bfloat16,
            emit_stats=False):
    """ConvTranspose2d(kernel=4, stride=2, pad=1) via sub-pixel decomposition.

    w: (Cin, Cout, 4, 4).  Each output parity (oh%2, ow%2) is a stride-1 2x2
    conv over the input; all four phases are batched into a single Pallas call
    (leading parallel grid axis of 4) and interleaved with one transpose.
    """
    N, H, W, Cin = x.shape
    Cout = w.shape[1]
    xb = x.astype(jnp.bfloat16)
    phase_patches = []
    phase_weights = []
    for p in (0, 1):                          # output row parity
        row_pad = (1, 0) if p == 0 else (0, 1)
        for q in (0, 1):                      # output col parity
            col_pad = (1, 0) if q == 0 else (0, 1)
            xp = jnp.pad(xb, ((0, 0), row_pad, col_pad, (0, 0)))
            cols = []
            for dr in (0, 1):
                for dc in (0, 1):
                    cols.append(xp[:, dr:dr + H, dc:dc + W, :])
            phase_patches.append(
                jnp.concatenate(cols, axis=-1).reshape(N * H * W, 4 * Cin))
            # Tap (kh, kw) feeding output parity (p, q) from input offset (dr, dc):
            #   even parity -> kh = 3 - 2*dr, odd parity -> kh = 2 - 2*dr.
            tap_h = [(3 - 2 * dr) if p == 0 else (2 - 2 * dr) for dr in (0, 1)]
            tap_w = [(3 - 2 * dc) if q == 0 else (2 - 2 * dc) for dc in (0, 1)]
            wsel = w[:, :, tap_h, :][:, :, :, tap_w]          # (Cin, Cout, 2, 2)
            phase_weights.append(
                jnp.transpose(wsel, (2, 3, 0, 1)).reshape(4 * Cin, Cout))
    patches = jnp.stack(phase_patches, axis=0)                # (4, M, 4*Cin) bf16
    wmat = jnp.stack(phase_weights, axis=0)                   # (4, 4*Cin, Cout)

    res = pallas_bmm(patches, wmat, bias, pre_act=pre_act, post_act=post_act,
                     out_dtype=out_dtype, emit_stats=emit_stats)
    if emit_stats:
        y, ssum, ssq = res
    else:
        y = res
    # Interleave phases: (p, q, n, h, w, c) -> (n, 2h+p, 2w+q, c).
    y = y.reshape(2, 2, N, H, W, Cout)
    y = jnp.transpose(y, (2, 3, 0, 4, 1, 5)).reshape(N, 2 * H, 2 * W, Cout)
    if emit_stats:
        return y, ssum, ssq
    return y


# ----------------------------- parameters -----------------------------------

def _conv_w(key, cout, cin):
    return 0.02 * jax.random.normal(key, (cout, cin, 4, 4), jnp.float32)


def _convt_w(key, cin, cout):
    return 0.02 * jax.random.normal(key, (cin, cout, 4, 4), jnp.float32)


def _bn_params(c):
    return jnp.ones((c,), jnp.float32), jnp.zeros((c,), jnp.float32)


def build_unet(key, input_c=1, output_c=2, n_down=8, num_filters=64):
    keys = iter(jax.random.split(key, 5 * n_down + 8))
    nf8 = num_filters * 8
    # innermost block
    block = {
        "kind": "inner",
        "down_w": _conv_w(next(keys), nf8, nf8),
        "up_w": _convt_w(next(keys), nf8, nf8),
        "up_bn": _bn_params(nf8),
    }
    # middle (dropout) blocks
    for _ in range(n_down - 5):
        block = {
            "kind": "mid",
            "down_w": _conv_w(next(keys), nf8, nf8),
            "down_bn": _bn_params(nf8),
            "up_w": _convt_w(next(keys), nf8 * 2, nf8),
            "up_bn": _bn_params(nf8),
            "dropout": True,
            "drop_key": next(keys),
            "sub": block,
        }
    # three channel-halving blocks
    out_filters = nf8
    for _ in range(3):
        nf, ni = out_filters // 2, out_filters
        block = {
            "kind": "mid",
            "down_w": _conv_w(next(keys), ni, nf),
            "down_bn": _bn_params(ni),
            "up_w": _convt_w(next(keys), ni * 2, nf),
            "up_bn": _bn_params(nf),
            "dropout": False,
            "sub": block,
        }
        out_filters //= 2
    # outermost block
    block = {
        "kind": "outer",
        "down_w": _conv_w(next(keys), out_filters, input_c),
        "up_w": _convt_w(next(keys), out_filters * 2, output_c),
        "up_b": 0.02 * jax.random.normal(next(keys), (output_c,), jnp.float32),
        "sub": block,
    }
    return block


# ----------------------------- forward ---------------------------------------

def block_forward(p, x):
    kind = p["kind"]
    if kind == "outer":
        y = conv_down(x, p["down_w"], pre_act="none")         # downconv only
        y = block_forward(p["sub"], y)
        # ReLU -> ConvTranspose(+bias) -> Tanh, no skip-concat; keep f32 output.
        return conv_up(y, p["up_w"], p["up_b"], pre_act="relu",
                       post_act="tanh", out_dtype=jnp.float32)
    if kind == "inner":
        y = conv_down(x, p["down_w"], pre_act="leaky")        # LeakyReLU -> conv
        y, s, q = conv_up(y, p["up_w"], None, pre_act="relu", emit_stats=True)
        g, b = p["up_bn"]
        y = batchnorm_apply(y, s, q, g, b)
        return jnp.concatenate([x, y], axis=-1)               # cat([x, model(x)])
    # mid block
    y, s, q = conv_down(x, p["down_w"], pre_act="leaky", emit_stats=True)
    g, b = p["down_bn"]
    y = batchnorm_apply(y, s, q, g, b)
    y = block_forward(p["sub"], y)
    y, s, q = conv_up(y, p["up_w"], None, pre_act="relu", emit_stats=True)
    g, b = p["up_bn"]
    y = batchnorm_apply(y, s, q, g, b)
    if p.get("dropout", False):
        # Train-mode nn.Dropout(0.5): keep w.p. 0.5, scale kept values by 2.
        keep = jax.random.bernoulli(p["drop_key"], 0.5, y.shape)
        y = jnp.where(keep, y * 2.0, jnp.zeros_like(y)).astype(y.dtype)
    return jnp.concatenate([x, y], axis=-1)


def unet_forward(params, x_nchw):
    x = jnp.transpose(x_nchw, (0, 2, 3, 1))   # NCHW -> NHWC
    y = block_forward(params, x)
    return jnp.transpose(y, (0, 3, 1, 2))     # NHWC -> NCHW


# ----------------------------- main ------------------------------------------

if __name__ == "__main__":
    key = jax.random.PRNGKey(0)
    pkey, xkey = jax.random.split(key)
    # n_down=5 is the minimum depth of this Unet (inner + 3 halving + outer);
    # spatial size must be a multiple of 2**5 = 32.  num_filters=8 keeps the
    # channel widths small for the smoke test.
    params = build_unet(pkey, input_c=1, output_c=2, n_down=5, num_filters=8)
    x = jax.random.normal(xkey, (2, 1, 32, 32), jnp.float32)   # NCHW, like PyTorch
    fwd = jax.jit(lambda inp: unet_forward(params, inp))
    out = jax.block_until_ready(fwd(x))
    assert out.shape == (2, 2, 32, 32), out.shape
    assert bool(jnp.all(jnp.isfinite(out)))
    assert bool(jnp.all(jnp.abs(out) <= 1.0 + 1e-6))  # final Tanh
    print("KERNEL_OK")
</pallas_src>

<mosaic_0001>
module attributes {stable_mosaic.version = 11 : i64} {
  func.func @_bmm_kernel(%arg0: i32, %arg1: i32, %arg2: i32, %arg3: i32, %arg4: memref<1x256x16xbf16, #tpu.memory_space<vmem>>, %arg5: memref<1x16x128xbf16, #tpu.memory_space<vmem>>, %arg6: memref<1x128xf32, #tpu.memory_space<vmem>>, %arg7: memref<1x256x128xbf16, #tpu.memory_space<vmem>>, %arg8: memref<256x128xf32, #tpu.memory_space<vmem>>) attributes {dimension_semantics = [#tpu.dimension_semantics<parallel>, #tpu.dimension_semantics<parallel>, #tpu.dimension_semantics<parallel>, #tpu.dimension_semantics<arbitrary>], iteration_bounds = array<i64: 1, 2, 1, 1>, scalar_prefetch = 0 : i64, scratch_operands = 1 : i64, tpu.core_type = #tpu.core_type<tc>, window_params = [{transform_indices = @transform_0, window_bounds = array<i64: 1, 256, 16>}, {transform_indices = @transform_1, window_bounds = array<i64: 1, 16, 128>}, {transform_indices = @transform_2, window_bounds = array<i64: 1, 128>}, {transform_indices = @transform_3, window_bounds = array<i64: 1, 256, 128>}]} {
    %c0_i32 = arith.constant 0 : i32
    %0 = arith.cmpi eq, %arg3, %c0_i32 : i32
    %1 = arith.extui %0 : i1 to i32
    %c0_i32_0 = arith.constant 0 : i32
    %2 = arith.cmpi ne, %1, %c0_i32_0 : i32
    scf.if %2 {
      %cst_12 = arith.constant 0.000000e+00 : f32
      %14 = vector.broadcast %cst_12 : f32 to vector<256x128xf32>
      %c0_13 = arith.constant 0 : index
      %c0_14 = arith.constant 0 : index
      %15 = vector.load %arg8[%c0_13, %c0_14] : memref<256x128xf32, #tpu.memory_space<vmem>>, vector<256x128xf32>
      tpu.vector_store %arg8[%c0_13, %c0_14], %14 {strides = array<i32>} : memref<256x128xf32, #tpu.memory_space<vmem>>, vector<256x128xf32>,
    } else {
    }
    %c0 = arith.constant 0 : index
    %c0_1 = arith.constant 0 : index
    %c0_2 = arith.constant 0 : index
    %3 = vector.load %arg4[%c0, %c0_1, %c0_2] : memref<1x256x16xbf16, #tpu.memory_space<vmem>>, vector<1x256x16xbf16>
    %4 = vector.shape_cast %3 : vector<1x256x16xbf16> to vector<256x16xbf16>
    %c0_3 = arith.constant 0 : index
    %c0_4 = arith.constant 0 : index
    %5 = vector.load %arg8[%c0_3, %c0_4] : memref<256x128xf32, #tpu.memory_space<vmem>>, vector<256x128xf32>
    %c0_5 = arith.constant 0 : index
    %c0_6 = arith.constant 0 : index
    %c0_7 = arith.constant 0 : index
    %6 = vector.load %arg5[%c0_5, %c0_6, %c0_7] : memref<1x16x128xbf16, #tpu.memory_space<vmem>>, vector<1x16x128xbf16>
    %7 = vector.shape_cast %6 : vector<1x16x128xbf16> to vector<16x128xbf16>
    %cst = arith.constant dense<0.000000e+00> : vector<256x128xf32>
    %8 = tpu.matmul %4, %7, %cst {dimension_numbers = #tpu.dot_dimension_numbers<[1], [0], [0], [1], [0, 0, 1, 1], [], []>} : vector<256x16xbf16>, vector<16x128xbf16>, vector<256x128xf32> -> vector<256x128xf32>
    %9 = arith.addf %5, %8 : vector<256x128xf32>
    %c0_8 = arith.constant 0 : index
    %c0_9 = arith.constant 0 : index
    %10 = vector.load %arg8[%c0_8, %c0_9] : memref<256x128xf32, #tpu.memory_space<vmem>>, vector<256x128xf32>
    tpu.vector_store %arg8[%c0_8, %c0_9], %9 {strides = array<i32>} : memref<256x128xf32, #tpu.memory_space<vmem>>, vector<256x128xf32>,
    %c0_i32_10 = arith.constant 0 : i32
    %11 = arith.cmpi eq, %arg3, %c0_i32_10 : i32
    %12 = arith.extui %11 : i1 to i32
    %c0_i32_11 = arith.constant 0 : i32
    %13 = arith.cmpi ne, %12, %c0_i32_11 : i32
    scf.if %13 {
      %c0_12 = arith.constant 0 : index
      %c0_13 = arith.constant 0 : index
      %14 = vector.load %arg8[%c0_12, %c0_13] : memref<256x128xf32, #tpu.memory_space<vmem>>, vector<256x128xf32>
      %c0_14 = arith.constant 0 : index
      %c0_15 = arith.constant 0 : index
      %15 = vector.load %arg6[%c0_14, %c0_15] : memref<1x128xf32, #tpu.memory_space<vmem>>, vector<1x128xf32>
      %16 = vector.broadcast %15 : vector<1x128xf32> to vector<256x128xf32>
      %17 = arith.addf %14, %16 : vector<256x128xf32>
      %18 = arith.truncf %17 : vector<256x128xf32> to vector<256x128xbf16>
      %c0_16 = arith.constant 0 : index
      %c0_17 = arith.constant 0 : index
      %c0_18 = arith.constant 0 : index
      %19 = vector.load %arg7[%c0_16, %c0_17, %c0_18] : memref<1x256x128xbf16, #tpu.memory_space<vmem>>, vector<1x256x128xbf16>
      %20 = vector.shape_cast %19 : vector<1x256x128xbf16> to vector<256x128xbf16>
      %21 = vector.shape_cast %18 : vector<256x128xbf16> to vector<1x256x128xbf16>
      tpu.vector_store %arg7[%c0_16, %c0_17, %c0_18], %21 {strides = array<i32>} : memref<1x256x128xbf16, #tpu.memory_space<vmem>>, vector<1x256x128xbf16>,
    } else {
    }
    return
  }
  func.func @transform_0(%arg0: i32, %arg1: i32, %arg2: i32, %arg3: i32) -> (i32, i32, i32) {
    %c0_i32 = arith.constant 0 : i32
    return %arg0, %arg1, %arg3 : i32, i32, i32
  }
  func.func @transform_1(%arg0: i32, %arg1: i32, %arg2: i32, %arg3: i32) -> (i32, i32, i32) {
    %c0_i32 = arith.constant 0 : i32
    return %arg0, %arg3, %arg2 : i32, i32, i32
  }
  func.func @transform_2(%arg0: i32, %arg1: i32, %arg2: i32, %arg3: i32) -> (i32, i32) {
    %c0_i32 = arith.constant 0 : i32
    %c0_i32_0 = arith.constant 0 : i32
    return %c0_i32, %arg2 : i32, i32
  }
  func.func @transform_3(%arg0: i32, %arg1: i32, %arg2: i32, %arg3: i32) -> (i32, i32, i32) {
    %c0_i32 = arith.constant 0 : i32
    return %arg0, %arg1, %arg2 : i32, i32, i32
  }
}

module attributes {stable_mosaic.version = 11 : i64} {
  func.func @_bmm_stats_kernel(%arg0: i32, %arg1: i32, %arg2: i32, %arg3: i32, %arg4: memref<1x64x128xbf16, #tpu.memory_space<vmem>>, %arg5: memref<1x128x128xbf16, #tpu.memory_space<vmem>>, %arg6: memref<1x128xf32, #tpu.memory_space<vmem>>, %arg7: memref<1x64x128xbf16, #tpu.memory_space<vmem>>, %arg8: memref<1x1x1x128xf32, #tpu.memory_space<vmem>>, %arg9: memref<1x1x1x128xf32, #tpu.memory_space<vmem>>, %arg10: memref<64x128xf32, #tpu.memory_space<vmem>>) attributes {dimension_semantics = [#tpu.dimension_semantics<parallel>, #tpu.dimension_semantics<parallel>, #tpu.dimension_semantics<parallel>, #tpu.dimension_semantics<arbitrary>], iteration_bounds = array<i64: 1, 2, 1, 1>, scalar_prefetch = 0 : i64, scratch_operands = 1 : i64, tpu.core_type = #tpu.core_type<tc>, window_params = [{transform_indices = @transform_0, window_bounds = array<i64: 1, 64, 128>}, {transform_indices = @transform_1, window_bounds = array<i64: 1, 128, 128>}, {transform_indices = @transform_2, window_bounds = array<i64: 1, 128>}, {transform_indices = @transform_3, window_bounds = array<i64: 1, 64, 128>}, {transform_indices = @transform_4, window_bounds = array<i64: 1, 1, 1, 128>}, {transform_indices = @transform_5, window_bounds = array<i64: 1, 1, 1, 128>}]} {
    %c0_i32 = arith.constant 0 : i32
    %0 = arith.cmpi eq, %arg3, %c0_i32 : i32
    %1 = arith.extui %0 : i1 to i32
    %c0_i32_0 = arith.constant 0 : i32
    %2 = arith.cmpi ne, %1, %c0_i32_0 : i32
    scf.if %2 {
      %cst_14 = arith.constant 0.000000e+00 : f32
      %19 = vector.broadcast %cst_14 : f32 to vector<64x128xf32>
      %c0_15 = arith.constant 0 : index
      %c0_16 = arith.constant 0 : index
      %20 = vector.load %arg10[%c0_15, %c0_16] : memref<64x128xf32, #tpu.memory_space<vmem>>, vector<64x128xf32>
      tpu.vector_store %arg10[%c0_15, %c0_16], %19 {strides = array<i32>} : memref<64x128xf32, #tpu.memory_space<vmem>>, vector<64x128xf32>,
    } else {
    }
    %c0 = arith.constant 0 : index
    %c0_1 = arith.constant 0 : index
    %c0_2 = arith.constant 0 : index
    %3 = vector.load %arg4[%c0, %c0_1, %c0_2] : memref<1x64x128xbf16, #tpu.memory_space<vmem>>, vector<1x64x128xbf16>
    %4 = vector.shape_cast %3 : vector<1x64x128xbf16> to vector<64x128xbf16>
    %cst = arith.constant 0.000000e+00 : bf16
    %5 = vector.broadcast %cst : bf16 to vector<64x128xbf16>
    %6 = arith.cmpf ogt, %4, %5 : vector<64x128xbf16>
    %cst_3 = arith.constant 2.001950e-01 : bf16
    %7 = vector.broadcast %cst_3 : bf16 to vector<64x128xbf16>
    %8 = arith.mulf %7, %4 : vector<64x128xbf16>
    %9 = arith.select %6, %4, %8 : vector<64x128xi1>, vector<64x128xbf16>
    %c0_4 = arith.constant 0 : index
    %c0_5 = arith.constant 0 : index
    %10 = vector.load %arg10[%c0_4, %c0_5] : memref<64x128xf32, #tpu.memory_space<vmem>>, vector<64x128xf32>
    %c0_6 = arith.constant 0 : index
    %c0_7 = arith.constant 0 : index
    %c0_8 = arith.constant 0 : index
    %11 = vector.load %arg5[%c0_6, %c0_7, %c0_8] : memref<1x128x128xbf16, #tpu.memory_space<vmem>>, vector<1x128x128xbf16>
    %12 = vector.shape_cast %11 : vector<1x128x128xbf16> to vector<128x128xbf16>
    %cst_9 = arith.constant dense<0.000000e+00> : vector<64x128xf32>
    %13 = tpu.matmul %9, %12, %cst_9 {dimension_numbers = #tpu.dot_dimension_numbers<[1], [0], [0], [1], [0, 0, 1, 1], [], []>} : vector<64x128xbf16>, vector<128x128xbf16>, vector<64x128xf32> -> vector<64x128xf32>
    %14 = arith.addf %10, %13 : vector<64x128xf32>
    %c0_10 = arith.constant 0 : index
    %c0_11 = arith.constant 0 : index
    %15 = vector.load %arg10[%c0_10, %c0_11] : memref<64x128xf32, #tpu.memory_space<vmem>>, vector<64x128xf32>
    tpu.vector_store %arg10[%c0_10, %c0_11], %14 {strides = array<i32>} : memref<64x128xf32, #tpu.memory_space<vmem>>, vector<64x128xf32>,
    %c0_i32_12 = arith.constant 0 : i32
    %16 = arith.cmpi eq, %arg3, %c0_i32_12 : i32
    %17 = arith.extui %16 : i1 to i32
    %c0_i32_13 = arith.constant 0 : i32
    %18 = arith.cmpi ne, %17, %c0_i32_13 : i32
    scf.if %18 {
      %c0_14 = arith.constant 0 : index
      %c0_15 = arith.constant 0 : index
      %19 = vector.load %arg10[%c0_14, %c0_15] : memref<64x128xf32, #tpu.memory_space<vmem>>, vector<64x128xf32>
      %c0_16 = arith.constant 0 : index
      %c0_17 = arith.constant 0 : index
      %20 = vector.load %arg6[%c0_16, %c0_17] : memref<1x128xf32, #tpu.memory_space<vmem>>, vector<1x128xf32>
      %21 = vector.broadcast %20 : vector<1x128xf32> to vector<64x128xf32>
      %22 = arith.addf %19, %21 : vector<64x128xf32>
      %23 = arith.truncf %22 : vector<64x128xf32> to vector<64x128xbf16>
      %c0_18 = arith.constant 0 : index
      %c0_19 = arith.constant 0 : index
      %c0_20 = arith.constant 0 : index
      %24 = vector.load %arg7[%c0_18, %c0_19, %c0_20] : memref<1x64x128xbf16, #tpu.memory_space<vmem>>, vector<1x64x128xbf16>
      %25 = vector.shape_cast %24 : vector<1x64x128xbf16> to vector<64x128xbf16>
      %26 = vector.shape_cast %23 : vector<64x128xbf16> to vector<1x64x128xbf16>
      tpu.vector_store %arg7[%c0_18, %c0_19, %c0_20], %26 {strides = array<i32>} : memref<1x64x128xbf16, #tpu.memory_space<vmem>>, vector<1x64x128xbf16>,
      %cst_21 = arith.constant dense<0.000000e+00> : vector<128xf32>
      %27 = vector.multi_reduction <add>, %22, %cst_21 [0] : vector<64x128xf32> to vector<128xf32>
      %28 = vector.shape_cast %27 : vector<128xf32> to vector<1x128xf32>
      %c0_22 = arith.constant 0 : index
      %c0_23 = arith.constant 0 : index
      %c0_24 = arith.constant 0 : index
      %c0_25 = arith.constant 0 : index
      %29 = vector.load %arg8[%c0_22, %c0_23, %c0_24, %c0_25] : memref<1x1x1x128xf32, #tpu.memory_space<vmem>>, vector<1x1x1x128xf32>
      %30 = vector.shape_cast %29 : vector<1x1x1x128xf32> to vector<1x128xf32>
      %31 = vector.shape_cast %28 : vector<1x128xf32> to vector<1x1x1x128xf32>
      tpu.vector_store %arg8[%c0_22, %c0_23, %c0_24, %c0_25], %31 {strides = array<i32>} : memref<1x1x1x128xf32, #tpu.memory_space<vmem>>, vector<1x1x1x128xf32>,
      %32 = arith.mulf %22, %22 : vector<64x128xf32>
      %cst_26 = arith.constant dense<0.000000e+00> : vector<128xf32>
      %33 = vector.multi_reduction <add>, %32, %cst_26 [0] : vector<64x128xf32> to vector<128xf32>
      %34 = vector.shape_cast %33 : vector<128xf32> to vector<1x128xf32>
      %c0_27 = arith.constant 0 : index
      %c0_28 = arith.constant 0 : index
      %c0_29 = arith.constant 0 : index
      %c0_30 = arith.constant 0 : index
      %35 = vector.load %arg9[%c0_27, %c0_28, %c0_29, %c0_30] : memref<1x1x1x128xf32, #tpu.memory_space<vmem>>, vector<1x1x1x128xf32>
      %36 = vector.shape_cast %35 : vector<1x1x1x128xf32> to vector<1x128xf32>
      %37 = vector.shape_cast %34 : vector<1x128xf32> to vector<1x1x1x128xf32>
      tpu.vector_store %arg9[%c0_27, %c0_28, %c0_29, %c0_30], %37 {strides = array<i32>} : memref<1x1x1x128xf32, #tpu.memory_space<vmem>>, vector<1x1x1x128xf32>,
    } else {
    }
    return
  }
  func.func @transform_0(%arg0: i32, %arg1: i32, %arg2: i32, %arg3: i32) -> (i32, i32, i32) {
    %c0_i32 = arith.constant 0 : i32
    return %arg0, %arg1, %arg3 : i32, i32, i32
  }
  func.func @transform_1(%arg0: i32, %arg1: i32, %arg2: i32, %arg3: i32) -> (i32, i32, i32) {
    %c0_i32 = arith.constant 0 : i32
    return %arg0, %arg3, %arg2 : i32, i32, i32
  }
  func.func @transform_2(%arg0: i32, %arg1: i32, %arg2: i32, %arg3: i32) -> (i32, i32) {
    %c0_i32 = arith.constant 0 : i32
    %c0_i32_0 = arith.constant 0 : i32
    return %c0_i32, %arg2 : i32, i32
  }
  func.func @transform_3(%arg0: i32, %arg1: i32, %arg2: i32, %arg3: i32) -> (i32, i32, i32) {
    %c0_i32 = arith.constant 0 : i32
    return %arg0, %arg1, %arg2 : i32, i32, i32
  }
  func.func @transform_4(%arg0: i32, %arg1: i32, %arg2: i32, %arg3: i32) -> (i32, i32, i32, i32) {
    %c0_i32 = arith.constant 0 : i32
    %c0_i32_0 = arith.constant 0 : i32
    return %arg0, %arg1, %c0_i32, %arg2 : i32, i32, i32, i32
  }
  func.func @transform_5(%arg0: i32, %arg1: i32, %arg2: i32, %arg3: i32) -> (i32, i32, i32, i32) {
    %c0_i32 = arith.constant 0 : i32
    %c0_i32_0 = arith.constant 0 : i32
    return %arg0, %arg1, %c0_i32, %arg2 : i32, i32, i32, i32
  }
}

module attributes {stable_mosaic.version = 11 : i64} {
  func.func @_bn_apply_kernel(%arg0: i32, %arg1: memref<16x128xbf16, #tpu.memory_space<vmem>>, %arg2: memref<1x128xf32, #tpu.memory_space<vmem>>, %arg3: memref<1x128xf32, #tpu.memory_space<vmem>>, %arg4: memref<16x128xbf16, #tpu.memory_space<vmem>>) attributes {dimension_semantics = [#tpu.dimension_semantics<parallel>], iteration_bounds = array<i64: 1>, scalar_prefetch = 0 : i64, scratch_operands = 0 : i64, tpu.core_type = #tpu.core_type<tc>, window_params = [{transform_indices = @transform_0, window_bounds = array<i64: 16, 128>}, {pipeline_mode = #tpu.pipeline_mode<synchronous>, transform_indices = @transform_1, window_bounds = array<i64: 1, 128>}, {pipeline_mode = #tpu.pipeline_mode<synchronous>, transform_indices = @transform_2, window_bounds = array<i64: 1, 128>}, {transform_indices = @transform_3, window_bounds = array<i64: 16, 128>}]} {
    %c0 = arith.constant 0 : index
    %c0_0 = arith.constant 0 : index
    %0 = vector.load %arg1[%c0, %c0_0] : memref<16x128xbf16, #tpu.memory_space<vmem>>, vector<16x128xbf16>
    %1 = arith.extf %0 : vector<16x128xbf16> to vector<16x128xf32>
    %c0_1 = arith.constant 0 : index
    %c0_2 = arith.constant 0 : index
    %2 = vector.load %arg2[%c0_1, %c0_2] : memref<1x128xf32, #tpu.memory_space<vmem>>, vector<1x128xf32>
    %3 = vector.broadcast %2 : vector<1x128xf32> to vector<16x128xf32>
    %4 = arith.mulf %1, %3 : vector<16x128xf32>
    %c0_3 = arith.constant 0 : index
    %c0_4 = arith.constant 0 : index
    %5 = vector.load %arg3[%c0_3, %c0_4] : memref<1x128xf32, #tpu.memory_space<vmem>>, vector<1x128xf32>
    %6 = vector.broadcast %5 : vector<1x128xf32> to vector<16x128xf32>
    %7 = arith.addf %4, %6 : vector<16x128xf32>
    %8 = arith.truncf %7 : vector<16x128xf32> to vector<16x128xbf16>
    %c0_5 = arith.constant 0 : index
    %c0_6 = arith.constant 0 : index
    %9 = vector.load %arg4[%c0_5, %c0_6] : memref<16x128xbf16, #tpu.memory_space<vmem>>, vector<16x128xbf16>
    tpu.vector_store %arg4[%c0_5, %c0_6], %8 {strides = array<i32>} : memref<16x128xbf16, #tpu.memory_space<vmem>>, vector<16x128xbf16>,
    return
  }
  func.func @transform_0(%arg0: i32) -> (i32, i32) {
    %c0_i32 = arith.constant 0 : i32
    %c0_i32_0 = arith.constant 0 : i32
    return %arg0, %c0_i32 : i32, i32
  }
  func.func @transform_1(%arg0: i32) -> (i32, i32) {
    %c0_i32 = arith.constant 0 : i32
    %c0_i32_0 = arith.constant 0 : i32
    %c0_i32_1 = arith.constant 0 : i32
    return %c0_i32, %c0_i32_0 : i32, i32
  }
  func.func @transform_2(%arg0: i32) -> (i32, i32) {
    %c0_i32 = arith.constant 0 : i32
    %c0_i32_0 = arith.constant 0 : i32
    %c0_i32_1 = arith.constant 0 : i32
    return %c0_i32, %c0_i32_0 : i32, i32
  }
  func.func @transform_3(%arg0: i32) -> (i32, i32) {
    %c0_i32 = arith.constant 0 : i32
    %c0_i32_0 = arith.constant 0 : i32
    return %arg0, %c0_i32 : i32, i32
  }
}

module attributes {stable_mosaic.version = 11 : i64} {
  func.func @_bmm_stats_kernel(%arg0: i32, %arg1: i32, %arg2: i32, %arg3: i32, %arg4: memref<1x16x256xbf16, #tpu.memory_space<vmem>>, %arg5: memref<1x256x128xbf16, #tpu.memory_space<vmem>>, %arg6: memref<1x128xf32, #tpu.memory_space<vmem>>, %arg7: memref<1x16x128xbf16, #tpu.memory_space<vmem>>, %arg8: memref<1x1x1x128xf32, #tpu.memory_space<vmem>>, %arg9: memref<1x1x1x128xf32, #tpu.memory_space<vmem>>, %arg10: memref<16x128xf32, #tpu.memory_space<vmem>>) attributes {dimension_semantics = [#tpu.dimension_semantics<parallel>, #tpu.dimension_semantics<parallel>, #tpu.dimension_semantics<parallel>, #tpu.dimension_semantics<arbitrary>], iteration_bounds = array<i64: 1, 2, 1, 1>, scalar_prefetch = 0 : i64, scratch_operands = 1 : i64, tpu.core_type = #tpu.core_type<tc>, window_params = [{transform_indices = @transform_0, window_bounds = array<i64: 1, 16, 256>}, {transform_indices = @transform_1, window_bounds = array<i64: 1, 256, 128>}, {transform_indices = @transform_2, window_bounds = array<i64: 1, 128>}, {transform_indices = @transform_3, window_bounds = array<i64: 1, 16, 128>}, {transform_indices = @transform_4, window_bounds = array<i64: 1, 1, 1, 128>}, {transform_indices = @transform_5, window_bounds = array<i64: 1, 1, 1, 128>}]} {
    %c0_i32 = arith.constant 0 : i32
    %0 = arith.cmpi eq, %arg3, %c0_i32 : i32
    %1 = arith.extui %0 : i1 to i32
    %c0_i32_0 = arith.constant 0 : i32
    %2 = arith.cmpi ne, %1, %c0_i32_0 : i32
    scf.if %2 {
      %cst_14 = arith.constant 0.000000e+00 : f32
      %19 = vector.broadcast %cst_14 : f32 to vector<16x128xf32>
      %c0_15 = arith.constant 0 : index
      %c0_16 = arith.constant 0 : index
      %20 = vector.load %arg10[%c0_15, %c0_16] : memref<16x128xf32, #tpu.memory_space<vmem>>, vector<16x128xf32>
      tpu.vector_store %arg10[%c0_15, %c0_16], %19 {strides = array<i32>} : memref<16x128xf32, #tpu.memory_space<vmem>>, vector<16x128xf32>,
    } else {
    }
    %c0 = arith.constant 0 : index
    %c0_1 = arith.constant 0 : index
    %c0_2 = arith.constant 0 : index
    %3 = vector.load %arg4[%c0, %c0_1, %c0_2] : memref<1x16x256xbf16, #tpu.memory_space<vmem>>, vector<1x16x256xbf16>
    %4 = vector.shape_cast %3 : vector<1x16x256xbf16> to vector<16x256xbf16>
    %cst = arith.constant 0.000000e+00 : bf16
    %5 = vector.broadcast %cst : bf16 to vector<16x256xbf16>
    %6 = arith.cmpf ogt, %4, %5 : vector<16x256xbf16>
    %cst_3 = arith.constant 2.001950e-01 : bf16
    %7 = vector.broadcast %cst_3 : bf16 to vector<16x256xbf16>
    %8 = arith.mulf %7, %4 : vector<16x256xbf16>
    %9 = arith.select %6, %4, %8 : vector<16x256xi1>, vector<16x256xbf16>
    %c0_4 = arith.constant 0 : index
    %c0_5 = arith.constant 0 : index
    %10 = vector.load %arg10[%c0_4, %c0_5] : memref<16x128xf32, #tpu.memory_space<vmem>>, vector<16x128xf32>
    %c0_6 = arith.constant 0 : index
    %c0_7 = arith.constant 0 : index
    %c0_8 = arith.constant 0 : index
    %11 = vector.load %arg5[%c0_6, %c0_7, %c0_8] : memref<1x256x128xbf16, #tpu.memory_space<vmem>>, vector<1x256x128xbf16>
    %12 = vector.shape_cast %11 : vector<1x256x128xbf16> to vector<256x128xbf16>
    %cst_9 = arith.constant dense<0.000000e+00> : vector<16x128xf32>
    %13 = tpu.matmul %9, %12, %cst_9 {dimension_numbers = #tpu.dot_dimension_numbers<[1], [0], [0], [1], [0, 0, 1, 1], [], []>} : vector<16x256xbf16>, vector<256x128xbf16>, vector<16x128xf32> -> vector<16x128xf32>
    %14 = arith.addf %10, %13 : vector<16x128xf32>
    %c0_10 = arith.constant 0 : index
    %c0_11 = arith.constant 0 : index
    %15 = vector.load %arg10[%c0_10, %c0_11] : memref<16x128xf32, #tpu.memory_space<vmem>>, vector<16x128xf32>
    tpu.vector_store %arg10[%c0_10, %c0_11], %14 {strides = array<i32>} : memref<16x128xf32, #tpu.memory_space<vmem>>, vector<16x128xf32>,
    %c0_i32_12 = arith.constant 0 : i32
    %16 = arith.cmpi eq, %arg3, %c0_i32_12 : i32
    %17 = arith.extui %16 : i1 to i32
    %c0_i32_13 = arith.constant 0 : i32
    %18 = arith.cmpi ne, %17, %c0_i32_13 : i32
    scf.if %18 {
      %c0_14 = arith.constant 0 : index
      %c0_15 = arith.constant 0 : index
      %19 = vector.load %arg10[%c0_14, %c0_15] : memref<16x128xf32, #tpu.memory_space<vmem>>, vector<16x128xf32>
      %c0_16 = arith.constant 0 : index
      %c0_17 = arith.constant 0 : index
      %20 = vector.load %arg6[%c0_16, %c0_17] : memref<1x128xf32, #tpu.memory_space<vmem>>, vector<1x128xf32>
      %21 = vector.broadcast %20 : vector<1x128xf32> to vector<16x128xf32>
      %22 = arith.addf %19, %21 : vector<16x128xf32>
      %23 = arith.truncf %22 : vector<16x128xf32> to vector<16x128xbf16>
      %c0_18 = arith.constant 0 : index
      %c0_19 = arith.constant 0 : index
      %c0_20 = arith.constant 0 : index
      %24 = vector.load %arg7[%c0_18, %c0_19, %c0_20] : memref<1x16x128xbf16, #tpu.memory_space<vmem>>, vector<1x16x128xbf16>
      %25 = vector.shape_cast %24 : vector<1x16x128xbf16> to vector<16x128xbf16>
      %26 = vector.shape_cast %23 : vector<16x128xbf16> to vector<1x16x128xbf16>
      tpu.vector_store %arg7[%c0_18, %c0_19, %c0_20], %26 {strides = array<i32>} : memref<1x16x128xbf16, #tpu.memory_space<vmem>>, vector<1x16x128xbf16>,
      %cst_21 = arith.constant dense<0.000000e+00> : vector<128xf32>
      %27 = vector.multi_reduction <add>, %22, %cst_21 [0] : vector<16x128xf32> to vector<128xf32>
      %28 = vector.shape_cast %27 : vector<128xf32> to vector<1x128xf32>
      %c0_22 = arith.constant 0 : index
      %c0_23 = arith.constant 0 : index
      %c0_24 = arith.constant 0 : index
      %c0_25 = arith.constant 0 : index
      %29 = vector.load %arg8[%c0_22, %c0_23, %c0_24, %c0_25] : memref<1x1x1x128xf32, #tpu.memory_space<vmem>>, vector<1x1x1x128xf32>
      %30 = vector.shape_cast %29 : vector<1x1x1x128xf32> to vector<1x128xf32>
      %31 = vector.shape_cast %28 : vector<1x128xf32> to vector<1x1x1x128xf32>
      tpu.vector_store %arg8[%c0_22, %c0_23, %c0_24, %c0_25], %31 {strides = array<i32>} : memref<1x1x1x128xf32, #tpu.memory_space<vmem>>, vector<1x1x1x128xf32>,
      %32 = arith.mulf %22, %22 : vector<16x128xf32>
      %cst_26 = arith.constant dense<0.000000e+00> : vector<128xf32>
      %33 = vector.multi_reduction <add>, %32, %cst_26 [0] : vector<16x128xf32> to vector<128xf32>
      %34 = vector.shape_cast %33 : vector<128xf32> to vector<1x128xf32>
      %c0_27 = arith.constant 0 : index
      %c0_28 = arith.constant 0 : index
      %c0_29 = arith.constant 0 : index
      %c0_30 = arith.constant 0 : index
      %35 = vector.load %arg9[%c0_27, %c0_28, %c0_29, %c0_30] : memref<1x1x1x128xf32, #tpu.memory_space<vmem>>, vector<1x1x1x128xf32>
      %36 = vector.shape_cast %35 : vector<1x1x1x128xf32> to vector<1x128xf32>
      %37 = vector.shape_cast %34 : vector<1x128xf32> to vector<1x1x1x128xf32>
      tpu.vector_store %arg9[%c0_27, %c0_28, %c0_29, %c0_30], %37 {strides = array<i32>} : memref<1x1x1x128xf32, #tpu.memory_space<vmem>>, vector<1x1x1x128xf32>,
    } else {
    }
    return
  }
  func.func @transform_0(%arg0: i32, %arg1: i32, %arg2: i32, %arg3: i32) -> (i32, i32, i32) {
    %c0_i32 = arith.constant 0 : i32
    return %arg0, %arg1, %arg3 : i32, i32, i32
  }
  func.func @transform_1(%arg0: i32, %arg1: i32, %arg2: i32, %arg3: i32) -> (i32, i32, i32) {
    %c0_i32 = arith.constant 0 : i32
    return %arg0, %arg3, %arg2 : i32, i32, i32
  }
  func.func @transform_2(%arg0: i32, %arg1: i32, %arg2: i32, %arg3: i32) -> (i32, i32) {
    %c0_i32 = arith.constant 0 : i32
    %c0_i32_0 = arith.constant 0 : i32
    return %c0_i32, %arg2 : i32, i32
  }
  func.func @transform_3(%arg0: i32, %arg1: i32, %arg2: i32, %arg3: i32) -> (i32, i32, i32) {
    %c0_i32 = arith.constant 0 : i32
    return %arg0, %arg1, %arg2 : i32, i32, i32
  }
  func.func @transform_4(%arg0: i32, %arg1: i32, %arg2: i32, %arg3: i32) -> (i32, i32, i32, i32) {
    %c0_i32 = arith.constant 0 : i32
    %c0_i32_0 = arith.constant 0 : i32
    return %arg0, %arg1, %c0_i32, %arg2 : i32, i32, i32, i32
  }
  func.func @transform_5(%arg0: i32, %arg1: i32, %arg2: i32, %arg3: i32) -> (i32, i32, i32, i32) {
    %c0_i32 = arith.constant 0 : i32
    %c0_i32_0 = arith.constant 0 : i32
    return %arg0, %arg1, %c0_i32, %arg2 : i32, i32, i32, i32
  }
}

module attributes {stable_mosaic.version = 11 : i64} {
  func.func @_bn_apply_kernel(%arg0: i32, %arg1: memref<8x128xbf16, #tpu.memory_space<vmem>>, %arg2: memref<1x128xf32, #tpu.memory_space<vmem>>, %arg3: memref<1x128xf32, #tpu.memory_space<vmem>>, %arg4: memref<8x128xbf16, #tpu.memory_space<vmem>>) attributes {dimension_semantics = [#tpu.dimension_semantics<parallel>], iteration_bounds = array<i64: 1>, scalar_prefetch = 0 : i64, scratch_operands = 0 : i64, tpu.core_type = #tpu.core_type<tc>, window_params = [{transform_indices = @transform_0, window_bounds = array<i64: 8, 128>}, {pipeline_mode = #tpu.pipeline_mode<synchronous>, transform_indices = @transform_1, window_bounds = array<i64: 1, 128>}, {pipeline_mode = #tpu.pipeline_mode<synchronous>, transform_indices = @transform_2, window_bounds = array<i64: 1, 128>}, {transform_indices = @transform_3, window_bounds = array<i64: 8, 128>}]} {
    %c0 = arith.constant 0 : index
    %c0_0 = arith.constant 0 : index
    %0 = vector.load %arg1[%c0, %c0_0] : memref<8x128xbf16, #tpu.memory_space<vmem>>, vector<8x128xbf16>
    %1 = arith.extf %0 : vector<8x128xbf16> to vector<8x128xf32>
    %c0_1 = arith.constant 0 : index
    %c0_2 = arith.constant 0 : index
    %2 = vector.load %arg2[%c0_1, %c0_2] : memref<1x128xf32, #tpu.memory_space<vmem>>, vector<1x128xf32>
    %3 = vector.broadcast %2 : vector<1x128xf32> to vector<8x128xf32>
    %4 = arith.mulf %1, %3 : vector<8x128xf32>
    %c0_3 = arith.constant 0 : index
    %c0_4 = arith.constant 0 : index
    %5 = vector.load %arg3[%c0_3, %c0_4] : memref<1x128xf32, #tpu.memory_space<vmem>>, vector<1x128xf32>
    %6 = vector.broadcast %5 : vector<1x128xf32> to vector<8x128xf32>
    %7 = arith.addf %4, %6 : vector<8x128xf32>
    %8 = arith.truncf %7 : vector<8x128xf32> to vector<8x128xbf16>
    %c0_5 = arith.constant 0 : index
    %c0_6 = arith.constant 0 : index
    %9 = vector.load %arg4[%c0_5, %c0_6] : memref<8x128xbf16, #tpu.memory_space<vmem>>, vector<8x128xbf16>
    tpu.vector_store %arg4[%c0_5, %c0_6], %8 {strides = array<i32>} : memref<8x128xbf16, #tpu.memory_space<vmem>>, vector<8x128xbf16>,
    return
  }
  func.func @transform_0(%arg0: i32) -> (i32, i32) {
    %c0_i32 = arith.constant 0 : i32
    %c0_i32_0 = arith.constant 0 : i32
    return %arg0, %c0_i32 : i32, i32
  }
  func.func @transform_1(%arg0: i32) -> (i32, i32) {
    %c0_i32 = arith.constant 0 : i32
    %c0_i32_0 = arith.constant 0 : i32
    %c0_i32_1 = arith.constant 0 : i32
    return %c0_i32, %c0_i32_0 : i32, i32
  }
  func.func @transform_2(%arg0: i32) -> (i32, i32) {
    %c0_i32 = arith.constant 0 : i32
    %c0_i32_0 = arith.constant 0 : i32
    %c0_i32_1 = arith.constant 0 : i32
    return %c0_i32, %c0_i32_0 : i32, i32
  }
  func.func @transform_3(%arg0: i32) -> (i32, i32) {
    %c0_i32 = arith.constant 0 : i32
    %c0_i32_0 = arith.constant 0 : i32
    return %arg0, %c0_i32 : i32, i32
  }
}

module attributes {stable_mosaic.version = 11 : i64} {
  func.func @_bmm_stats_kernel(%arg0: i32, %arg1: i32, %arg2: i32, %arg3: i32, %arg4: memref<1x8x512xbf16, #tpu.memory_space<vmem>>, %arg5: memref<1x512x128xbf16, #tpu.memory_space<vmem>>, %arg6: memref<1x128xf32, #tpu.memory_space<vmem>>, %arg7: memref<1x8x128xbf16, #tpu.memory_space<vmem>>, %arg8: memref<1x1x1x128xf32, #tpu.memory_space<vmem>>, %arg9: memref<1x1x1x128xf32, #tpu.memory_space<vmem>>, %arg10: memref<8x128xf32, #tpu.memory_space<vmem>>) attributes {dimension_semantics = [#tpu.dimension_semantics<parallel>, #tpu.dimension_semantics<parallel>, #tpu.dimension_semantics<parallel>, #tpu.dimension_semantics<arbitrary>], iteration_bounds = array<i64: 1, 1, 1, 1>, scalar_prefetch = 0 : i64, scratch_operands = 1 : i64, tpu.core_type = #tpu.core_type<tc>, window_params = [{transform_indices = @transform_0, window_bounds = array<i64: 1, 8, 512>}, {transform_indices = @transform_1, window_bounds = array<i64: 1, 512, 128>}, {transform_indices = @transform_2, window_bounds = array<i64: 1, 128>}, {transform_indices = @transform_3, window_bounds = array<i64: 1, 8, 128>}, {transform_indices = @transform_4, window_bounds = array<i64: 1, 1, 1, 128>}, {transform_indices = @transform_5, window_bounds = array<i64: 1, 1, 1, 128>}]} {
    %c0_i32 = arith.constant 0 : i32
    %0 = arith.cmpi eq, %arg3, %c0_i32 : i32
    %1 = arith.extui %0 : i1 to i32
    %c0_i32_0 = arith.constant 0 : i32
    %2 = arith.cmpi ne, %1, %c0_i32_0 : i32
    scf.if %2 {
      %cst_14 = arith.constant 0.000000e+00 : f32
      %19 = vector.broadcast %cst_14 : f32 to vector<8x128xf32>
      %c0_15 = arith.constant 0 : index
      %c0_16 = arith.constant 0 : index
      %20 = vector.load %arg10[%c0_15, %c0_16] : memref<8x128xf32, #tpu.memory_space<vmem>>, vector<8x128xf32>
      tpu.vector_store %arg10[%c0_15, %c0_16], %19 {strides = array<i32>} : memref<8x128xf32, #tpu.memory_space<vmem>>, vector<8x128xf32>,
    } else {
    }
    %c0 = arith.constant 0 : index
    %c0_1 = arith.constant 0 : index
    %c0_2 = arith.constant 0 : index
    %3 = vector.load %arg4[%c0, %c0_1, %c0_2] : memref<1x8x512xbf16, #tpu.memory_space<vmem>>, vector<1x8x512xbf16>
    %4 = vector.shape_cast %3 : vector<1x8x512xbf16> to vector<8x512xbf16>
    %cst = arith.constant 0.000000e+00 : bf16
    %5 = vector.broadcast %cst : bf16 to vector<8x512xbf16>
    %6 = arith.cmpf ogt, %4, %5 : vector<8x512xbf16>
    %cst_3 = arith.constant 2.001950e-01 : bf16
    %7 = vector.broadcast %cst_3 : bf16 to vector<8x512xbf16>
    %8 = arith.mulf %7, %4 : vector<8x512xbf16>
    %9 = arith.select %6, %4, %8 : vector<8x512xi1>, vector<8x512xbf16>
    %c0_4 = arith.constant 0 : index
    %c0_5 = arith.constant 0 : index
    %10 = vector.load %arg10[%c0_4, %c0_5] : memref<8x128xf32, #tpu.memory_space<vmem>>, vector<8x128xf32>
    %c0_6 = arith.constant 0 : index
    %c0_7 = arith.constant 0 : index
    %c0_8 = arith.constant 0 : index
    %11 = vector.load %arg5[%c0_6, %c0_7, %c0_8] : memref<1x512x128xbf16, #tpu.memory_space<vmem>>, vector<1x512x128xbf16>
    %12 = vector.shape_cast %11 : vector<1x512x128xbf16> to vector<512x128xbf16>
    %cst_9 = arith.constant dense<0.000000e+00> : vector<8x128xf32>
    %13 = tpu.matmul %9, %12, %cst_9 {dimension_numbers = #tpu.dot_dimension_numbers<[1], [0], [0], [1], [0, 0, 1, 1], [], []>} : vector<8x512xbf16>, vector<512x128xbf16>, vector<8x128xf32> -> vector<8x128xf32>
    %14 = arith.addf %10, %13 : vector<8x128xf32>
    %c0_10 = arith.constant 0 : index
    %c0_11 = arith.constant 0 : index
    %15 = vector.load %arg10[%c0_10, %c0_11] : memref<8x128xf32, #tpu.memory_space<vmem>>, vector<8x128xf32>
    tpu.vector_store %arg10[%c0_10, %c0_11], %14 {strides = array<i32>} : memref<8x128xf32, #tpu.memory_space<vmem>>, vector<8x128xf32>,
    %c0_i32_12 = arith.constant 0 : i32
    %16 = arith.cmpi eq, %arg3, %c0_i32_12 : i32
    %17 = arith.extui %16 : i1 to i32
    %c0_i32_13 = arith.constant 0 : i32
    %18 = arith.cmpi ne, %17, %c0_i32_13 : i32
    scf.if %18 {
      %c0_14 = arith.constant 0 : index
      %c0_15 = arith.constant 0 : index
      %19 = vector.load %arg10[%c0_14, %c0_15] : memref<8x128xf32, #tpu.memory_space<vmem>>, vector<8x128xf32>
      %c0_16 = arith.constant 0 : index
      %c0_17 = arith.constant 0 : index
      %20 = vector.load %arg6[%c0_16, %c0_17] : memref<1x128xf32, #tpu.memory_space<vmem>>, vector<1x128xf32>
      %21 = vector.broadcast %20 : vector<1x128xf32> to vector<8x128xf32>
      %22 = arith.addf %19, %21 : vector<8x128xf32>
      %23 = arith.truncf %22 : vector<8x128xf32> to vector<8x128xbf16>
      %c0_18 = arith.constant 0 : index
      %c0_19 = arith.constant 0 : index
      %c0_20 = arith.constant 0 : index
      %24 = vector.load %arg7[%c0_18, %c0_19, %c0_20] : memref<1x8x128xbf16, #tpu.memory_space<vmem>>, vector<1x8x128xbf16>
      %25 = vector.shape_cast %24 : vector<1x8x128xbf16> to vector<8x128xbf16>
      %26 = vector.shape_cast %23 : vector<8x128xbf16> to vector<1x8x128xbf16>
      tpu.vector_store %arg7[%c0_18, %c0_19, %c0_20], %26 {strides = array<i32>} : memref<1x8x128xbf16, #tpu.memory_space<vmem>>, vector<1x8x128xbf16>,
      %cst_21 = arith.constant dense<0.000000e+00> : vector<128xf32>
      %27 = vector.multi_reduction <add>, %22, %cst_21 [0] : vector<8x128xf32> to vector<128xf32>
      %28 = vector.shape_cast %27 : vector<128xf32> to vector<1x128xf32>
      %c0_22 = arith.constant 0 : index
      %c0_23 = arith.constant 0 : index
      %c0_24 = arith.constant 0 : index
      %c0_25 = arith.constant 0 : index
      %29 = vector.load %arg8[%c0_22, %c0_23, %c0_24, %c0_25] : memref<1x1x1x128xf32, #tpu.memory_space<vmem>>, vector<1x1x1x128xf32>
      %30 = vector.shape_cast %29 : vector<1x1x1x128xf32> to vector<1x128xf32>
      %31 = vector.shape_cast %28 : vector<1x128xf32> to vector<1x1x1x128xf32>
      tpu.vector_store %arg8[%c0_22, %c0_23, %c0_24, %c0_25], %31 {strides = array<i32>} : memref<1x1x1x128xf32, #tpu.memory_space<vmem>>, vector<1x1x1x128xf32>,
      %32 = arith.mulf %22, %22 : vector<8x128xf32>
      %cst_26 = arith.constant dense<0.000000e+00> : vector<128xf32>
      %33 = vector.multi_reduction <add>, %32, %cst_26 [0] : vector<8x128xf32> to vector<128xf32>
      %34 = vector.shape_cast %33 : vector<128xf32> to vector<1x128xf32>
      %c0_27 = arith.constant 0 : index
      %c0_28 = arith.constant 0 : index
      %c0_29 = arith.constant 0 : index
      %c0_30 = arith.constant 0 : index
      %35 = vector.load %arg9[%c0_27, %c0_28, %c0_29, %c0_30] : memref<1x1x1x128xf32, #tpu.memory_space<vmem>>, vector<1x1x1x128xf32>
      %36 = vector.shape_cast %35 : vector<1x1x1x128xf32> to vector<1x128xf32>
      %37 = vector.shape_cast %34 : vector<1x128xf32> to vector<1x1x1x128xf32>
      tpu.vector_store %arg9[%c0_27, %c0_28, %c0_29, %c0_30], %37 {strides = array<i32>} : memref<1x1x1x128xf32, #tpu.memory_space<vmem>>, vector<1x1x1x128xf32>,
    } else {
    }
    return
  }
  func.func @transform_0(%arg0: i32, %arg1: i32, %arg2: i32, %arg3: i32) -> (i32, i32, i32) {
    %c0_i32 = arith.constant 0 : i32
    return %arg0, %arg1, %arg3 : i32, i32, i32
  }
  func.func @transform_1(%arg0: i32, %arg1: i32, %arg2: i32, %arg3: i32) -> (i32, i32, i32) {
    %c0_i32 = arith.constant 0 : i32
    return %arg0, %arg3, %arg2 : i32, i32, i32
  }
  func.func @transform_2(%arg0: i32, %arg1: i32, %arg2: i32, %arg3: i32) -> (i32, i32) {
    %c0_i32 = arith.constant 0 : i32
    %c0_i32_0 = arith.constant 0 : i32
    return %c0_i32, %arg2 : i32, i32
  }
  func.func @transform_3(%arg0: i32, %arg1: i32, %arg2: i32, %arg3: i32) -> (i32, i32, i32) {
    %c0_i32 = arith.constant 0 : i32
    return %arg0, %arg1, %arg2 : i32, i32, i32
  }
  func.func @transform_4(%arg0: i32, %arg1: i32, %arg2: i32, %arg3: i32) -> (i32, i32, i32, i32) {
    %c0_i32 = arith.constant 0 : i32
    %c0_i32_0 = arith.constant 0 : i32
    return %arg0, %arg1, %c0_i32, %arg2 : i32, i32, i32, i32
  }
  func.func @transform_5(%arg0: i32, %arg1: i32, %arg2: i32, %arg3: i32) -> (i32, i32, i32, i32) {
    %c0_i32 = arith.constant 0 : i32
    %c0_i32_0 = arith.constant 0 : i32
    return %arg0, %arg1, %c0_i32, %arg2 : i32, i32, i32, i32
  }
}

module attributes {stable_mosaic.version = 11 : i64} {
  func.func @_bmm_kernel(%arg0: i32, %arg1: i32, %arg2: i32, %arg3: i32, %arg4: memref<1x8x1024xbf16, #tpu.memory_space<vmem>>, %arg5: memref<1x1024x128xbf16, #tpu.memory_space<vmem>>, %arg6: memref<1x128xf32, #tpu.memory_space<vmem>>, %arg7: memref<1x8x128xbf16, #tpu.memory_space<vmem>>, %arg8: memref<8x128xf32, #tpu.memory_space<vmem>>) attributes {dimension_semantics = [#tpu.dimension_semantics<parallel>, #tpu.dimension_semantics<parallel>, #tpu.dimension_semantics<parallel>, #tpu.dimension_semantics<arbitrary>], iteration_bounds = array<i64: 1, 1, 1, 1>, scalar_prefetch = 0 : i64, scratch_operands = 1 : i64, tpu.core_type = #tpu.core_type<tc>, window_params = [{transform_indices = @transform_0, window_bounds = array<i64: 1, 8, 1024>}, {transform_indices = @transform_1, window_bounds = array<i64: 1, 1024, 128>}, {transform_indices = @transform_2, window_bounds = array<i64: 1, 128>}, {transform_indices = @transform_3, window_bounds = array<i64: 1, 8, 128>}]} {
    %c0_i32 = arith.constant 0 : i32
    %0 = arith.cmpi eq, %arg3, %c0_i32 : i32
    %1 = arith.extui %0 : i1 to i32
    %c0_i32_0 = arith.constant 0 : i32
    %2 = arith.cmpi ne, %1, %c0_i32_0 : i32
    scf.if %2 {
      %cst_14 = arith.constant 0.000000e+00 : f32
      %19 = vector.broadcast %cst_14 : f32 to vector<8x128xf32>
      %c0_15 = arith.constant 0 : index
      %c0_16 = arith.constant 0 : index
      %20 = vector.load %arg8[%c0_15, %c0_16] : memref<8x128xf32, #tpu.memory_space<vmem>>, vector<8x128xf32>
      tpu.vector_store %arg8[%c0_15, %c0_16], %19 {strides = array<i32>} : memref<8x128xf32, #tpu.memory_space<vmem>>, vector<8x128xf32>,
    } else {
    }
    %c0 = arith.constant 0 : index
    %c0_1 = arith.constant 0 : index
    %c0_2 = arith.constant 0 : index
    %3 = vector.load %arg4[%c0, %c0_1, %c0_2] : memref<1x8x1024xbf16, #tpu.memory_space<vmem>>, vector<1x8x1024xbf16>
    %4 = vector.shape_cast %3 : vector<1x8x1024xbf16> to vector<8x1024xbf16>
    %cst = arith.constant 0.000000e+00 : bf16
    %5 = vector.broadcast %cst : bf16 to vector<8x1024xbf16>
    %6 = arith.cmpf ogt, %4, %5 : vector<8x1024xbf16>
    %cst_3 = arith.constant 2.001950e-01 : bf16
    %7 = vector.broadcast %cst_3 : bf16 to vector<8x1024xbf16>
    %8 = arith.mulf %7, %4 : vector<8x1024xbf16>
    %9 = arith.select %6, %4, %8 : vector<8x1024xi1>, vector<8x1024xbf16>
    %c0_4 = arith.constant 0 : index
    %c0_5 = arith.constant 0 : index
    %10 = vector.load %arg8[%c0_4, %c0_5] : memref<8x128xf32, #tpu.memory_space<vmem>>, vector<8x128xf32>
    %c0_6 = arith.constant 0 : index
    %c0_7 = arith.constant 0 : index
    %c0_8 = arith.constant 0 : index
    %11 = vector.load %arg5[%c0_6, %c0_7, %c0_8] : memref<1x1024x128xbf16, #tpu.memory_space<vmem>>, vector<1x1024x128xbf16>
    %12 = vector.shape_cast %11 : vector<1x1024x128xbf16> to vector<1024x128xbf16>
    %cst_9 = arith.constant dense<0.000000e+00> : vector<8x128xf32>
    %13 = tpu.matmul %9, %12, %cst_9 {dimension_numbers = #tpu.dot_dimension_numbers<[1], [0], [0], [1], [0, 0, 1, 1], [], []>} : vector<8x1024xbf16>, vector<1024x128xbf16>, vector<8x128xf32> -> vector<8x128xf32>
    %14 = arith.addf %10, %13 : vector<8x128xf32>
    %c0_10 = arith.constant 0 : index
    %c0_11 = arith.constant 0 : index
    %15 = vector.load %arg8[%c0_10, %c0_11] : memref<8x128xf32, #tpu.memory_space<vmem>>, vector<8x128xf32>
    tpu.vector_store %arg8[%c0_10, %c0_11], %14 {strides = array<i32>} : memref<8x128xf32, #tpu.memory_space<vmem>>, vector<8x128xf32>,
    %c0_i32_12 = arith.constant 0 : i32
    %16 = arith.cmpi eq, %arg3, %c0_i32_12 : i32
    %17 = arith.extui %16 : i1 to i32
    %c0_i32_13 = arith.constant 0 : i32
    %18 = arith.cmpi ne, %17, %c0_i32_13 : i32
    scf.if %18 {
      %c0_14 = arith.constant 0 : index
      %c0_15 = arith.constant 0 : index
      %19 = vector.load %arg8[%c0_14, %c0_15] : memref<8x128xf32, #tpu.memory_space<vmem>>, vector<8x128xf32>
      %c0_16 = arith.constant 0 : index
      %c0_17 = arith.constant 0 : index
      %20 = vector.load %arg6[%c0_16, %c0_17] : memref<1x128xf32, #tpu.memory_space<vmem>>, vector<1x128xf32>
      %21 = vector.broadcast %20 : vector<1x128xf32> to vector<8x128xf32>
      %22 = arith.addf %19, %21 : vector<8x128xf32>
      %23 = arith.truncf %22 : vector<8x128xf32> to vector<8x128xbf16>
      %c0_18 = arith.constant 0 : index
      %c0_19 = arith.constant 0 : index
      %c0_20 = arith.constant 0 : index
      %24 = vector.load %arg7[%c0_18, %c0_19, %c0_20] : memref<1x8x128xbf16, #tpu.memory_space<vmem>>, vector<1x8x128xbf16>
      %25 = vector.shape_cast %24 : vector<1x8x128xbf16> to vector<8x128xbf16>
      %26 = vector.shape_cast %23 : vector<8x128xbf16> to vector<1x8x128xbf16>
      tpu.vector_store %arg7[%c0_18, %c0_19, %c0_20], %26 {strides = array<i32>} : memref<1x8x128xbf16, #tpu.memory_space<vmem>>, vector<1x8x128xbf16>,
    } else {
    }
    return
  }
  func.func @transform_0(%arg0: i32, %arg1: i32, %arg2: i32, %arg3: i32) -> (i32, i32, i32) {
    %c0_i32 = arith.constant 0 : i32
    return %arg0, %arg1, %arg3 : i32, i32, i32
  }
  func.func @transform_1(%arg0: i32, %arg1: i32, %arg2: i32, %arg3: i32) -> (i32, i32, i32) {
    %c0_i32 = arith.constant 0 : i32
    return %arg0, %arg3, %arg2 : i32, i32, i32
  }
  func.func @transform_2(%arg0: i32, %arg1: i32, %arg2: i32, %arg3: i32) -> (i32, i32) {
    %c0_i32 = arith.constant 0 : i32
    %c0_i32_0 = arith.constant 0 : i32
    return %c0_i32, %arg2 : i32, i32
  }
  func.func @transform_3(%arg0: i32, %arg1: i32, %arg2: i32, %arg3: i32) -> (i32, i32, i32) {
    %c0_i32 = arith.constant 0 : i32
    return %arg0, %arg1, %arg2 : i32, i32, i32
  }
}

module attributes {stable_mosaic.version = 11 : i64} {
  func.func @_bmm_stats_kernel(%arg0: i32, %arg1: i32, %arg2: i32, %arg3: i32, %arg4: memref<1x8x256xbf16, #tpu.memory_space<vmem>>, %arg5: memref<1x256x128xbf16, #tpu.memory_space<vmem>>, %arg6: memref<1x128xf32, #tpu.memory_space<vmem>>, %arg7: memref<1x8x128xbf16, #tpu.memory_space<vmem>>, %arg8: memref<1x1x1x128xf32, #tpu.memory_space<vmem>>, %arg9: memref<1x1x1x128xf32, #tpu.memory_space<vmem>>, %arg10: memref<8x128xf32, #tpu.memory_space<vmem>>) attributes {dimension_semantics = [#tpu.dimension_semantics<parallel>, #tpu.dimension_semantics<parallel>, #tpu.dimension_semantics<parallel>, #tpu.dimension_semantics<arbitrary>], iteration_bounds = array<i64: 4, 1, 1, 1>, scalar_prefetch = 0 : i64, scratch_operands = 1 : i64, tpu.core_type = #tpu.core_type<tc>, window_params = [{transform_indices = @transform_0, window_bounds = array<i64: 1, 8, 256>}, {transform_indices = @transform_1, window_bounds = array<i64: 1, 256, 128>}, {transform_indices = @transform_2, window_bounds = array<i64: 1, 128>}, {transform_indices = @transform_3, window_bounds = array<i64: 1, 8, 128>}, {transform_indices = @transform_4, window_bounds = array<i64: 1, 1, 1, 128>}, {transform_indices = @transform_5, window_bounds = array<i64: 1, 1, 1, 128>}]} {
    %c0_i32 = arith.constant 0 : i32
    %0 = arith.cmpi eq, %arg3, %c0_i32 : i32
    %1 = arith.extui %0 : i1 to i32
    %c0_i32_0 = arith.constant 0 : i32
    %2 = arith.cmpi ne, %1, %c0_i32_0 : i32
    scf.if %2 {
      %cst_13 = arith.constant 0.000000e+00 : f32
      %16 = vector.broadcast %cst_13 : f32 to vector<8x128xf32>
      %c0_14 = arith.constant 0 : index
      %c0_15 = arith.constant 0 : index
      %17 = vector.load %arg10[%c0_14, %c0_15] : memref<8x128xf32, #tpu.memory_space<vmem>>, vector<8x128xf32>
      tpu.vector_store %arg10[%c0_14, %c0_15], %16 {strides = array<i32>} : memref<8x128xf32, #tpu.memory_space<vmem>>, vector<8x128xf32>,
    } else {
    }
    %c0 = arith.constant 0 : index
    %c0_1 = arith.constant 0 : index
    %c0_2 = arith.constant 0 : index
    %3 = vector.load %arg4[%c0, %c0_1, %c0_2] : memref<1x8x256xbf16, #tpu.memory_space<vmem>>, vector<1x8x256xbf16>
    %4 = vector.shape_cast %3 : vector<1x8x256xbf16> to vector<8x256xbf16>
    %cst = arith.constant 0.000000e+00 : bf16
    %5 = vector.broadcast %cst : bf16 to vector<8x256xbf16>
    %6 = arith.maximumf %4, %5 : vector<8x256xbf16>
    %c0_3 = arith.constant 0 : index
    %c0_4 = arith.constant 0 : index
    %7 = vector.load %arg10[%c0_3, %c0_4] : memref<8x128xf32, #tpu.memory_space<vmem>>, vector<8x128xf32>
    %c0_5 = arith.constant 0 : index
    %c0_6 = arith.constant 0 : index
    %c0_7 = arith.constant 0 : index
    %8 = vector.load %arg5[%c0_5, %c0_6, %c0_7] : memref<1x256x128xbf16, #tpu.memory_space<vmem>>, vector<1x256x128xbf16>
    %9 = vector.shape_cast %8 : vector<1x256x128xbf16> to vector<256x128xbf16>
    %cst_8 = arith.constant dense<0.000000e+00> : vector<8x128xf32>
    %10 = tpu.matmul %6, %9, %cst_8 {dimension_numbers = #tpu.dot_dimension_numbers<[1], [0], [0], [1], [0, 0, 1, 1], [], []>} : vector<8x256xbf16>, vector<256x128xbf16>, vector<8x128xf32> -> vector<8x128xf32>
    %11 = arith.addf %7, %10 : vector<8x128xf32>
    %c0_9 = arith.constant 0 : index
    %c0_10 = arith.constant 0 : index
    %12 = vector.load %arg10[%c0_9, %c0_10] : memref<8x128xf32, #tpu.memory_space<vmem>>, vector<8x128xf32>
    tpu.vector_store %arg10[%c0_9, %c0_10], %11 {strides = array<i32>} : memref<8x128xf32, #tpu.memory_space<vmem>>, vector<8x128xf32>,
    %c0_i32_11 = arith.constant 0 : i32
    %13 = arith.cmpi eq, %arg3, %c0_i32_11 : i32
    %14 = arith.extui %13 : i1 to i32
    %c0_i32_12 = arith.constant 0 : i32
    %15 = arith.cmpi ne, %14, %c0_i32_12 : i32
    scf.if %15 {
      %c0_13 = arith.constant 0 : index
      %c0_14 = arith.constant 0 : index
      %16 = vector.load %arg10[%c0_13, %c0_14] : memref<8x128xf32, #tpu.memory_space<vmem>>, vector<8x128xf32>
      %c0_15 = arith.constant 0 : index
      %c0_16 = arith.constant 0 : index
      %17 = vector.load %arg6[%c0_15, %c0_16] : memref<1x128xf32, #tpu.memory_space<vmem>>, vector<1x128xf32>
      %18 = vector.broadcast %17 : vector<1x128xf32> to vector<8x128xf32>
      %19 = arith.addf %16, %18 : vector<8x128xf32>
      %20 = arith.truncf %19 : vector<8x128xf32> to vector<8x128xbf16>
      %c0_17 = arith.constant 0 : index
      %c0_18 = arith.constant 0 : index
      %c0_19 = arith.constant 0 : index
      %21 = vector.load %arg7[%c0_17, %c0_18, %c0_19] : memref<1x8x128xbf16, #tpu.memory_space<vmem>>, vector<1x8x128xbf16>
      %22 = vector.shape_cast %21 : vector<1x8x128xbf16> to vector<8x128xbf16>
      %23 = vector.shape_cast %20 : vector<8x128xbf16> to vector<1x8x128xbf16>
      tpu.vector_store %arg7[%c0_17, %c0_18, %c0_19], %23 {strides = array<i32>} : memref<1x8x128xbf16, #tpu.memory_space<vmem>>, vector<1x8x128xbf16>,
      %cst_20 = arith.constant dense<0.000000e+00> : vector<128xf32>
      %24 = vector.multi_reduction <add>, %19, %cst_20 [0] : vector<8x128xf32> to vector<128xf32>
      %25 = vector.shape_cast %24 : vector<128xf32> to vector<1x128xf32>
      %c0_21 = arith.constant 0 : index
      %c0_22 = arith.constant 0 : index
      %c0_23 = arith.constant 0 : index
      %c0_24 = arith.constant 0 : index
      %26 = vector.load %arg8[%c0_21, %c0_22, %c0_23, %c0_24] : memref<1x1x1x128xf32, #tpu.memory_space<vmem>>, vector<1x1x1x128xf32>
      %27 = vector.shape_cast %26 : vector<1x1x1x128xf32> to vector<1x128xf32>
      %28 = vector.shape_cast %25 : vector<1x128xf32> to vector<1x1x1x128xf32>
      tpu.vector_store %arg8[%c0_21, %c0_22, %c0_23, %c0_24], %28 {strides = array<i32>} : memref<1x1x1x128xf32, #tpu.memory_space<vmem>>, vector<1x1x1x128xf32>,
      %29 = arith.mulf %19, %19 : vector<8x128xf32>
      %cst_25 = arith.constant dense<0.000000e+00> : vector<128xf32>
      %30 = vector.multi_reduction <add>, %29, %cst_25 [0] : vector<8x128xf32> to vector<128xf32>
      %31 = vector.shape_cast %30 : vector<128xf32> to vector<1x128xf32>
      %c0_26 = arith.constant 0 : index
      %c0_27 = arith.constant 0 : index
      %c0_28 = arith.constant 0 : index
      %c0_29 = arith.constant 0 : index
      %32 = vector.load %arg9[%c0_26, %c0_27, %c0_28, %c0_29] : memref<1x1x1x128xf32, #tpu.memory_space<vmem>>, vector<1x1x1x128xf32>
      %33 = vector.shape_cast %32 : vector<1x1x1x128xf32> to vector<1x128xf32>
      %34 = vector.shape_cast %31 : vector<1x128xf32> to vector<1x1x1x128xf32>
      tpu.vector_store %arg9[%c0_26, %c0_27, %c0_28, %c0_29], %34 {strides = array<i32>} : memref<1x1x1x128xf32, #tpu.memory_space<vmem>>, vector<1x1x1x128xf32>,
    } else {
    }
    return
  }
  func.func @transform_0(%arg0: i32, %arg1: i32, %arg2: i32, %arg3: i32) -> (i32, i32, i32) {
    %c0_i32 = arith.constant 0 : i32
    return %arg0, %arg1, %arg3 : i32, i32, i32
  }
  func.func @transform_1(%arg0: i32, %arg1: i32, %arg2: i32, %arg3: i32) -> (i32, i32, i32) {
    %c0_i32 = arith.constant 0 : i32
    return %arg0, %arg3, %arg2 : i32, i32, i32
  }
  func.func @transform_2(%arg0: i32, %arg1: i32, %arg2: i32, %arg3: i32) -> (i32, i32) {
    %c0_i32 = arith.constant 0 : i32
    %c0_i32_0 = arith.constant 0 : i32
    return %c0_i32, %arg2 : i32, i32
  }
  func.func @transform_3(%arg0: i32, %arg1: i32, %arg2: i32, %arg3: i32) -> (i32, i32, i32) {
    %c0_i32 = arith.constant 0 : i32
    return %arg0, %arg1, %arg2 : i32, i32, i32
  }
  func.func @transform_4(%arg0: i32, %arg1: i32, %arg2: i32, %arg3: i32) -> (i32, i32, i32, i32) {
    %c0_i32 = arith.constant 0 : i32
    %c0_i32_0 = arith.constant 0 : i32
    return %arg0, %arg1, %c0_i32, %arg2 : i32, i32, i32, i32
  }
  func.func @transform_5(%arg0: i32, %arg1: i32, %arg2: i32, %arg3: i32) -> (i32, i32, i32, i32) {
    %c0_i32 = arith.constant 0 : i32
    %c0_i32_0 = arith.constant 0 : i32
    return %arg0, %arg1, %c0_i32, %arg2 : i32, i32, i32, i32
  }
}

module attributes {stable_mosaic.version = 11 : i64} {
  func.func @_bmm_stats_kernel(%arg0: i32, %arg1: i32, %arg2: i32, %arg3: i32, %arg4: memref<1x8x512xbf16, #tpu.memory_space<vmem>>, %arg5: memref<1x512x128xbf16, #tpu.memory_space<vmem>>, %arg6: memref<1x128xf32, #tpu.memory_space<vmem>>, %arg7: memref<1x8x128xbf16, #tpu.memory_space<vmem>>, %arg8: memref<1x1x1x128xf32, #tpu.memory_space<vmem>>, %arg9: memref<1x1x1x128xf32, #tpu.memory_space<vmem>>, %arg10: memref<8x128xf32, #tpu.memory_space<vmem>>) attributes {dimension_semantics = [#tpu.dimension_semantics<parallel>, #tpu.dimension_semantics<parallel>, #tpu.dimension_semantics<parallel>, #tpu.dimension_semantics<arbitrary>], iteration_bounds = array<i64: 4, 1, 1, 1>, scalar_prefetch = 0 : i64, scratch_operands = 1 : i64, tpu.core_type = #tpu.core_type<tc>, window_params = [{transform_indices = @transform_0, window_bounds = array<i64: 1, 8, 512>}, {transform_indices = @transform_1, window_bounds = array<i64: 1, 512, 128>}, {transform_indices = @transform_2, window_bounds = array<i64: 1, 128>}, {transform_indices = @transform_3, window_bounds = array<i64: 1, 8, 128>}, {transform_indices = @transform_4, window_bounds = array<i64: 1, 1, 1, 128>}, {transform_indices = @transform_5, window_bounds = array<i64: 1, 1, 1, 128>}]} {
    %c0_i32 = arith.constant 0 : i32
    %0 = arith.cmpi eq, %arg3, %c0_i32 : i32
    %1 = arith.extui %0 : i1 to i32
    %c0_i32_0 = arith.constant 0 : i32
    %2 = arith.cmpi ne, %1, %c0_i32_0 : i32
    scf.if %2 {
      %cst_13 = arith.constant 0.000000e+00 : f32
      %16 = vector.broadcast %cst_13 : f32 to vector<8x128xf32>
      %c0_14 = arith.constant 0 : index
      %c0_15 = arith.constant 0 : index
      %17 = vector.load %arg10[%c0_14, %c0_15] : memref<8x128xf32, #tpu.memory_space<vmem>>, vector<8x128xf32>
      tpu.vector_store %arg10[%c0_14, %c0_15], %16 {strides = array<i32>} : memref<8x128xf32, #tpu.memory_space<vmem>>, vector<8x128xf32>,
    } else {
    }
    %c0 = arith.constant 0 : index
    %c0_1 = arith.constant 0 : index
    %c0_2 = arith.constant 0 : index
    %3 = vector.load %arg4[%c0, %c0_1, %c0_2] : memref<1x8x512xbf16, #tpu.memory_space<vmem>>, vector<1x8x512xbf16>
    %4 = vector.shape_cast %3 : vector<1x8x512xbf16> to vector<8x512xbf16>
    %cst = arith.constant 0.000000e+00 : bf16
    %5 = vector.broadcast %cst : bf16 to vector<8x512xbf16>
    %6 = arith.maximumf %4, %5 : vector<8x512xbf16>
    %c0_3 = arith.constant 0 : index
    %c0_4 = arith.constant 0 : index
    %7 = vector.load %arg10[%c0_3, %c0_4] : memref<8x128xf32, #tpu.memory_space<vmem>>, vector<8x128xf32>
    %c0_5 = arith.constant 0 : index
    %c0_6 = arith.constant 0 : index
    %c0_7 = arith.constant 0 : index
    %8 = vector.load %arg5[%c0_5, %c0_6, %c0_7] : memref<1x512x128xbf16, #tpu.memory_space<vmem>>, vector<1x512x128xbf16>
    %9 = vector.shape_cast %8 : vector<1x512x128xbf16> to vector<512x128xbf16>
    %cst_8 = arith.constant dense<0.000000e+00> : vector<8x128xf32>
    %10 = tpu.matmul %6, %9, %cst_8 {dimension_numbers = #tpu.dot_dimension_numbers<[1], [0], [0], [1], [0, 0, 1, 1], [], []>} : vector<8x512xbf16>, vector<512x128xbf16>, vector<8x128xf32> -> vector<8x128xf32>
    %11 = arith.addf %7, %10 : vector<8x128xf32>
    %c0_9 = arith.constant 0 : index
    %c0_10 = arith.constant 0 : index
    %12 = vector.load %arg10[%c0_9, %c0_10] : memref<8x128xf32, #tpu.memory_space<vmem>>, vector<8x128xf32>
    tpu.vector_store %arg10[%c0_9, %c0_10], %11 {strides = array<i32>} : memref<8x128xf32, #tpu.memory_space<vmem>>, vector<8x128xf32>,
    %c0_i32_11 = arith.constant 0 : i32
    %13 = arith.cmpi eq, %arg3, %c0_i32_11 : i32
    %14 = arith.extui %13 : i1 to i32
    %c0_i32_12 = arith.constant 0 : i32
    %15 = arith.cmpi ne, %14, %c0_i32_12 : i32
    scf.if %15 {
      %c0_13 = arith.constant 0 : index
      %c0_14 = arith.constant 0 : index
      %16 = vector.load %arg10[%c0_13, %c0_14] : memref<8x128xf32, #tpu.memory_space<vmem>>, vector<8x128xf32>
      %c0_15 = arith.constant 0 : index
      %c0_16 = arith.constant 0 : index
      %17 = vector.load %arg6[%c0_15, %c0_16] : memref<1x128xf32, #tpu.memory_space<vmem>>, vector<1x128xf32>
      %18 = vector.broadcast %17 : vector<1x128xf32> to vector<8x128xf32>
      %19 = arith.addf %16, %18 : vector<8x128xf32>
      %20 = arith.truncf %19 : vector<8x128xf32> to vector<8x128xbf16>
      %c0_17 = arith.constant 0 : index
      %c0_18 = arith.constant 0 : index
      %c0_19 = arith.constant 0 : index
      %21 = vector.load %arg7[%c0_17, %c0_18, %c0_19] : memref<1x8x128xbf16, #tpu.memory_space<vmem>>, vector<1x8x128xbf16>
      %22 = vector.shape_cast %21 : vector<1x8x128xbf16> to vector<8x128xbf16>
      %23 = vector.shape_cast %20 : vector<8x128xbf16> to vector<1x8x128xbf16>
      tpu.vector_store %arg7[%c0_17, %c0_18, %c0_19], %23 {strides = array<i32>} : memref<1x8x128xbf16, #tpu.memory_space<vmem>>, vector<1x8x128xbf16>,
      %cst_20 = arith.constant dense<0.000000e+00> : vector<128xf32>
      %24 = vector.multi_reduction <add>, %19, %cst_20 [0] : vector<8x128xf32> to vector<128xf32>
      %25 = vector.shape_cast %24 : vector<128xf32> to vector<1x128xf32>
      %c0_21 = arith.constant 0 : index
      %c0_22 = arith.constant 0 : index
      %c0_23 = arith.constant 0 : index
      %c0_24 = arith.constant 0 : index
      %26 = vector.load %arg8[%c0_21, %c0_22, %c0_23, %c0_24] : memref<1x1x1x128xf32, #tpu.memory_space<vmem>>, vector<1x1x1x128xf32>
      %27 = vector.shape_cast %26 : vector<1x1x1x128xf32> to vector<1x128xf32>
      %28 = vector.shape_cast %25 : vector<1x128xf32> to vector<1x1x1x128xf32>
      tpu.vector_store %arg8[%c0_21, %c0_22, %c0_23, %c0_24], %28 {strides = array<i32>} : memref<1x1x1x128xf32, #tpu.memory_space<vmem>>, vector<1x1x1x128xf32>,
      %29 = arith.mulf %19, %19 : vector<8x128xf32>
      %cst_25 = arith.constant dense<0.000000e+00> : vector<128xf32>
      %30 = vector.multi_reduction <add>, %29, %cst_25 [0] : vector<8x128xf32> to vector<128xf32>
      %31 = vector.shape_cast %30 : vector<128xf32> to vector<1x128xf32>
      %c0_26 = arith.constant 0 : index
      %c0_27 = arith.constant 0 : index
      %c0_28 = arith.constant 0 : index
      %c0_29 = arith.constant 0 : index
      %32 = vector.load %arg9[%c0_26, %c0_27, %c0_28, %c0_29] : memref<1x1x1x128xf32, #tpu.memory_space<vmem>>, vector<1x1x1x128xf32>
      %33 = vector.shape_cast %32 : vector<1x1x1x128xf32> to vector<1x128xf32>
      %34 = vector.shape_cast %31 : vector<1x128xf32> to vector<1x1x1x128xf32>
      tpu.vector_store %arg9[%c0_26, %c0_27, %c0_28, %c0_29], %34 {strides = array<i32>} : memref<1x1x1x128xf32, #tpu.memory_space<vmem>>, vector<1x1x1x128xf32>,
    } else {
    }
    return
  }
  func.func @transform_0(%arg0: i32, %arg1: i32, %arg2: i32, %arg3: i32) -> (i32, i32, i32) {
    %c0_i32 = arith.constant 0 : i32
    return %arg0, %arg1, %arg3 : i32, i32, i32
  }
  func.func @transform_1(%arg0: i32, %arg1: i32, %arg2: i32, %arg3: i32) -> (i32, i32, i32) {
    %c0_i32 = arith.constant 0 : i32
    return %arg0, %arg3, %arg2 : i32, i32, i32
  }
  func.func @transform_2(%arg0: i32, %arg1: i32, %arg2: i32, %arg3: i32) -> (i32, i32) {
    %c0_i32 = arith.constant 0 : i32
    %c0_i32_0 = arith.constant 0 : i32
    return %c0_i32, %arg2 : i32, i32
  }
  func.func @transform_3(%arg0: i32, %arg1: i32, %arg2: i32, %arg3: i32) -> (i32, i32, i32) {
    %c0_i32 = arith.constant 0 : i32
    return %arg0, %arg1, %arg2 : i32, i32, i32
  }
  func.func @transform_4(%arg0: i32, %arg1: i32, %arg2: i32, %arg3: i32) -> (i32, i32, i32, i32) {
    %c0_i32 = arith.constant 0 : i32
    %c0_i32_0 = arith.constant 0 : i32
    return %arg0, %arg1, %c0_i32, %arg2 : i32, i32, i32, i32
  }
  func.func @transform_5(%arg0: i32, %arg1: i32, %arg2: i32, %arg3: i32) -> (i32, i32, i32, i32) {
    %c0_i32 = arith.constant 0 : i32
    %c0_i32_0 = arith.constant 0 : i32
    return %arg0, %arg1, %c0_i32, %arg2 : i32, i32, i32, i32
  }
}

module attributes {stable_mosaic.version = 11 : i64} {
  func.func @_bmm_stats_kernel(%arg0: i32, %arg1: i32, %arg2: i32, %arg3: i32, %arg4: memref<1x32x256xbf16, #tpu.memory_space<vmem>>, %arg5: memref<1x256x128xbf16, #tpu.memory_space<vmem>>, %arg6: memref<1x128xf32, #tpu.memory_space<vmem>>, %arg7: memref<1x32x128xbf16, #tpu.memory_space<vmem>>, %arg8: memref<1x1x1x128xf32, #tpu.memory_space<vmem>>, %arg9: memref<1x1x1x128xf32, #tpu.memory_space<vmem>>, %arg10: memref<32x128xf32, #tpu.memory_space<vmem>>) attributes {dimension_semantics = [#tpu.dimension_semantics<parallel>, #tpu.dimension_semantics<parallel>, #tpu.dimension_semantics<parallel>, #tpu.dimension_semantics<arbitrary>], iteration_bounds = array<i64: 4, 1, 1, 1>, scalar_prefetch = 0 : i64, scratch_operands = 1 : i64, tpu.core_type = #tpu.core_type<tc>, window_params = [{transform_indices = @transform_0, window_bounds = array<i64: 1, 32, 256>}, {transform_indices = @transform_1, window_bounds = array<i64: 1, 256, 128>}, {transform_indices = @transform_2, window_bounds = array<i64: 1, 128>}, {transform_indices = @transform_3, window_bounds = array<i64: 1, 32, 128>}, {transform_indices = @transform_4, window_bounds = array<i64: 1, 1, 1, 128>}, {transform_indices = @transform_5, window_bounds = array<i64: 1, 1, 1, 128>}]} {
    %c0_i32 = arith.constant 0 : i32
    %0 = arith.cmpi eq, %arg3, %c0_i32 : i32
    %1 = arith.extui %0 : i1 to i32
    %c0_i32_0 = arith.constant 0 : i32
    %2 = arith.cmpi ne, %1, %c0_i32_0 : i32
    scf.if %2 {
      %cst_13 = arith.constant 0.000000e+00 : f32
      %16 = vector.broadcast %cst_13 : f32 to vector<32x128xf32>
      %c0_14 = arith.constant 0 : index
      %c0_15 = arith.constant 0 : index
      %17 = vector.load %arg10[%c0_14, %c0_15] : memref<32x128xf32, #tpu.memory_space<vmem>>, vector<32x128xf32>
      tpu.vector_store %arg10[%c0_14, %c0_15], %16 {strides = array<i32>} : memref<32x128xf32, #tpu.memory_space<vmem>>, vector<32x128xf32>,
    } else {
    }
    %c0 = arith.constant 0 : index
    %c0_1 = arith.constant 0 : index
    %c0_2 = arith.constant 0 : index
    %3 = vector.load %arg4[%c0, %c0_1, %c0_2] : memref<1x32x256xbf16, #tpu.memory_space<vmem>>, vector<1x32x256xbf16>
    %4 = vector.shape_cast %3 : vector<1x32x256xbf16> to vector<32x256xbf16>
    %cst = arith.constant 0.000000e+00 : bf16
    %5 = vector.broadcast %cst : bf16 to vector<32x256xbf16>
    %6 = arith.maximumf %4, %5 : vector<32x256xbf16>
    %c0_3 = arith.constant 0 : index
    %c0_4 = arith.constant 0 : index
    %7 = vector.load %arg10[%c0_3, %c0_4] : memref<32x128xf32, #tpu.memory_space<vmem>>, vector<32x128xf32>
    %c0_5 = arith.constant 0 : index
    %c0_6 = arith.constant 0 : index
    %c0_7 = arith.constant 0 : index
    %8 = vector.load %arg5[%c0_5, %c0_6, %c0_7] : memref<1x256x128xbf16, #tpu.memory_space<vmem>>, vector<1x256x128xbf16>
    %9 = vector.shape_cast %8 : vector<1x256x128xbf16> to vector<256x128xbf16>
    %cst_8 = arith.constant dense<0.000000e+00> : vector<32x128xf32>
    %10 = tpu.matmul %6, %9, %cst_8 {dimension_numbers = #tpu.dot_dimension_numbers<[1], [0], [0], [1], [0, 0, 1, 1], [], []>} : vector<32x256xbf16>, vector<256x128xbf16>, vector<32x128xf32> -> vector<32x128xf32>
    %11 = arith.addf %7, %10 : vector<32x128xf32>
    %c0_9 = arith.constant 0 : index
    %c0_10 = arith.constant 0 : index
    %12 = vector.load %arg10[%c0_9, %c0_10] : memref<32x128xf32, #tpu.memory_space<vmem>>, vector<32x128xf32>
    tpu.vector_store %arg10[%c0_9, %c0_10], %11 {strides = array<i32>} : memref<32x128xf32, #tpu.memory_space<vmem>>, vector<32x128xf32>,
    %c0_i32_11 = arith.constant 0 : i32
    %13 = arith.cmpi eq, %arg3, %c0_i32_11 : i32
    %14 = arith.extui %13 : i1 to i32
    %c0_i32_12 = arith.constant 0 : i32
    %15 = arith.cmpi ne, %14, %c0_i32_12 : i32
    scf.if %15 {
      %c0_13 = arith.constant 0 : index
      %c0_14 = arith.constant 0 : index
      %16 = vector.load %arg10[%c0_13, %c0_14] : memref<32x128xf32, #tpu.memory_space<vmem>>, vector<32x128xf32>
      %c0_15 = arith.constant 0 : index
      %c0_16 = arith.constant 0 : index
      %17 = vector.load %arg6[%c0_15, %c0_16] : memref<1x128xf32, #tpu.memory_space<vmem>>, vector<1x128xf32>
      %18 = vector.broadcast %17 : vector<1x128xf32> to vector<32x128xf32>
      %19 = arith.addf %16, %18 : vector<32x128xf32>
      %20 = arith.truncf %19 : vector<32x128xf32> to vector<32x128xbf16>
      %c0_17 = arith.constant 0 : index
      %c0_18 = arith.constant 0 : index
      %c0_19 = arith.constant 0 : index
      %21 = vector.load %arg7[%c0_17, %c0_18, %c0_19] : memref<1x32x128xbf16, #tpu.memory_space<vmem>>, vector<1x32x128xbf16>
      %22 = vector.shape_cast %21 : vector<1x32x128xbf16> to vector<32x128xbf16>
      %23 = vector.shape_cast %20 : vector<32x128xbf16> to vector<1x32x128xbf16>
      tpu.vector_store %arg7[%c0_17, %c0_18, %c0_19], %23 {strides = array<i32>} : memref<1x32x128xbf16, #tpu.memory_space<vmem>>, vector<1x32x128xbf16>,
      %cst_20 = arith.constant dense<0.000000e+00> : vector<128xf32>
      %24 = vector.multi_reduction <add>, %19, %cst_20 [0] : vector<32x128xf32> to vector<128xf32>
      %25 = vector.shape_cast %24 : vector<128xf32> to vector<1x128xf32>
      %c0_21 = arith.constant 0 : index
      %c0_22 = arith.constant 0 : index
      %c0_23 = arith.constant 0 : index
      %c0_24 = arith.constant 0 : index
      %26 = vector.load %arg8[%c0_21, %c0_22, %c0_23, %c0_24] : memref<1x1x1x128xf32, #tpu.memory_space<vmem>>, vector<1x1x1x128xf32>
      %27 = vector.shape_cast %26 : vector<1x1x1x128xf32> to vector<1x128xf32>
      %28 = vector.shape_cast %25 : vector<1x128xf32> to vector<1x1x1x128xf32>
      tpu.vector_store %arg8[%c0_21, %c0_22, %c0_23, %c0_24], %28 {strides = array<i32>} : memref<1x1x1x128xf32, #tpu.memory_space<vmem>>, vector<1x1x1x128xf32>,
      %29 = arith.mulf %19, %19 : vector<32x128xf32>
      %cst_25 = arith.constant dense<0.000000e+00> : vector<128xf32>
      %30 = vector.multi_reduction <add>, %29, %cst_25 [0] : vector<32x128xf32> to vector<128xf32>
      %31 = vector.shape_cast %30 : vector<128xf32> to vector<1x128xf32>
      %c0_26 = arith.constant 0 : index
      %c0_27 = arith.constant 0 : index
      %c0_28 = arith.constant 0 : index
      %c0_29 = arith.constant 0 : index
      %32 = vector.load %arg9[%c0_26, %c0_27, %c0_28, %c0_29] : memref<1x1x1x128xf32, #tpu.memory_space<vmem>>, vector<1x1x1x128xf32>
      %33 = vector.shape_cast %32 : vector<1x1x1x128xf32> to vector<1x128xf32>
      %34 = vector.shape_cast %31 : vector<1x128xf32> to vector<1x1x1x128xf32>
      tpu.vector_store %arg9[%c0_26, %c0_27, %c0_28, %c0_29], %34 {strides = array<i32>} : memref<1x1x1x128xf32, #tpu.memory_space<vmem>>, vector<1x1x1x128xf32>,
    } else {
    }
    return
  }
  func.func @transform_0(%arg0: i32, %arg1: i32, %arg2: i32, %arg3: i32) -> (i32, i32, i32) {
    %c0_i32 = arith.constant 0 : i32
    return %arg0, %arg1, %arg3 : i32, i32, i32
  }
  func.func @transform_1(%arg0: i32, %arg1: i32, %arg2: i32, %arg3: i32) -> (i32, i32, i32) {
    %c0_i32 = arith.constant 0 : i32
    return %arg0, %arg3, %arg2 : i32, i32, i32
  }
  func.func @transform_2(%arg0: i32, %arg1: i32, %arg2: i32, %arg3: i32) -> (i32, i32) {
    %c0_i32 = arith.constant 0 : i32
    %c0_i32_0 = arith.constant 0 : i32
    return %c0_i32, %arg2 : i32, i32
  }
  func.func @transform_3(%arg0: i32, %arg1: i32, %arg2: i32, %arg3: i32) -> (i32, i32, i32) {
    %c0_i32 = arith.constant 0 : i32
    return %arg0, %arg1, %arg2 : i32, i32, i32
  }
  func.func @transform_4(%arg0: i32, %arg1: i32, %arg2: i32, %arg3: i32) -> (i32, i32, i32, i32) {
    %c0_i32 = arith.constant 0 : i32
    %c0_i32_0 = arith.constant 0 : i32
    return %arg0, %arg1, %c0_i32, %arg2 : i32, i32, i32, i32
  }
  func.func @transform_5(%arg0: i32, %arg1: i32, %arg2: i32, %arg3: i32) -> (i32, i32, i32, i32) {
    %c0_i32 = arith.constant 0 : i32
    %c0_i32_0 = arith.constant 0 : i32
    return %arg0, %arg1, %c0_i32, %arg2 : i32, i32, i32, i32
  }
}

module attributes {stable_mosaic.version = 11 : i64} {
  func.func @_bmm_stats_kernel(%arg0: i32, %arg1: i32, %arg2: i32, %arg3: i32, %arg4: memref<1x128x128xbf16, #tpu.memory_space<vmem>>, %arg5: memref<1x128x128xbf16, #tpu.memory_space<vmem>>, %arg6: memref<1x128xf32, #tpu.memory_space<vmem>>, %arg7: memref<1x128x128xbf16, #tpu.memory_space<vmem>>, %arg8: memref<1x1x1x128xf32, #tpu.memory_space<vmem>>, %arg9: memref<1x1x1x128xf32, #tpu.memory_space<vmem>>, %arg10: memref<128x128xf32, #tpu.memory_space<vmem>>) attributes {dimension_semantics = [#tpu.dimension_semantics<parallel>, #tpu.dimension_semantics<parallel>, #tpu.dimension_semantics<parallel>, #tpu.dimension_semantics<arbitrary>], iteration_bounds = array<i64: 4, 1, 1, 1>, scalar_prefetch = 0 : i64, scratch_operands = 1 : i64, tpu.core_type = #tpu.core_type<tc>, window_params = [{transform_indices = @transform_0, window_bounds = array<i64: 1, 128, 128>}, {transform_indices = @transform_1, window_bounds = array<i64: 1, 128, 128>}, {transform_indices = @transform_2, window_bounds = array<i64: 1, 128>}, {transform_indices = @transform_3, window_bounds = array<i64: 1, 128, 128>}, {transform_indices = @transform_4, window_bounds = array<i64: 1, 1, 1, 128>}, {transform_indices = @transform_5, window_bounds = array<i64: 1, 1, 1, 128>}]} {
    %c0_i32 = arith.constant 0 : i32
    %0 = arith.cmpi eq, %arg3, %c0_i32 : i32
    %1 = arith.extui %0 : i1 to i32
    %c0_i32_0 = arith.constant 0 : i32
    %2 = arith.cmpi ne, %1, %c0_i32_0 : i32
    scf.if %2 {
      %cst_13 = arith.constant 0.000000e+00 : f32
      %16 = vector.broadcast %cst_13 : f32 to vector<128x128xf32>
      %c0_14 = arith.constant 0 : index
      %c0_15 = arith.constant 0 : index
      %17 = vector.load %arg10[%c0_14, %c0_15] : memref<128x128xf32, #tpu.memory_space<vmem>>, vector<128x128xf32>
      tpu.vector_store %arg10[%c0_14, %c0_15], %16 {strides = array<i32>} : memref<128x128xf32, #tpu.memory_space<vmem>>, vector<128x128xf32>,
    } else {
    }
    %c0 = arith.constant 0 : index
    %c0_1 = arith.constant 0 : index
    %c0_2 = arith.constant 0 : index
    %3 = vector.load %arg4[%c0, %c0_1, %c0_2] : memref<1x128x128xbf16, #tpu.memory_space<vmem>>, vector<1x128x128xbf16>
    %4 = vector.shape_cast %3 : vector<1x128x128xbf16> to vector<128x128xbf16>
    %cst = arith.constant 0.000000e+00 : bf16
    %5 = vector.broadcast %cst : bf16 to vector<128x128xbf16>
    %6 = arith.maximumf %4, %5 : vector<128x128xbf16>
    %c0_3 = arith.constant 0 : index
    %c0_4 = arith.constant 0 : index
    %7 = vector.load %arg10[%c0_3, %c0_4] : memref<128x128xf32, #tpu.memory_space<vmem>>, vector<128x128xf32>
    %c0_5 = arith.constant 0 : index
    %c0_6 = arith.constant 0 : index
    %c0_7 = arith.constant 0 : index
    %8 = vector.load %arg5[%c0_5, %c0_6, %c0_7] : memref<1x128x128xbf16, #tpu.memory_space<vmem>>, vector<1x128x128xbf16>
    %9 = vector.shape_cast %8 : vector<1x128x128xbf16> to vector<128x128xbf16>
    %cst_8 = arith.constant dense<0.000000e+00> : vector<128x128xf32>
    %10 = tpu.matmul %6, %9, %cst_8 {dimension_numbers = #tpu.dot_dimension_numbers<[1], [0], [0], [1], [0, 0, 1, 1], [], []>} : vector<128x128xbf16>, vector<128x128xbf16>, vector<128x128xf32> -> vector<128x128xf32>
    %11 = arith.addf %7, %10 : vector<128x128xf32>
    %c0_9 = arith.constant 0 : index
    %c0_10 = arith.constant 0 : index
    %12 = vector.load %arg10[%c0_9, %c0_10] : memref<128x128xf32, #tpu.memory_space<vmem>>, vector<128x128xf32>
    tpu.vector_store %arg10[%c0_9, %c0_10], %11 {strides = array<i32>} : memref<128x128xf32, #tpu.memory_space<vmem>>, vector<128x128xf32>,
    %c0_i32_11 = arith.constant 0 : i32
    %13 = arith.cmpi eq, %arg3, %c0_i32_11 : i32
    %14 = arith.extui %13 : i1 to i32
    %c0_i32_12 = arith.constant 0 : i32
    %15 = arith.cmpi ne, %14, %c0_i32_12 : i32
    scf.if %15 {
      %c0_13 = arith.constant 0 : index
      %c0_14 = arith.constant 0 : index
      %16 = vector.load %arg10[%c0_13, %c0_14] : memref<128x128xf32, #tpu.memory_space<vmem>>, vector<128x128xf32>
      %c0_15 = arith.constant 0 : index
      %c0_16 = arith.constant 0 : index
      %17 = vector.load %arg6[%c0_15, %c0_16] : memref<1x128xf32, #tpu.memory_space<vmem>>, vector<1x128xf32>
      %18 = vector.broadcast %17 : vector<1x128xf32> to vector<128x128xf32>
      %19 = arith.addf %16, %18 : vector<128x128xf32>
      %20 = arith.truncf %19 : vector<128x128xf32> to vector<128x128xbf16>
      %c0_17 = arith.constant 0 : index
      %c0_18 = arith.constant 0 : index
      %c0_19 = arith.constant 0 : index
      %21 = vector.load %arg7[%c0_17, %c0_18, %c0_19] : memref<1x128x128xbf16, #tpu.memory_space<vmem>>, vector<1x128x128xbf16>
      %22 = vector.shape_cast %21 : vector<1x128x128xbf16> to vector<128x128xbf16>
      %23 = vector.shape_cast %20 : vector<128x128xbf16> to vector<1x128x128xbf16>
      tpu.vector_store %arg7[%c0_17, %c0_18, %c0_19], %23 {strides = array<i32>} : memref<1x128x128xbf16, #tpu.memory_space<vmem>>, vector<1x128x128xbf16>,
      %cst_20 = arith.constant dense<0.000000e+00> : vector<128xf32>
      %24 = vector.multi_reduction <add>, %19, %cst_20 [0] : vector<128x128xf32> to vector<128xf32>
      %25 = vector.shape_cast %24 : vector<128xf32> to vector<1x128xf32>
      %c0_21 = arith.constant 0 : index
      %c0_22 = arith.constant 0 : index
      %c0_23 = arith.constant 0 : index
      %c0_24 = arith.constant 0 : index
      %26 = vector.load %arg8[%c0_21, %c0_22, %c0_23, %c0_24] : memref<1x1x1x128xf32, #tpu.memory_space<vmem>>, vector<1x1x1x128xf32>
      %27 = vector.shape_cast %26 : vector<1x1x1x128xf32> to vector<1x128xf32>
      %28 = vector.shape_cast %25 : vector<1x128xf32> to vector<1x1x1x128xf32>
      tpu.vector_store %arg8[%c0_21, %c0_22, %c0_23, %c0_24], %28 {strides = array<i32>} : memref<1x1x1x128xf32, #tpu.memory_space<vmem>>, vector<1x1x1x128xf32>,
      %29 = arith.mulf %19, %19 : vector<128x128xf32>
      %cst_25 = arith.constant dense<0.000000e+00> : vector<128xf32>
      %30 = vector.multi_reduction <add>, %29, %cst_25 [0] : vector<128x128xf32> to vector<128xf32>
      %31 = vector.shape_cast %30 : vector<128xf32> to vector<1x128xf32>
      %c0_26 = arith.constant 0 : index
      %c0_27 = arith.constant 0 : index
      %c0_28 = arith.constant 0 : index
      %c0_29 = arith.constant 0 : index
      %32 = vector.load %arg9[%c0_26, %c0_27, %c0_28, %c0_29] : memref<1x1x1x128xf32, #tpu.memory_space<vmem>>, vector<1x1x1x128xf32>
      %33 = vector.shape_cast %32 : vector<1x1x1x128xf32> to vector<1x128xf32>
      %34 = vector.shape_cast %31 : vector<1x128xf32> to vector<1x1x1x128xf32>
      tpu.vector_store %arg9[%c0_26, %c0_27, %c0_28, %c0_29], %34 {strides = array<i32>} : memref<1x1x1x128xf32, #tpu.memory_space<vmem>>, vector<1x1x1x128xf32>,
    } else {
    }
    return
  }
  func.func @transform_0(%arg0: i32, %arg1: i32, %arg2: i32, %arg3: i32) -> (i32, i32, i32) {
    %c0_i32 = arith.constant 0 : i32
    return %arg0, %arg1, %arg3 : i32, i32, i32
  }
  func.func @transform_1(%arg0: i32, %arg1: i32, %arg2: i32, %arg3: i32) -> (i32, i32, i32) {
    %c0_i32 = arith.constant 0 : i32
    return %arg0, %arg3, %arg2 : i32, i32, i32
  }
  func.func @transform_2(%arg0: i32, %arg1: i32, %arg2: i32, %arg3: i32) -> (i32, i32) {
    %c0_i32 = arith.constant 0 : i32
    %c0_i32_0 = arith.constant 0 : i32
    return %c0_i32, %arg2 : i32, i32
  }
  func.func @transform_3(%arg0: i32, %arg1: i32, %arg2: i32, %arg3: i32) -> (i32, i32, i32) {
    %c0_i32 = arith.constant 0 : i32
    return %arg0, %arg1, %arg2 : i32, i32, i32
  }
  func.func @transform_4(%arg0: i32, %arg1: i32, %arg2: i32, %arg3: i32) -> (i32, i32, i32, i32) {
    %c0_i32 = arith.constant 0 : i32
    %c0_i32_0 = arith.constant 0 : i32
    return %arg0, %arg1, %c0_i32, %arg2 : i32, i32, i32, i32
  }
  func.func @transform_5(%arg0: i32, %arg1: i32, %arg2: i32, %arg3: i32) -> (i32, i32, i32, i32) {
    %c0_i32 = arith.constant 0 : i32
    %c0_i32_0 = arith.constant 0 : i32
    return %arg0, %arg1, %c0_i32, %arg2 : i32, i32, i32, i32
  }
}

module attributes {stable_mosaic.version = 11 : i64} {
  func.func @_bn_apply_kernel(%arg0: i32, %arg1: memref<32x128xbf16, #tpu.memory_space<vmem>>, %arg2: memref<1x128xf32, #tpu.memory_space<vmem>>, %arg3: memref<1x128xf32, #tpu.memory_space<vmem>>, %arg4: memref<32x128xbf16, #tpu.memory_space<vmem>>) attributes {dimension_semantics = [#tpu.dimension_semantics<parallel>], iteration_bounds = array<i64: 1>, scalar_prefetch = 0 : i64, scratch_operands = 0 : i64, tpu.core_type = #tpu.core_type<tc>, window_params = [{transform_indices = @transform_0, window_bounds = array<i64: 32, 128>}, {pipeline_mode = #tpu.pipeline_mode<synchronous>, transform_indices = @transform_1, window_bounds = array<i64: 1, 128>}, {pipeline_mode = #tpu.pipeline_mode<synchronous>, transform_indices = @transform_2, window_bounds = array<i64: 1, 128>}, {transform_indices = @transform_3, window_bounds = array<i64: 32, 128>}]} {
    %c0 = arith.constant 0 : index
    %c0_0 = arith.constant 0 : index
    %0 = vector.load %arg1[%c0, %c0_0] : memref<32x128xbf16, #tpu.memory_space<vmem>>, vector<32x128xbf16>
    %1 = arith.extf %0 : vector<32x128xbf16> to vector<32x128xf32>
    %c0_1 = arith.constant 0 : index
    %c0_2 = arith.constant 0 : index
    %2 = vector.load %arg2[%c0_1, %c0_2] : memref<1x128xf32, #tpu.memory_space<vmem>>, vector<1x128xf32>
    %3 = vector.broadcast %2 : vector<1x128xf32> to vector<32x128xf32>
    %4 = arith.mulf %1, %3 : vector<32x128xf32>
    %c0_3 = arith.constant 0 : index
    %c0_4 = arith.constant 0 : index
    %5 = vector.load %arg3[%c0_3, %c0_4] : memref<1x128xf32, #tpu.memory_space<vmem>>, vector<1x128xf32>
    %6 = vector.broadcast %5 : vector<1x128xf32> to vector<32x128xf32>
    %7 = arith.addf %4, %6 : vector<32x128xf32>
    %8 = arith.truncf %7 : vector<32x128xf32> to vector<32x128xbf16>
    %c0_5 = arith.constant 0 : index
    %c0_6 = arith.constant 0 : index
    %9 = vector.load %arg4[%c0_5, %c0_6] : memref<32x128xbf16, #tpu.memory_space<vmem>>, vector<32x128xbf16>
    tpu.vector_store %arg4[%c0_5, %c0_6], %8 {strides = array<i32>} : memref<32x128xbf16, #tpu.memory_space<vmem>>, vector<32x128xbf16>,
    return
  }
  func.func @transform_0(%arg0: i32) -> (i32, i32) {
    %c0_i32 = arith.constant 0 : i32
    %c0_i32_0 = arith.constant 0 : i32
    return %arg0, %c0_i32 : i32, i32
  }
  func.func @transform_1(%arg0: i32) -> (i32, i32) {
    %c0_i32 = arith.constant 0 : i32
    %c0_i32_0 = arith.constant 0 : i32
    %c0_i32_1 = arith.constant 0 : i32
    return %c0_i32, %c0_i32_0 : i32, i32
  }
  func.func @transform_2(%arg0: i32) -> (i32, i32) {
    %c0_i32 = arith.constant 0 : i32
    %c0_i32_0 = arith.constant 0 : i32
    %c0_i32_1 = arith.constant 0 : i32
    return %c0_i32, %c0_i32_0 : i32, i32
  }
  func.func @transform_3(%arg0: i32) -> (i32, i32) {
    %c0_i32 = arith.constant 0 : i32
    %c0_i32_0 = arith.constant 0 : i32
    return %arg0, %c0_i32 : i32, i32
  }
}

module attributes {stable_mosaic.version = 11 : i64} {
  func.func @_bmm_kernel(%arg0: i32, %arg1: i32, %arg2: i32, %arg3: i32, %arg4: memref<1x512x64xbf16, #tpu.memory_space<vmem>>, %arg5: memref<1x64x128xbf16, #tpu.memory_space<vmem>>, %arg6: memref<1x128xf32, #tpu.memory_space<vmem>>, %arg7: memref<1x512x128xf32, #tpu.memory_space<vmem>>, %arg8: memref<512x128xf32, #tpu.memory_space<vmem>>) attributes {dimension_semantics = [#tpu.dimension_semantics<parallel>, #tpu.dimension_semantics<parallel>, #tpu.dimension_semantics<parallel>, #tpu.dimension_semantics<arbitrary>], iteration_bounds = array<i64: 4, 1, 1, 1>, scalar_prefetch = 0 : i64, scratch_operands = 1 : i64, tpu.core_type = #tpu.core_type<tc>, window_params = [{transform_indices = @transform_0, window_bounds = array<i64: 1, 512, 64>}, {transform_indices = @transform_1, window_bounds = array<i64: 1, 64, 128>}, {transform_indices = @transform_2, window_bounds = array<i64: 1, 128>}, {transform_indices = @transform_3, window_bounds = array<i64: 1, 512, 128>}]} {
    %c0_i32 = arith.constant 0 : i32
    %0 = arith.cmpi eq, %arg3, %c0_i32 : i32
    %1 = arith.extui %0 : i1 to i32
    %c0_i32_0 = arith.constant 0 : i32
    %2 = arith.cmpi ne, %1, %c0_i32_0 : i32
    scf.if %2 {
      %cst_13 = arith.constant 0.000000e+00 : f32
      %16 = vector.broadcast %cst_13 : f32 to vector<512x128xf32>
      %c0_14 = arith.constant 0 : index
      %c0_15 = arith.constant 0 : index
      %17 = vector.load %arg8[%c0_14, %c0_15] : memref<512x128xf32, #tpu.memory_space<vmem>>, vector<512x128xf32>
      tpu.vector_store %arg8[%c0_14, %c0_15], %16 {strides = array<i32>} : memref<512x128xf32, #tpu.memory_space<vmem>>, vector<512x128xf32>,
    } else {
    }
    %c0 = arith.constant 0 : index
    %c0_1 = arith.constant 0 : index
    %c0_2 = arith.constant 0 : index
    %3 = vector.load %arg4[%c0, %c0_1, %c0_2] : memref<1x512x64xbf16, #tpu.memory_space<vmem>>, vector<1x512x64xbf16>
    %4 = vector.shape_cast %3 : vector<1x512x64xbf16> to vector<512x64xbf16>
    %cst = arith.constant 0.000000e+00 : bf16
    %5 = vector.broadcast %cst : bf16 to vector<512x64xbf16>
    %6 = arith.maximumf %4, %5 : vector<512x64xbf16>
    %c0_3 = arith.constant 0 : index
    %c0_4 = arith.constant 0 : index
    %7 = vector.load %arg8[%c0_3, %c0_4] : memref<512x128xf32, #tpu.memory_space<vmem>>, vector<512x128xf32>
    %c0_5 = arith.constant 0 : index
    %c0_6 = arith.constant 0 : index
    %c0_7 = arith.constant 0 : index
    %8 = vector.load %arg5[%c0_5, %c0_6, %c0_7] : memref<1x64x128xbf16, #tpu.memory_space<vmem>>, vector<1x64x128xbf16>
    %9 = vector.shape_cast %8 : vector<1x64x128xbf16> to vector<64x128xbf16>
    %cst_8 = arith.constant dense<0.000000e+00> : vector<512x128xf32>
    %10 = tpu.matmul %6, %9, %cst_8 {dimension_numbers = #tpu.dot_dimension_numbers<[1], [0], [0], [1], [0, 0, 1, 1], [], []>} : vector<512x64xbf16>, vector<64x128xbf16>, vector<512x128xf32> -> vector<512x128xf32>
    %11 = arith.addf %7, %10 : vector<512x128xf32>
    %c0_9 = arith.constant 0 : index
    %c0_10 = arith.constant 0 : index
    %12 = vector.load %arg8[%c0_9, %c0_10] : memref<512x128xf32, #tpu.memory_space<vmem>>, vector<512x128xf32>
    tpu.vector_store %arg8[%c0_9, %c0_10], %11 {strides = array<i32>} : memref<512x128xf32, #tpu.memory_space<vmem>>, vector<512x128xf32>,
    %c0_i32_11 = arith.constant 0 : i32
    %13 = arith.cmpi eq, %arg3, %c0_i32_11 : i32
    %14 = arith.extui %13 : i1 to i32
    %c0_i32_12 = arith.constant 0 : i32
    %15 = arith.cmpi ne, %14, %c0_i32_12 : i32
    scf.if %15 {
      %c0_13 = arith.constant 0 : index
      %c0_14 = arith.constant 0 : index
      %16 = vector.load %arg8[%c0_13, %c0_14] : memref<512x128xf32, #tpu.memory_space<vmem>>, vector<512x128xf32>
      %c0_15 = arith.constant 0 : index
      %c0_16 = arith.constant 0 : index
      %17 = vector.load %arg6[%c0_15, %c0_16] : memref<1x128xf32, #tpu.memory_space<vmem>>, vector<1x128xf32>
      %18 = vector.broadcast %17 : vector<1x128xf32> to vector<512x128xf32>
      %19 = arith.addf %16, %18 : vector<512x128xf32>
      %20 = math.tanh %19 : vector<512x128xf32>
      %c0_17 = arith.constant 0 : index
      %c0_18 = arith.constant 0 : index
      %c0_19 = arith.constant 0 : index
      %21 = vector.load %arg7[%c0_17, %c0_18, %c0_19] : memref<1x512x128xf32, #tpu.memory_space<vmem>>, vector<1x512x128xf32>
      %22 = vector.shape_cast %21 : vector<1x512x128xf32> to vector<512x128xf32>
      %23 = vector.shape_cast %20 : vector<512x128xf32> to vector<1x512x128xf32>
      tpu.vector_store %arg7[%c0_17, %c0_18, %c0_19], %23 {strides = array<i32>} : memref<1x512x128xf32, #tpu.memory_space<vmem>>, vector<1x512x128xf32>,
    } else {
    }
    return
  }
  func.func @transform_0(%arg0: i32, %arg1: i32, %arg2: i32, %arg3: i32) -> (i32, i32, i32) {
    %c0_i32 = arith.constant 0 : i32
    return %arg0, %arg1, %arg3 : i32, i32, i32
  }
  func.func @transform_1(%arg0: i32, %arg1: i32, %arg2: i32, %arg3: i32) -> (i32, i32, i32) {
    %c0_i32 = arith.constant 0 : i32
    return %arg0, %arg3, %arg2 : i32, i32, i32
  }
  func.func @transform_2(%arg0: i32, %arg1: i32, %arg2: i32, %arg3: i32) -> (i32, i32) {
    %c0_i32 = arith.constant 0 : i32
    %c0_i32_0 = arith.constant 0 : i32
    return %c0_i32, %arg2 : i32, i32
  }
  func.func @transform_3(%arg0: i32, %arg1: i32, %arg2: i32, %arg3: i32) -> (i32, i32, i32) {
    %c0_i32 = arith.constant 0 : i32
    return %arg0, %arg1, %arg2 : i32, i32, i32
  }
}

</mosaic_0001>

<bundles_post_ra>
// kernel: _lambda_.17
= control target key start
LH: loop header
LB: loop body
LE: loop exit
PB: predicated region body
PF: predicated region fallthrough
CT: control target
= control target key end

     0   :  { %s1253_s12 = smov 0   ;;  %s1255_s13 = smov 0   ;;  %s1367_s0 = inlined_call_operand.vmem [shape: bf16[1,512,16], index: 0, kind: input, shape index: {}]   ;;  %s1368_s1 = inlined_call_operand.vmem [shape: bf16[1,16,128], index: 1, kind: input, shape index: {}]   ;;  %s1369_s2 = inlined_call_operand.vmem [shape: f32[1,128], index: 2, kind: input, shape index: {}]   ;;  %s1370_s3 = inlined_call_operand.vmem [shape: bf16[1,512,128], index: 3, kind: output, shape index: {}]  }
   0x1   :  { %s1257_s14 = smov 0  }
   0x2 LB: > { %s35_s15 = sadd.s32 1, %s1227_s13  ;;  %p978_p0 = scmp.ge.s32.totalorder %s1231_s14, 1  ;;  %s1231_s14 = sphi %s1257_s14, %s13_s14   ;;  %s1227_s13 = sphi %s1255_s13, %s1372_s13   ;;  %s1223_s12 = sphi %s1253_s12, %s1371_s12  }
   0x3   : > { %p37_p1 = scmp.ge.s32.totalorder %s35_s15, 2  ;;  %p209_p2 = scmp.lt.s32.totalorder %s1231_s14, 3 }
   0x5   : > { %s1374_s15 = smov (%p37_p1, %s35_s15), 0  ;;  %p210_p3 = pnand %p978_p0, %p209_p2 }
   0x6   : > { %s979_s18 = sshll.u32 (!%p210_p3), %s1223_s12, 5 }
   0x7   : > { %213 = sbr.rel (%p210_p3) target bundleno = 212 (0xd4), region = 32  ;;  %p265_p4 = scmp.lt.s32.totalorder (!%p210_p3), %s979_s18, 63 }
   0xc   : > { %v1085_v0 = vld [vmem:[%s1368_s1] sm:$0xff]  ;;  %s1376_s18 = smov (!%p265_p4, %s979_s18), 63  ;;  %vm493_vm0 = vcmask 130048  }
   0xd   : > { %549 = vmatpush.bf16.msra.mxu0 %v1085_v0  ;;  %1181 = vmatpush.bf16.msra.mxu1 %v1085_v0  ;;  %s980_s19 = sshll.u32 %s1376_s18, 2  ;;  %v1301_v19 = vld [vmem:[%s1369_s2] ss:$0 sm:$0xff] }
   0xe   : > { %1182 = vmatpush.bf16.msra.mxu2 %v1085_v0  ;;  %1183 = vmatpush.bf16.msra.mxu3 %v1085_v0  ;;  %s273_s22 = scalar_lea.vmem %s1367_s0, %s980_s19  ;;  %s1312_s27 = scalar_lea.vmem %s1370_s3, %s980_s19 }
   0xf   : > { %v1069_v1 = vld [vmem:[%s273_s22] sm:$0xff]  ;;  %v1070_v5 = vld [vmem:[%s273_s22 + $0x8] sm:$0xff]  ;;  %v1071_v9 = vld [vmem:[%s273_s22 + $0x10] sm:$0xff] }
  0x10   : > { %v1073_v2 = vld [vmem:[%s273_s22 + $0x20] sm:$0xff]  ;;  %1051 = vmatmul.msk.bf16.vlgmr.msra.gmra.mxu0 %vm493_vm0, %v1069_v1  ;;  %v1074_v6 = vld [vmem:[%s273_s22 + $0x28] sm:$0xff]  ;;  %v1075_v10 = vld [vmem:[%s273_s22 + $0x30] sm:$0xff] }
  0x11   : > { %v1077_v3 = vld [vmem:[%s273_s22 + $0x40] sm:$0xff]  ;;  %1055 = vmatmul.msk.bf16.vlgmr.msra.gmra.mxu1 %vm493_vm0, %v1073_v2  ;;  %v1078_v7 = vld [vmem:[%s273_s22 + $0x48] sm:$0xff]  ;;  %v1079_v11 = vld [vmem:[%s273_s22 + $0x50] sm:$0xff] }
  0x12   : > { %v1081_v4 = vld [vmem:[%s273_s22 + $0x60] sm:$0xff]  ;;  %1059 = vmatmul.msk.bf16.vlgmr.msra.gmra.mxu2 %vm493_vm0, %v1077_v3  ;;  %v1082_v8 = vld [vmem:[%s273_s22 + $0x68] sm:$0xff]  ;;  %v1083_v12 = vld [vmem:[%s273_s22 + $0x70] sm:$0xff] }
  0x13   : > { %1063 = vmatmul.msk.bf16.vlgmr.msra.gmra.mxu3 %vm493_vm0, %v1081_v4  ;;  %v1072_v13 = vld [vmem:[%s273_s22 + $0x18] sm:$0xff] }
  0x14   : > { %v1076_v14 = vld [vmem:[%s273_s22 + $0x38] sm:$0xff] }
  0x15   : > { %v1080_v15 = vld [vmem:[%s273_s22 + $0x58] sm:$0xff] }
  0x16   : > { %v1084_v16 = vld [vmem:[%s273_s22 + $0x78] sm:$0xff] }
  0x20   : > { %1052 = vmatmul.msk.bf16.gmra.mxu0 %vm493_vm0, %v1070_v5 }
  0x21   : > { %1056 = vmatmul.msk.bf16.gmra.mxu1 %vm493_vm0, %v1074_v6 }
  0x22   : > { %1060 = vmatmul.msk.bf16.gmra.mxu2 %vm493_vm0, %v1078_v7 }
  0x23   : > { %1064 = vmatmul.msk.bf16.gmra.mxu3 %vm493_vm0, %v1082_v8 }
  0x30   : > { %1053 = vmatmul.msk.bf16.gmra.mxu0 %vm493_vm0, %v1071_v9 }
  0x31   : > { %1057 = vmatmul.msk.bf16.gmra.mxu1 %vm493_vm0, %v1075_v10 }
  0x32   : > { %1061 = vmatmul.msk.bf16.gmra.mxu2 %vm493_vm0, %v1079_v11 }
  0x33   : > { %1065 = vmatmul.msk.bf16.gmra.mxu3 %vm493_vm0, %v1083_v12 }
  0x40   : > { %1054 = vmatmul.msk.bf16.gmra.mxu0 %vm493_vm0, %v1072_v13 }
  0x41   : > { %1058 = vmatmul.msk.bf16.gmra.mxu1 %vm493_vm0, %v1076_v14 }
  0x42   : > { %1062 = vmatmul.msk.bf16.gmra.mxu2 %vm493_vm0, %v1080_v15 }
  0x43   : > { %1066 = vmatmul.msk.bf16.gmra.mxu3 %vm493_vm0, %v1084_v16 }
  0x8d   : > { %v551_v17 = vpop.f32.mrf.mxu0 }
  0x8e   : > { %v571_v18 = vpop.f32.mrf.mxu1  ;;  %v734_v24 = vadd.f32 %v1301_v19, %v551_v17 }
  0x8f   : > { %v742_v25 = vadd.f32 %v1301_v19, %v571_v18 }
  0x95   : > { %v591_v20 = vpop.f32.mrf.mxu2  ;;  %v553_v22 = vpop.f32.mrf.mxu0 }
  0x96   : > { %v611_v21 = vpop.f32.mrf.mxu3  ;;  %v573_v23 = vpop.f32.mrf.mxu1  ;;  %v735_v26 = vadd.f32 %v1301_v19, %v553_v22  ;;  %v750_v32 = vadd.f32 %v1301_v19, %v591_v20 }
  0x97   : > { %v743_v27 = vadd.f32 %v1301_v19, %v573_v23  ;;  %v758_v33 = vadd.f32 %v1301_v19, %v611_v21 }
  0x98   : > { %v1089_v28 = vpack.c.bf16 %v735_v26, %v734_v24 }
  0x99   : > { %v1109_v29 = vpack.c.bf16 %v743_v27, %v742_v25 }
  0x9a   : > { %1090 = vst [vmem:[%s1312_s27] sm:$0xff] %v1089_v28  }
  0x9b   : > { %1169 = vst [vmem:[%s1312_s27 + $0x20] sm:$0xff] %v1109_v29  }
  0x9d   : > { %v593_v30 = vpop.f32.mrf.mxu2  ;;  %v556_v36 = vpop.f32.mrf.mxu0 }
  0x9e   : > { %v613_v31 = vpop.f32.mrf.mxu3  ;;  %v751_v34 = vadd.f32 %v1301_v19, %v593_v30  ;;  %v576_v37 = vpop.f32.mrf.mxu1  ;;  %v736_v44 = vadd.f32 %v1301_v19, %v556_v36 }
  0x9f   : > { %v759_v35 = vadd.f32 %v1301_v19, %v613_v31  ;;  %v744_v45 = vadd.f32 %v1301_v19, %v576_v37 }
  0xa0   : > { %v1129_v38 = vpack.c.bf16 %v751_v34, %v750_v32 }
  0xa1   : > { %v1149_v39 = vpack.c.bf16 %v759_v35, %v758_v33 }
  0xa2   : > { %1173 = vst [vmem:[%s1312_s27 + $0x40] sm:$0xff] %v1129_v38  }
  0xa3   : > { %1177 = vst [vmem:[%s1312_s27 + $0x60] sm:$0xff] %v1149_v39  }
  0xa5   : > { %v596_v40 = vpop.f32.mrf.mxu2  ;;  %v558_v42 = vpop.f32.mrf.mxu0 }
  0xa6   : > { %v616_v41 = vpop.f32.mrf.mxu3  ;;  %v578_v43 = vpop.f32.mrf.mxu1  ;;  %v737_v46 = vadd.f32 %v1301_v19, %v558_v42  ;;  %v752_v52 = vadd.f32 %v1301_v19, %v596_v40 }
  0xa7   : > { %v745_v47 = vadd.f32 %v1301_v19, %v578_v43  ;;  %v760_v53 = vadd.f32 %v1301_v19, %v616_v41 }
  0xa8   : > { %v1094_v48 = vpack.c.bf16 %v737_v46, %v736_v44 }
  0xa9   : > { %v1114_v49 = vpack.c.bf16 %v745_v47, %v744_v45 }
  0xaa   : > { %1166 = vst [vmem:[%s1312_s27 + $0x8] sm:$0xff] %v1094_v48  }
  0xab   : > { %1170 = vst [vmem:[%s1312_s27 + $0x28] sm:$0xff] %v1114_v49  }
  0xad   : > { %v598_v50 = vpop.f32.mrf.mxu2  ;;  %v561_v56 = vpop.f32.mrf.mxu0 }
  0xae   : > { %v618_v51 = vpop.f32.mrf.mxu3  ;;  %v753_v54 = vadd.f32 %v1301_v19, %v598_v50  ;;  %v581_v57 = vpop.f32.mrf.mxu1  ;;  %v738_v0 = vadd.f32 %v1301_v19, %v561_v56 }
  0xaf   : > { %v761_v55 = vadd.f32 %v1301_v19, %v618_v51  ;;  %v746_v1 = vadd.f32 %v1301_v19, %v581_v57 }
  0xb0   : > { %v1134_v58 = vpack.c.bf16 %v753_v54, %v752_v52 }
  0xb1   : > { %v1154_v59 = vpack.c.bf16 %v761_v55, %v760_v53 }
  0xb2   : > { %1174 = vst [vmem:[%s1312_s27 + $0x48] sm:$0xff] %v1134_v58  }
  0xb3   : > { %1178 = vst [vmem:[%s1312_s27 + $0x68] sm:$0xff] %v1154_v59  }
  0xb5   : > { %v601_v60 = vpop.f32.mrf.mxu2  ;;  %v563_v62 = vpop.f32.mrf.mxu0 }
  0xb6   : > { %v621_v61 = vpop.f32.mrf.mxu3  ;;  %v583_v63 = vpop.f32.mrf.mxu1  ;;  %v739_v2 = vadd.f32 %v1301_v19, %v563_v62  ;;  %v754_v8 = vadd.f32 %v1301_v19, %v601_v60 }
  0xb7   : > { %v747_v3 = vadd.f32 %v1301_v19, %v583_v63  ;;  %v762_v9 = vadd.f32 %v1301_v19, %v621_v61 }
  0xb8   : > { %v1099_v4 = vpack.c.bf16 %v739_v2, %v738_v0 }
  0xb9   : > { %v1119_v5 = vpack.c.bf16 %v747_v3, %v746_v1 }
  0xba   : > { %1167 = vst [vmem:[%s1312_s27 + $0x10] sm:$0xff] %v1099_v4  }
  0xbb   : > { %1171 = vst [vmem:[%s1312_s27 + $0x30] sm:$0xff] %v1119_v5  }
  0xbd   : > { %v603_v6 = vpop.f32.mrf.mxu2  ;;  %v566_v12 = vpop.f32.mrf.mxu0 }
  0xbe   : > { %v623_v7 = vpop.f32.mrf.mxu3  ;;  %v755_v10 = vadd.f32 %v1301_v19, %v603_v6  ;;  %v586_v13 = vpop.f32.mrf.mxu1  ;;  %v740_v21 = vadd.f32 %v1301_v19, %v566_v12 }
  0xbf   : > { %v763_v11 = vadd.f32 %v1301_v19, %v623_v7  ;;  %v748_v22 = vadd.f32 %v1301_v19, %v586_v13 }
  0xc0   : > { %v1139_v14 = vpack.c.bf16 %v755_v10, %v754_v8 }
  0xc1   : > { %v1159_v15 = vpack.c.bf16 %v763_v11, %v762_v9 }
  0xc2   : > { %1175 = vst [vmem:[%s1312_s27 + $0x50] sm:$0xff] %v1139_v14  }
  0xc3   : > { %1179 = vst [vmem:[%s1312_s27 + $0x70] sm:$0xff] %v1159_v15  }
  0xc5   : > { %v606_v16 = vpop.f32.mrf.mxu2  ;;  %v568_v18 = vpop.f32.mrf.mxu0 }
  0xc6   : > { %v626_v17 = vpop.f32.mrf.mxu3  ;;  %v588_v20 = vpop.f32.mrf.mxu1  ;;  %v741_v23 = vadd.f32 %v1301_v19, %v568_v18  ;;  %v756_v29 = vadd.f32 %v1301_v19, %v606_v16 }
  0xc7   : > { %v749_v24 = vadd.f32 %v1301_v19, %v588_v20  ;;  %v764_v30 = vadd.f32 %v1301_v19, %v626_v17 }
  0xc8   : > { %v1104_v25 = vpack.c.bf16 %v741_v23, %v740_v21 }
  0xc9   : > { %v1124_v26 = vpack.c.bf16 %v749_v24, %v748_v22 }
  0xca   : > { %1168 = vst [vmem:[%s1312_s27 + $0x18] sm:$0xff] %v1104_v25  }
  0xcb   : > { %1172 = vst [vmem:[%s1312_s27 + $0x38] sm:$0xff] %v1124_v26  }
  0xcd   : > { %v608_v27 = vpop.f32.mrf.mxu2 }
  0xce   : > { %v628_v28 = vpop.f32.mrf.mxu3  ;;  %v757_v31 = vadd.f32 %v1301_v19, %v608_v27 }
  0xcf   : > { %v765_v32 = vadd.f32 %v1301_v19, %v628_v28 }
  0xd0   : > { %v1144_v33 = vpack.c.bf16 %v757_v31, %v756_v29 }
  0xd1   : > { %v1164_v34 = vpack.c.bf16 %v765_v32, %v764_v30 }
  0xd2   : > { %1176 = vst [vmem:[%s1312_s27 + $0x58] sm:$0xff] %v1144_v33  }
  0xd3   : > { %1180 = vst [vmem:[%s1312_s27 + $0x78] sm:$0xff] %v1164_v34  }
  0xd4 PF: > { %s13_s14 = sadd.s32 1, %s1231_s14   ;;  %s1371_s12 = smov %s1227_s13 }
  0xd5   : > { %p10_p5 = scmp.ge.s32.totalorder %s13_s14, 4   ;;  %s1372_s13 = smov %s1374_s15 }
  0xd7   :  { %12 = sbr.rel (!%p10_p5) target bundleno = 2 (0x2), region = 76 }

// kernel: squeeze.6
= control target key start
LH: loop header
LB: loop body
LE: loop exit
PB: predicated region body
PF: predicated region fallthrough
CT: control target
= control target key end

     0   :  { %vm244_vm0 = vcmask 1047556   ;;  %vm246_vm1 = vcmask 130048   ;;  %s521_s22 = smov 80   ;;  %s522_s23 = smov 48   ;;  %vm265_vm2 = vcmask 1048448   ;;  %vm286_vm3 = vcmask 917248   ;;  %s582_s0 = inlined_call_operand.vmem [shape: bf16[1,128,16], index: 0, kind: input, shape index: {}]   ;;  %s583_s1 = inlined_call_operand.vmem [shape: bf16[16,128], index: 1, kind: output, shape index: {}]  }
   0x1   :  { %v471_v0 = vld [vmem:[%s582_s0 + $0x38] sm:$0xff]   ;;  %v472_v1 = vld [vmem:[%s582_s0 + $0x30] sm:$0xff]   ;;  %v473_v2 = vld [vmem:[%s582_s0 + $0x28] sm:$0xff]   ;;  %s523_s24 = smov 96   ;;  %s524_s25 = smov 64   ;;  %vm307_vm4 = vcmask 786048  }
   0x2   :  { %v436_v3 = vunpack.c.l.bf16 %v471_v0  ;;  %v437_v4 = vunpack.c.h.bf16 %v471_v0  ;;  %v441_v5 = vunpack.c.h.bf16 %v472_v1  ;;  %v440_v6 = vunpack.c.l.bf16 %v472_v1  ;;  %v474_v7 = vld [vmem:[%s582_s0 + $0x20] sm:$0xff]   ;;  %v475_v10 = vld [vmem:[%s582_s0 + $0x18] sm:$0xff]   ;;  %v476_v13 = vld [vmem:[%s582_s0 + $0x10] sm:$0xff]   ;;  %s525_s26 = smov 32   ;;  %s526_s27 = smov 16  }
   0x3   :  { %v445_v8 = vunpack.c.h.bf16 %v473_v2  ;;  %v444_v9 = vunpack.c.l.bf16 %v473_v2  ;;  %v449_v11 = vunpack.c.h.bf16 %v474_v7  ;;  %v448_v12 = vunpack.c.l.bf16 %v474_v7  ;;  %v477_v16 = vld [vmem:[%s582_s0 + $0x8] sm:$0xff]   ;;  %v463_v19 = vld [vmem:[%s582_s0] sm:$0xff]   ;;  %s520_s0 = smov 112  }
   0x4   :  { %18 = vst [vmem:[#allocation1 + $0x78] sm:$0xff] %v437_v4  ;;  %v453_v14 = vunpack.c.h.bf16 %v475_v10  ;;  %v452_v15 = vunpack.c.l.bf16 %v475_v10  ;;  %v457_v17 = vunpack.c.h.bf16 %v476_v13  ;;  %v456_v18 = vunpack.c.l.bf16 %v476_v13 }
   0x5   :  { %33 = vst [vmem:[#allocation1 + $0x70] sm:$0xff] %v436_v3  ;;  %v461_v20 = vunpack.c.h.bf16 %v477_v16  ;;  %v460_v21 = vunpack.c.l.bf16 %v477_v16  ;;  %v465_v22 = vunpack.c.h.bf16 %v463_v19  ;;  %v464_v23 = vunpack.c.l.bf16 %v463_v19 }
   0x6   :  { %48 = vst [vmem:[#allocation1 + $0x68] sm:$0xff] %v441_v5  ;;  %vm328_vm5 = vcmask 654848   ;;  %vm349_vm6 = vcmask 523648   ;;  %vm370_vm7 = vcmask 392448   ;;  %vm391_vm8 = vcmask 261248  }
   0x7   :  { %63 = vst [vmem:[#allocation1 + $0x60] sm:$0xff] %v440_v6 }
   0x8   :  { %78 = vst [vmem:[#allocation1 + $0x58] sm:$0xff] %v445_v8 }
   0x9   :  { %93 = vst [vmem:[#allocation1 + $0x50] sm:$0xff] %v444_v9 }
   0xa   :  { %108 = vst [vmem:[#allocation1 + $0x48] sm:$0xff] %v449_v11 }
   0xb   :  { %123 = vst [vmem:[#allocation1 + $0x40] sm:$0xff] %v448_v12 }
   0xc   :  { %138 = vst [vmem:[#allocation1 + $0x38] sm:$0xff] %v453_v14 }
   0xd   :  { %153 = vst [vmem:[#allocation1 + $0x30] sm:$0xff] %v452_v15 }
   0xe   :  { %168 = vst [vmem:[#allocation1 + $0x28] sm:$0xff] %v457_v17  ;;  %v270_v24 = vld [vmem:[#allocation1 + $0x47] ss:$8 sm:$0xf0]  }
   0xf   :  { %183 = vst [vmem:[#allocation1 + $0x20] sm:$0xff] %v456_v18  ;;  %v312_v25 = vld [vmem:[#allocation1 + $0x45] ss:$8 sm:$0xf0]  }
  0x10   :  { %198 = vst [vmem:[#allocation1 + $0x18] sm:$0xff] %v461_v20  ;;  %v354_v34 = vld [vmem:[#allocation1 + $0x43] ss:$8 sm:$0xf0]  }
  0x11   :  { %213 = vst [vmem:[#allocation1 + $0x10] sm:$0xff] %v460_v21  ;;  %v291_v39 = vld [vmem:[#allocation1 + $0x46] ss:$8 sm:$0xf0]  }
  0x12   :  { %228 = vst [vmem:[#allocation1 + $0x8] sm:$0xff] %v465_v22  ;;  %v268_v26 = vld [vmem:[#allocation1 + $0x47] ss:$8 sm:$0xf]  }
  0x13   :  { %241 = vst [vmem:[#allocation1] sm:$0xff] %v464_v23  ;;  %v310_v27 = vld [vmem:[#allocation1 + $0x45] ss:$8 sm:$0xf]   ;;  %v272_v31 = vsel %vm244_vm0, %v270_v24, %v268_v26 }
  0x14   :  { %v314_v32 = vsel %vm244_vm0, %v312_v25, %v310_v27  ;;  %v352_v33 = vld [vmem:[#allocation1 + $0x43] ss:$8 sm:$0xf]   ;;  %v289_v38 = vld [vmem:[#allocation1 + $0x46] ss:$8 sm:$0xf]  }
  0x15   :  { %v331_v40 = vld [vmem:[#allocation1 + $0x44] ss:$8 sm:$0xf]   ;;  %v356_v46 = vsel %vm244_vm0, %v354_v34, %v352_v33  ;;  %v373_v55 = vld [vmem:[#allocation1 + $0x42] ss:$8 sm:$0xf]   ;;  %v293_v58 = vsel %vm244_vm0, %v291_v39, %v289_v38 }
  0x16   :  { %v260_v28 = vld [vmem:[#allocation1 + $0x7] ss:$8 sm:$0xf0]   ;;  %v302_v29 = vld [vmem:[#allocation1 + $0x5] ss:$8 sm:$0xf0]  }
  0x17   :  { %v344_v30 = vld [vmem:[#allocation1 + $0x3] ss:$8 sm:$0xf0]   ;;  %v281_v37 = vld [vmem:[#allocation1 + $0x6] ss:$8 sm:$0xf0]  }
  0x18   :  { %v333_v41 = vld [vmem:[#allocation1 + $0x44] ss:$8 sm:$0xf0]   ;;  %v365_v53 = vld [vmem:[#allocation1 + $0x2] ss:$8 sm:$0xf0]  }
  0x19   :  { %v323_v45 = vld [vmem:[#allocation1 + $0x4] ss:$8 sm:$0xf0]   ;;  %v375_v56 = vld [vmem:[#allocation1 + $0x42] ss:$8 sm:$0xf0]   ;;  %v335_v60 = vsel %vm244_vm0, %v333_v41, %v331_v40 }
  0x1a   :  { %v258_v35 = vld [vmem:[#allocation1 + $0x7] ss:$8 sm:$0xf]   ;;  %v300_v36 = vld [vmem:[#allocation1 + $0x5] ss:$8 sm:$0xf]   ;;  %v377_v1 = vsel %vm244_vm0, %v375_v56, %v373_v55 }
  0x1b   :  { %v262_v42 = vsel %vm244_vm0, %v260_v28, %v258_v35  ;;  %v304_v43 = vsel %vm244_vm0, %v302_v29, %v300_v36  ;;  %v279_v44 = vld [vmem:[#allocation1 + $0x6] ss:$8 sm:$0xf]   ;;  %v321_v49 = vld [vmem:[#allocation1 + $0x4] ss:$8 sm:$0xf]  }
  0x1c   :  { %v485_v47 = vpack.i.bf16 %v272_v31, %v262_v42  ;;  %v495_v48 = vpack.i.bf16 %v314_v32, %v304_v43  ;;  %v342_v50 = vld [vmem:[#allocation1 + $0x3] ss:$8 sm:$0xf]   ;;  %v363_v52 = vld [vmem:[#allocation1 + $0x2] ss:$8 sm:$0xf]   ;;  %v283_v57 = vsel %vm244_vm0, %v281_v37, %v279_v44  ;;  %v325_v59 = vsel %vm244_vm0, %v323_v45, %v321_v49 }
  0x1d   :  { %v346_v51 = vsel %vm244_vm0, %v344_v30, %v342_v50  ;;  %v242_v61 = vld [vmem:[#allocation1] ss:$8 sm:$0xf]   ;;  %v367_v0 = vsel %vm244_vm0, %v365_v53, %v363_v52  ;;  %v490_v2 = vpack.i.bf16 %v293_v58, %v283_v57  ;;  %v500_v3 = vpack.i.bf16 %v335_v60, %v325_v59  ;;  %v394_v4 = vld [vmem:[#allocation1 + $0x41] ss:$8 sm:$0xf]  }
  0x1e   :  { %486 = vrot.lane.b32.xlu0 %v485_v47, %s520_s0  ;;  %496 = vrot.lane.b32.xlu1 %v495_v48, %s521_s22  ;;  %v505_v54 = vpack.i.bf16 %v356_v46, %v346_v51  ;;  %v243_v62 = vld [vmem:[#allocation1] ss:$8 sm:$0xf0]   ;;  %v396_v5 = vld [vmem:[#allocation1 + $0x41] ss:$8 sm:$0xf0]   ;;  %v510_v8 = vpack.i.bf16 %v377_v1, %v367_v0 }
  0x1f   :  { %v245_v63 = vsel %vm244_vm0, %v243_v62, %v242_v61  ;;  %v384_v6 = vld [vmem:[#allocation1 + $0x1] ss:$8 sm:$0xf]   ;;  %v398_v10 = vsel %vm244_vm0, %v396_v5, %v394_v4  ;;  %v249_v12 = vld [vmem:[#allocation1 + $0x40] ss:$8 sm:$0xf]  }
  0x20   :  { %506 = vrot.lane.b32.xlu2 %v505_v54, %s522_s23  ;;  %247 = vst.msk [vmem:[#allocation0] sm:$0xff] %vm246_vm1, %v245_v63   ;;  %v386_v7 = vld [vmem:[#allocation1 + $0x1] ss:$8 sm:$0xf0]  }
  0x21   :  { %v388_v9 = vsel %vm244_vm0, %v386_v7, %v384_v6  ;;  %v251_v13 = vld [vmem:[#allocation1 + $0x40] ss:$8 sm:$0xf0]  }
  0x22   :  { %v515_v11 = vpack.i.bf16 %v398_v10, %v388_v9  ;;  %v253_v14 = vsel %vm244_vm0, %v251_v13, %v249_v12 }
  0x23   :  { %256 = vst.msk [vmem:[#allocation0 + $0x8] sm:$0xff] %vm246_vm1, %v253_v14  }
  0x26   :  { %491 = vrot.lane.b32.xlu0 %v490_v2, %s523_s24  ;;  %501 = vrot.lane.b32.xlu1 %v500_v3, %s524_s25 }
  0x28   :  { %511 = vrot.lane.b32.xlu2 %v510_v8, %s525_s26 }
  0x2e   :  { %516 = vrot.lane.b32.xlu0 %v515_v11, %s526_s27 }
  0x7a   :  { %v507_v15 = vpop.permute.xlu2 %506 }
  0x7b   :  { %v508_v29 = vunpack.i.l.bf16 %v507_v15  ;;  %v509_v31 = vunpack.i.h.bf16 %v507_v15 }
  0x82   :  { %v512_v16 = vpop.permute.xlu2 %511 }
  0x83   :  { %v513_v30 = vunpack.i.l.bf16 %v512_v16  ;;  %v514_v32 = vunpack.i.h.bf16 %v512_v16 }
  0x90   :  { %v487_v17 = vpop.permute.xlu0 %486  ;;  %v497_v18 = vpop.permute.xlu1 %496 }
  0x91   :  { %v489_v19 = vunpack.i.h.bf16 %v487_v17  ;;  %v488_v20 = vunpack.i.l.bf16 %v487_v17  ;;  %v498_v25 = vunpack.i.l.bf16 %v497_v18  ;;  %v499_v27 = vunpack.i.h.bf16 %v497_v18 }
  0x93   :  { %266 = vst.msk [vmem:[#allocation0] sm:$0xff] %vm265_vm2, %v488_v20  }
  0x94   :  { %277 = vst.msk [vmem:[#allocation0 + $0x8] sm:$0xff] %vm265_vm2, %v489_v19  }
  0x98   :  { %v492_v21 = vpop.permute.xlu0 %491  ;;  %v502_v22 = vpop.permute.xlu1 %501 }
  0x99   :  { %v494_v23 = vunpack.i.h.bf16 %v492_v21  ;;  %v493_v24 = vunpack.i.l.bf16 %v492_v21  ;;  %v503_v26 = vunpack.i.l.bf16 %v502_v22  ;;  %v504_v28 = vunpack.i.h.bf16 %v502_v22 }
  0x9b   :  { %287 = vst.msk [vmem:[#allocation0] sm:$0xff] %vm286_vm3, %v493_v24  }
  0x9c   :  { %298 = vst.msk [vmem:[#allocation0 + $0x8] sm:$0xff] %vm286_vm3, %v494_v23  }
  0x9d   :  { %308 = vst.msk [vmem:[#allocation0] sm:$0xff] %vm307_vm4, %v498_v25  }
  0x9e   :  { %319 = vst.msk [vmem:[#allocation0 + $0x8] sm:$0xff] %vm307_vm4, %v499_v27  }
  0x9f   :  { %329 = vst.msk [vmem:[#allocation0] sm:$0xff] %vm328_vm5, %v503_v26  }
  0xa0   :  { %340 = vst.msk [vmem:[#allocation0 + $0x8] sm:$0xff] %vm328_vm5, %v504_v28   ;;  %v517_v33 = vpop.permute.xlu0 %516 }
  0xa1   :  { %350 = vst.msk [vmem:[#allocation0] sm:$0xff] %vm349_vm6, %v508_v29   ;;  %v518_v34 = vunpack.i.l.bf16 %v517_v33  ;;  %v519_v35 = vunpack.i.h.bf16 %v517_v33 }
  0xa2   :  { %361 = vst.msk [vmem:[#allocation0 + $0x8] sm:$0xff] %vm349_vm6, %v509_v31  }
  0xa3   :  { %371 = vst.msk [vmem:[#allocation0] sm:$0xff] %vm370_vm7, %v513_v30  }
  0xa4   :  { %382 = vst.msk [vmem:[#allocation0 + $0x8] sm:$0xff] %vm370_vm7, %v514_v32  }
  0xa5   :  { %392 = vst.msk [vmem:[#allocation0] sm:$0xff] %vm391_vm8, %v518_v34  }
  0xa6   :  { %403 = vst.msk [vmem:[#allocation0 + $0x8] sm:$0xff] %vm391_vm8, %v519_v35  }
  0xac   :  { %v406_v36 = vld [vmem:[#allocation0] sm:$0xff] }
  0xad   :  { %v412_v37 = vld [vmem:[#allocation0 + $0x8] sm:$0xff] }
  0xae   :  { %v469_v38 = vpack.c.bf16 %v412_v37, %v406_v36 }
  0xb0   :  { %470 = vst [vmem:[%s583_s1] sm:$0xff] %v469_v38  }

// kernel: _lambda_.18
= control target key start
LH: loop header
LB: loop body
LE: loop exit
PB: predicated region body
PF: predicated region fallthrough
CT: control target
= control target key end

     0   :  { %s1118_s18 = smov 0   ;;  %s1120_s19 = smov 0   ;;  %s1306_s0 = inlined_call_operand.vmem [shape: bf16[1,128,128], index: 0, kind: input, shape index: {}]   ;;  %s1307_s1 = inlined_call_operand.vmem [shape: bf16[1,128,128], index: 1, kind: input, shape index: {}]   ;;  %s1308_s2 = inlined_call_operand.vmem [shape: f32[1,128], index: 2, kind: input, shape index: {}]   ;;  %s1309_s3 = inlined_call_operand.vmem [shape: bf16[1,128,128], index: 3, kind: output, shape index: {0}]   ;;  %s1310_s4 = inlined_call_operand.vmem [shape: f32[1,2,1,128], index: 4, kind: output, shape index: {1}]   ;;  %s1311_s5 = inlined_call_operand.vmem [shape: f32[1,2,1,128], index: 5, kind: output, shape index: {2}]  }
   0x1   :  { %s1122_s20 = smov 0  }
   0x2 LB: > { %s38_s21 = sadd.s32 1, %s1082_s19  ;;  %p945_p0 = scmp.ge.s32.totalorder %s1086_s20, 1  ;;  %s1086_s20 = sphi %s1122_s20, %s16_s20   ;;  %s1082_s19 = sphi %s1120_s19, %s1329_s19   ;;  %s1078_s18 = sphi %s1118_s18, %s1328_s18  }
   0x3   : > { %p40_p1 = scmp.ge.s32.totalorder %s38_s21, 2  ;;  %p272_p2 = scmp.lt.s32.totalorder %s1086_s20, 3 }
   0x5   : > { %s1331_s21 = smov (%p40_p1, %s38_s21), 0  ;;  %p273_p3 = pnand %p945_p0, %p272_p2 }
   0x6   : > { %s946_s24 = sshll.u32 (!%p273_p3), %s1078_s18, 3  ;;  %p393_p5 = scmp.lt.s32.totalorder (!%p273_p3), %s1078_s18, 1 }
   0x7   : > { %276 = sbr.rel (%p273_p3) target bundleno = 209 (0xd1), region = 32  ;;  %p352_p4 = scmp.lt.s32.totalorder (!%p273_p3), %s946_s24, 15 }
   0xc   : > { %v991_v0 = vld [vmem:[%s1307_s1 + $0x38] sm:$0xff]  ;;  %v990_v1 = vld [vmem:[%s1307_s1 + $0x30] sm:$0xff]  ;;  %s1333_s24 = smov (!%p352_p4, %s946_s24), 15  ;;  %v989_v2 = vld [vmem:[%s1307_s1 + $0x28] sm:$0xff]  ;;  %s1335_s18 = smov (!%p393_p5, %s1078_s18), 1 }
   0xd   : > { %575 = vmatpush.bf16.msra.mxu0 %v991_v0  ;;  %1015 = vmatpush.bf16.msra.mxu1 %v991_v0  ;;  %s947_s27 = sshll.u32 %s1333_s24, 2  ;;  %v988_v13 = vld [vmem:[%s1307_s1 + $0x20] sm:$0xff]  ;;  %v987_v26 = vld [vmem:[%s1307_s1 + $0x18] sm:$0xff]  ;;  %v986_v38 = vld [vmem:[%s1307_s1 + $0x10] sm:$0xff]  ;;  %s400_s29 = scalar_lea.vmem %s1310_s4, %s1335_s18 }
   0xe   : > { %1016 = vmatpush.bf16.msra.mxu2 %v991_v0  ;;  %1017 = vmatpush.bf16.msra.mxu3 %v991_v0  ;;  %s360_s7 = scalar_lea.vmem %s1306_s0, %s947_s27  ;;  %v985_v48 = vld [vmem:[%s1307_s1 + $0x8] sm:$0xff]  ;;  %v984_v59 = vld [vmem:[%s1307_s1] sm:$0xff]  ;;  %s389_s28 = scalar_lea.vmem %s1309_s3, %s947_s27 }
   0xf   : > { %v1156_v3 = vld [vmem:[%s360_s7] sm:$0xf]  ;;  %v1158_v4 = vld [vmem:[%s360_s7 + $0x4] sm:$0xf]  ;;  %v1160_v5 = vld [vmem:[%s360_s7 + $0x8] sm:$0xf] }
  0x10   : > { %v431_v6 = vunpack.c.l.bf16 %v1156_v3  ;;  %v1163_v7 = vld [vmem:[%s360_s7 + $0xc] sm:$0xf]  ;;  %v1165_v8 = vld [vmem:[%s360_s7 + $0x10] sm:$0xf]  ;;  %v1167_v9 = vld [vmem:[%s360_s7 + $0x14] sm:$0xf]  ;;  %v432_v10 = vunpack.c.l.bf16 %v1158_v4  ;;  %v433_v11 = vunpack.c.l.bf16 %v1160_v5 }
  0x11   : > { %576 = vmatpush.bf16.msra.mxu0 %v990_v1  ;;  %1018 = vmatpush.bf16.msra.mxu1 %v990_v1  ;;  %v434_v12 = vunpack.c.l.bf16 %v1163_v7  ;;  %v435_v15 = vunpack.c.l.bf16 %v1165_v8  ;;  %v436_v17 = vunpack.c.l.bf16 %v1167_v9  ;;  %v429_v18 = vld [vmem:[%s360_s7 + $0x18] sm:$0xf]  ;;  %v430_v19 = vld [vmem:[%s360_s7 + $0x1c] sm:$0xf]  ;;  %s410_s7 = scalar_lea.vmem %s1311_s5, %s1335_s18 }
  0x12   : > { %1019 = vmatpush.bf16.msra.mxu2 %v990_v1  ;;  %1020 = vmatpush.bf16.msra.mxu3 %v990_v1  ;;  %vm1175_vm0 = vcmp.gt.f32.partialorder %v431_v6, 0.0  ;;  %vm1180_vm1 = vcmp.gt.f32.partialorder %v432_v10, 0.0  ;;  %v447_v20 = vmul.f32 0.20019531, %v431_v6  ;;  %vm1185_vm2 = vcmp.gt.f32.partialorder %v433_v11, 0.0  ;;  %v1063_v6 = vld [vmem:[%s1308_s2] ss:$0 sm:$0xff] }
  0x13   : > { %v448_v22 = vmul.f32 0.20019531, %v432_v10  ;;  %vm463_vm3 = vmpackc.low %vm1175_vm0, %vm1175_vm0  ;;  %vm1192_vm4 = vcmp.gt.f32.partialorder %v434_v12, 0.0  ;;  %v449_v24 = vmul.f32 0.20019531, %v433_v11  ;;  %v450_v25 = vmul.f32 0.20019531, %v434_v12 }
  0x14   : > { %vm464_vm5 = vmpackc.low %vm1180_vm1, %vm1180_vm1  ;;  %vm1202_vm6 = vcmp.gt.f32.partialorder %v435_v15, 0.0  ;;  %v451_v28 = vmul.f32 0.20019531, %v435_v15  ;;  %v437_v29 = vunpack.c.l.bf16 %v429_v18  ;;  %v438_v30 = vunpack.c.l.bf16 %v430_v19 }
  0x15   : > { %577 = vmatpush.bf16.msra.mxu0 %v989_v2  ;;  %1021 = vmatpush.bf16.msra.mxu1 %v989_v2  ;;  %vm465_vm7 = vmpackc.low %vm1185_vm2, %vm1185_vm2  ;;  %vm1209_vm8 = vcmp.gt.f32.partialorder %v436_v17, 0.0  ;;  %v452_v32 = vmul.f32 0.20019531, %v436_v17  ;;  %v455_v33 = vpack.c.bf16 %v447_v20, %v447_v20  ;;  %v456_v34 = vpack.c.bf16 %v448_v22, %v448_v22 }
  0x16   : > { %1022 = vmatpush.bf16.msra.mxu2 %v989_v2  ;;  %1023 = vmatpush.bf16.msra.mxu3 %v989_v2  ;;  %vm466_vm9 = vmpackc.low %vm1192_vm4, %vm1192_vm4  ;;  %vm1219_vm11 = vcmp.gt.f32.partialorder %v437_v29, 0.0  ;;  %vm1223_vm12 = vcmp.gt.f32.partialorder %v438_v30, 0.0  ;;  %v453_v37 = vmul.f32 0.20019531, %v437_v29  ;;  %v457_v39 = vpack.c.bf16 %v449_v24, %v449_v24 }
  0x17   : > { %vm467_vm10 = vmpackc.low %vm1202_vm6, %vm1202_vm6  ;;  %v458_v40 = vpack.c.bf16 %v450_v25, %v450_v25  ;;  %v459_v41 = vpack.c.bf16 %v451_v28, %v451_v28  ;;  %v454_v42 = vmul.f32 0.20019531, %v438_v30  ;;  %v460_v43 = vpack.c.bf16 %v452_v32, %v452_v32 }
  0x18   : > { %vm468_vm13 = vmpackc.low %vm1209_vm8, %vm1209_vm8  ;;  %v461_v44 = vpack.c.bf16 %v453_v37, %v453_v37  ;;  %v471_v46 = vsel %vm463_vm3, %v1156_v3, %v455_v33  ;;  %v472_v47 = vsel %vm464_vm5, %v1158_v4, %v456_v34  ;;  %v473_v49 = vsel %vm465_vm7, %v1160_v5, %v457_v39 }
  0x19   : > { %578 = vmatpush.bf16.msra.mxu0 %v988_v13  ;;  %1024 = vmatpush.bf16.msra.mxu1 %v988_v13  ;;  %vm469_vm14 = vmpackc.low %vm1219_vm11, %vm1219_vm11  ;;  %v462_v45 = vpack.c.bf16 %v454_v42, %v454_v42  ;;  %v474_v50 = vsel %vm466_vm9, %v1163_v7, %v458_v40  ;;  %v475_v51 = vsel %vm467_vm10, %v1165_v8, %v459_v41  ;;  %v511_v55 = vunpack.c.l.b16 %v471_v46 }
  0x1a   : > { %1025 = vmatpush.bf16.msra.mxu2 %v988_v13  ;;  %1026 = vmatpush.bf16.msra.mxu3 %v988_v13  ;;  %vm470_vm15 = vmpackc.low %vm1223_vm12, %vm1223_vm12  ;;  %v476_v52 = vsel %vm468_vm13, %v1167_v9, %v460_v43  ;;  %v477_v53 = vsel %vm469_vm14, %v429_v18, %v461_v44  ;;  %v512_v56 = vunpack.c.l.b16 %v472_v47  ;;  %v513_v57 = vunpack.c.l.b16 %v473_v49 }
  0x1b   : > { %v478_v54 = vsel %vm470_vm15, %v430_v19, %v462_v45  ;;  %v514_v58 = vunpack.c.l.b16 %v474_v50  ;;  %v515_v60 = vunpack.c.l.b16 %v475_v51  ;;  %v516_v61 = vunpack.c.l.b16 %v476_v52 }
  0x1c   : > { %v517_v62 = vunpack.c.l.b16 %v477_v53  ;;  %v518_v63 = vunpack.c.l.b16 %v478_v54  ;;  %v519_v0 = vpack.c.b16 %v512_v56, %v511_v55 }
  0x1d   : > { %579 = vmatpush.bf16.msra.mxu0 %v987_v26  ;;  %1027 = vmatpush.bf16.msra.mxu1 %v987_v26  ;;  %v520_v1 = vpack.c.b16 %v514_v58, %v513_v57  ;;  %v521_v2 = vpack.c.b16 %v516_v61, %v515_v60 }
  0x1e   : > { %1028 = vmatpush.bf16.msra.mxu2 %v987_v26  ;;  %1029 = vmatpush.bf16.msra.mxu3 %v987_v26  ;;  %v522_v3 = vpack.c.b16 %v518_v63, %v517_v62 }
  0x21   : > { %580 = vmatpush.bf16.msra.mxu0 %v986_v38  ;;  %1030 = vmatpush.bf16.msra.mxu1 %v986_v38 }
  0x22   : > { %1031 = vmatpush.bf16.msra.mxu2 %v986_v38  ;;  %1032 = vmatpush.bf16.msra.mxu3 %v986_v38 }
  0x25   : > { %581 = vmatpush.bf16.msra.mxu0 %v985_v48  ;;  %1033 = vmatpush.bf16.msra.mxu1 %v985_v48 }
  0x26   : > { %1034 = vmatpush.bf16.msra.mxu2 %v985_v48  ;;  %1035 = vmatpush.bf16.msra.mxu3 %v985_v48 }
  0x29   : > { %582 = vmatpush.bf16.msra.mxu0 %v984_v59  ;;  %1036 = vmatpush.bf16.msra.mxu1 %v984_v59 }
  0x2a   : > { %1037 = vmatpush.bf16.msra.mxu2 %v984_v59  ;;  %1038 = vmatpush.bf16.msra.mxu3 %v984_v59 }
  0x2c   : > { %583 = vmatmul.bf16.vlgmr.msra.gmra.mxu0 %v519_v0  ;;  %588 = vmatmul.bf16.vlgmr.msra.gmra.mxu1 %v520_v1 }
  0x2d   : > { %593 = vmatmul.bf16.vlgmr.msra.gmra.mxu2 %v521_v2  ;;  %598 = vmatmul.bf16.vlgmr.msra.gmra.mxu3 %v522_v3 }
  0xa9   : > { %v584_v4 = vpop.f32.mrf.mxu0  ;;  %v589_v5 = vpop.f32.mrf.mxu1 }
  0xaa   : > { %v635_v7 = vadd.f32 %v1063_v6, %v584_v4  ;;  %v637_v12 = vadd.f32 %v1063_v6, %v589_v5 }
  0xac   : > { %v673_v15 = vmul.f32 %v635_v7, %v635_v7  ;;  %v675_v20 = vmul.f32 %v637_v12, %v637_v12 }
  0xb0   : > { %v594_v8 = vpop.f32.mrf.mxu2  ;;  %v599_v9 = vpop.f32.mrf.mxu3 }
  0xb1   : > { %v586_v10 = vpop.f32.mrf.mxu0  ;;  %v591_v11 = vpop.f32.mrf.mxu1  ;;  %v639_v21 = vadd.f32 %v1063_v6, %v594_v8  ;;  %v641_v29 = vadd.f32 %v1063_v6, %v599_v9 }
  0xb2   : > { %v636_v13 = vadd.f32 %v1063_v6, %v586_v10  ;;  %v638_v14 = vadd.f32 %v1063_v6, %v591_v11 }
  0xb3   : > { %v677_v32 = vmul.f32 %v639_v21, %v639_v21  ;;  %v679_v40 = vmul.f32 %v641_v29, %v641_v29 }
  0xb4   : > { %v995_v16 = vpack.c.bf16 %v636_v13, %v635_v7  ;;  %v659_v17 = vadd.f32 %v636_v13, %v635_v7  ;;  %v674_v18 = vmul.f32 %v636_v13, %v636_v13  ;;  %v1000_v19 = vpack.c.bf16 %v638_v14, %v637_v12 }
  0xb5   : > { %v676_v25 = vmul.f32 %v638_v14, %v638_v14 }
  0xb6   : > { %996 = vst [vmem:[%s389_s28] sm:$0xff] %v995_v16   ;;  %v681_v22 = vadd.f32 %v674_v18, %v673_v15  ;;  %v660_v23 = vadd.f32 %v659_v17, %v637_v12 }
  0xb7   : > { %1012 = vst [vmem:[%s389_s28 + $0x8] sm:$0xff] %v1000_v19  }
  0xb8   : > { %v661_v24 = vadd.f32 %v660_v23, %v638_v14  ;;  %v682_v26 = vadd.f32 %v681_v22, %v675_v20  ;;  %v596_v27 = vpop.f32.mrf.mxu2  ;;  %v601_v28 = vpop.f32.mrf.mxu3 }
  0xb9   : > { %v640_v30 = vadd.f32 %v1063_v6, %v596_v27  ;;  %v642_v31 = vadd.f32 %v1063_v6, %v601_v28 }
  0xba   : > { %v683_v33 = vadd.f32 %v682_v26, %v676_v25  ;;  %v662_v34 = vadd.f32 %v661_v24, %v639_v21 }
  0xbb   : > { %v1005_v35 = vpack.c.bf16 %v640_v30, %v639_v21  ;;  %v1010_v36 = vpack.c.bf16 %v642_v31, %v641_v29  ;;  %v678_v38 = vmul.f32 %v640_v30, %v640_v30  ;;  %v680_v44 = vmul.f32 %v642_v31, %v642_v31 }
  0xbc   : > { %v663_v37 = vadd.f32 %v662_v34, %v640_v30  ;;  %v684_v39 = vadd.f32 %v683_v33, %v677_v32 }
  0xbd   : > { %1013 = vst [vmem:[%s389_s28 + $0x10] sm:$0xff] %v1005_v35  }
  0xbe   : > { %v685_v41 = vadd.f32 %v684_v39, %v678_v38  ;;  %1014 = vst [vmem:[%s389_s28 + $0x18] sm:$0xff] %v1010_v36   ;;  %v664_v42 = vadd.f32 %v663_v37, %v641_v29 }
  0xc0   : > { %v665_v43 = vadd.f32 %v664_v42, %v642_v31  ;;  %v686_v45 = vadd.f32 %v685_v41, %v679_v40 }
  0xc2   : > { %v666_v46 = vrot.slane %v665_v43, 4  ;;  %v687_v47 = vadd.f32 %v686_v45, %v680_v44 }
  0xc4   : > { %v667_v48 = vadd.f32 %v666_v46, %v665_v43  ;;  %v688_v49 = vrot.slane %v687_v47, 4 }
  0xc6   : > { %v668_v50 = vrot.slane %v667_v48, 2  ;;  %v689_v51 = vadd.f32 %v688_v49, %v687_v47 }
  0xc8   : > { %v669_v52 = vadd.f32 %v668_v50, %v667_v48  ;;  %v690_v53 = vrot.slane %v689_v51, 2 }
  0xca   : > { %v670_v54 = vrot.slane %v669_v52, 1  ;;  %v691_v55 = vadd.f32 %v690_v53, %v689_v51 }
  0xcc   : > { %v671_v56 = vadd.f32 %v670_v54, %v669_v52  ;;  %v692_v57 = vrot.slane %v691_v55, 1 }
  0xce   : > { %672 = vst [vmem:[%s400_s29] sm:$0x1] %v671_v56  ;;  %v693_v58 = vadd.f32 %v692_v57, %v691_v55 }
  0xd0   : > { %694 = vst [vmem:[%s410_s7] sm:$0x1] %v693_v58 }
  0xd1 PF: > { %s16_s20 = sadd.s32 1, %s1086_s20   ;;  %s1328_s18 = smov %s1082_s19 }
  0xd2   : > { %p13_p6 = scmp.ge.s32.totalorder %s16_s20, 4   ;;  %s1329_s19 = smov %s1331_s21 }
  0xd4   :  { %15 = sbr.rel (!%p13_p6) target bundleno = 2 (0x2), region = 100 }

// kernel: _lambda_.19
= control target key start
LH: loop header
LB: loop body
LE: loop exit
PB: predicated region body
PF: predicated region fallthrough
CT: control target
= control target key end

     0   :  { %s81_s0 = inlined_call_operand.vmem [shape: bf16[16,128], index: 0, kind: input, shape index: {}]   ;;  %s82_s1 = inlined_call_operand.vmem [shape: f32[1,128], index: 1, kind: input, shape index: {}]   ;;  %s83_s2 = inlined_call_operand.vmem [shape: f32[1,128], index: 2, kind: input, shape index: {}]   ;;  %s84_s3 = inlined_call_operand.vmem [shape: bf16[16,128], index: 3, kind: output, shape index: {}]  }
   0x1   :  { %v39_v0 = vld [vmem:[%s81_s0] sm:$0xff]  }
   0x2   :  { %v47_v1 = vld [vmem:[%s82_s1] ss:$0 sm:$0xff]  ;;  %v40_v2 = vunpack.c.l.bf16 %v39_v0  ;;  %v41_v3 = vunpack.c.h.bf16 %v39_v0 }
   0x3   :  { %v48_v4 = vld [vmem:[%s83_s2] ss:$0 sm:$0xff] }
   0x4   :  { %v22_v5 = vmul.f32 %v47_v1, %v40_v2  ;;  %v23_v6 = vmul.f32 %v47_v1, %v41_v3 }
   0x6   :  { %v28_v7 = vadd.f32 %v48_v4, %v22_v5  ;;  %v29_v8 = vadd.f32 %v48_v4, %v23_v6 }
   0x8   :  { %v45_v9 = vpack.c.bf16 %v29_v8, %v28_v7 }
   0xa   :  { %46 = vst [vmem:[%s84_s3] sm:$0xff] %v45_v9  }

// kernel: squeeze.7
= control target key start
LH: loop header
LB: loop body
LE: loop exit
PB: predicated region body
PF: predicated region fallthrough
CT: control target
= control target key end

     0   :  { %s106_s10 = smov 32   ;;  %s107_s11 = smov 64   ;;  %vm63_vm0 = vcmask 261120   ;;  %vm69_vm1 = vcmask 1048320   ;;  %vm75_vm2 = vcmask 785920   ;;  %vm81_vm3 = vcmask 523520   ;;  %s127_s0 = inlined_call_operand.vmem [shape: bf16[1,32,32], index: 0, kind: input, shape index: {}]   ;;  %s128_s1 = inlined_call_operand.vmem [shape: bf16[8,128], index: 1, kind: output, shape index: {}]  }
   0x1   :  { %v101_v0 = vld [vmem:[%s127_s0 + $0x8] sm:$0xff]   ;;  %v98_v1 = vld [vmem:[%s127_s0] sm:$0xff]   ;;  %s105_s0 = smov 96  }
   0x2   :  { %v95_v2 = vunpack.c.l.bf16 %v101_v0  ;;  %v96_v3 = vunpack.c.h.bf16 %v101_v0  ;;  %v100_v4 = vunpack.c.h.bf16 %v98_v1  ;;  %v99_v5 = vunpack.c.l.bf16 %v98_v1 }
   0x4   :  { %18 = vst [vmem:[#allocation1 + $0x18] sm:$0xff] %v96_v3 }
   0x5   :  { %33 = vst [vmem:[#allocation1 + $0x10] sm:$0xff] %v95_v2 }
   0x6   :  { %48 = vst [vmem:[#allocation1 + $0x8] sm:$0xff] %v100_v4 }
   0x7   :  { %61 = vst [vmem:[#allocation1] sm:$0xff] %v99_v5 }
   0xe   :  { %v66_v6 = vld [vmem:[#allocation1 + $0x3] ss:$4 sm:$0xff]   ;;  %v78_v7 = vld [vmem:[#allocation1 + $0x1] ss:$4 sm:$0xff]   ;;  %v72_v8 = vld [vmem:[#allocation1 + $0x2] ss:$4 sm:$0xff]  }
   0xf   :  { %67 = vrot.lane.b32.xlu0 %v66_v6, %s105_s0  ;;  %79 = vrot.lane.b32.xlu1 %v78_v7, %s106_s10  ;;  %v62_v9 = vld [vmem:[#allocation1] ss:$4 sm:$0xff]  }
  0x10   :  { %64 = vst.msk [vmem:[#allocation0] sm:$0xff] %vm63_vm0, %v62_v9  }
  0x17   :  { %73 = vrot.lane.b32.xlu0 %v72_v8, %s107_s11 }
  0x81   :  { %v68_v10 = vpop.permute.xlu0 %67   ;;  %v80_v11 = vpop.permute.xlu1 %79  }
  0x82   :  { %70 = vst.msk [vmem:[#allocation0] sm:$0xff] %vm69_vm1, %v68_v10  }
  0x89   :  { %v74_v12 = vpop.permute.xlu0 %73  }
  0x8a   :  { %76 = vst.msk [vmem:[#allocation0] sm:$0xff] %vm75_vm2, %v74_v12  }
  0x8b   :  { %82 = vst.msk [vmem:[#allocation0] sm:$0xff] %vm81_vm3, %v80_v11  }
  0x92   :  { %v85_v13 = vld [vmem:[#allocation0] sm:$0xff] }
  0x93   :  { %v86_v14 = vpack.c.bf16 0.0, %v85_v13 }
  0x95   :  { %89 = vst [vmem:[%s128_s1] sm:$0xf] %v86_v14 }

// kernel: _lambda_.21
= control target key start
LH: loop header
LB: loop body
LE: loop exit
PB: predicated region body
PF: predicated region fallthrough
CT: control target
= control target key end

     0   :  { %s66_s0 = inlined_call_operand.vmem [shape: bf16[8,128], index: 0, kind: input, shape index: {}]   ;;  %s67_s1 = inlined_call_operand.vmem [shape: f32[1,128], index: 1, kind: input, shape index: {}]   ;;  %s68_s2 = inlined_call_operand.vmem [shape: f32[1,128], index: 2, kind: input, shape index: {}]   ;;  %s69_s3 = inlined_call_operand.vmem [shape: bf16[8,128], index: 3, kind: output, shape index: {}]  }
   0x1   :  { %v14_v0 = vld [vmem:[%s66_s0] sm:$0xf] }
   0x2   :  { %v32_v1 = vld [vmem:[%s67_s1] ss:$0 sm:$0xff]  ;;  %v15_v2 = vunpack.c.l.bf16 %v14_v0 }
   0x3   :  { %v33_v3 = vld [vmem:[%s68_s2] ss:$0 sm:$0xff] }
   0x4   :  { %v20_v4 = vmul.f32 %v32_v1, %v15_v2 }
   0x6   :  { %v25_v5 = vadd.f32 %v33_v3, %v20_v4 }
   0x8   :  { %v26_v6 = vpack.c.bf16 %v25_v5, %v25_v5 }
   0xa   :  { %27 = vst [vmem:[%s69_s3] sm:$0xf] %v26_v6 }

// kernel: _lambda_.20
= control target key start
LH: loop header
LB: loop body
LE: loop exit
PB: predicated region body
PF: predicated region fallthrough
CT: control target
= control target key end

     0   :  { %s1076_s18 = smov 0   ;;  %s1078_s19 = smov 0   ;;  %s1193_s0 = inlined_call_operand.vmem [shape: bf16[1,32,256], index: 0, kind: input, shape index: {}]   ;;  %s1194_s1 = inlined_call_operand.vmem [shape: bf16[1,256,128], index: 1, kind: input, shape index: {}]   ;;  %s1195_s2 = inlined_call_operand.vmem [shape: f32[1,128], index: 2, kind: input, shape index: {}]   ;;  %s1196_s3 = inlined_call_operand.vmem [shape: bf16[1,32,128], index: 3, kind: output, shape index: {0}]   ;;  %s1197_s4 = inlined_call_operand.vmem [shape: f32[1,2,1,128], index: 4, kind: output, shape index: {1}]   ;;  %s1198_s5 = inlined_call_operand.vmem [shape: f32[1,2,1,128], index: 5, kind: output, shape index: {2}]  }
   0x1   :  { %s1080_s20 = smov 0  }
   0x2 LB: > { %s38_s21 = sadd.s32 1, %s1040_s19  ;;  %p903_p0 = scmp.ge.s32.totalorder %s1044_s20, 1  ;;  %s1044_s20 = sphi %s1080_s20, %s16_s20   ;;  %s1040_s19 = sphi %s1078_s19, %s1206_s19   ;;  %s1036_s18 = sphi %s1076_s18, %s1205_s18  }
   0x3   : > { %p40_p1 = scmp.ge.s32.totalorder %s38_s21, 2  ;;  %p275_p2 = scmp.lt.s32.totalorder %s1044_s20, 3 }
   0x5   : > { %s1208_s21 = smov (%p40_p1, %s38_s21), 0  ;;  %p276_p3 = pnand %p903_p0, %p275_p2 }
   0x6   : > { %s904_s26 = sshll.u32 (!%p276_p3), %s1036_s18, 1  ;;  %p401_p5 = scmp.lt.s32.totalorder (!%p276_p3), %s1036_s18, 1 }
   0x7   : > { %279 = sbr.rel (%p276_p3) target bundleno = 200 (0xc8), region = 32  ;;  %p358_p4 = scmp.lt.s32.totalorder (!%p276_p3), %s904_s26, 3 }
   0xc   : > { %v983_v0 = vld [vmem:[%s1194_s1 + $0x38] sm:$0xff]  ;;  %v982_v2 = vld [vmem:[%s1194_s1 + $0x30] sm:$0xff]  ;;  %s1210_s26 = smov (!%p358_p4, %s904_s26), 3  ;;  %v981_v4 = vld [vmem:[%s1194_s1 + $0x28] sm:$0xff]  ;;  %s1212_s18 = smov (!%p401_p5, %s1036_s18), 1 }
   0xd   : > { %v991_v1 = vld [vmem:[%s1194_s1 + $0x78] sm:$0xff]  ;;  %585 = vmatpush.bf16.msra.mxu0 %v983_v0  ;;  %v990_v3 = vld [vmem:[%s1194_s1 + $0x70] sm:$0xff]  ;;  %s975_s6 = sshll.u32 %s1210_s26, 3  ;;  %v989_v5 = vld [vmem:[%s1194_s1 + $0x68] sm:$0xff]  ;;  %s908_s16 = sshll.u32 %s1210_s26, 2 }
   0xe   : > { %599 = vmatpush.bf16.msra.mxu1 %v991_v1  ;;  %s367_s13 = scalar_lea.vmem %s1193_s0, %s975_s6  ;;  %v980_v8 = vld [vmem:[%s1194_s1 + $0x20] sm:$0xff]  ;;  %v979_v14 = vld [vmem:[%s1194_s1 + $0x18] sm:$0xff]  ;;  %v978_v23 = vld [vmem:[%s1194_s1 + $0x10] sm:$0xff]  ;;  %s397_s23 = scalar_lea.vmem %s1196_s3, %s908_s16 }
   0xf   : > { %v425_v6 = vld [vmem:[%s367_s13] sm:$0xff]  ;;  %v426_v7 = vld [vmem:[%s367_s13 + $0x8] sm:$0xff]  ;;  %v987_v15 = vld [vmem:[%s1194_s1 + $0x58] sm:$0xff]  ;;  %s408_s25 = scalar_lea.vmem %s1197_s4, %s1212_s18  ;;  %s418_s29 = scalar_lea.vmem %s1198_s5, %s1212_s18 }
  0x10   : > { %v988_v9 = vld [vmem:[%s1194_s1 + $0x60] sm:$0xff]  ;;  %v427_v10 = vunpack.c.l.bf16 %v425_v6  ;;  %v428_v11 = vunpack.c.h.bf16 %v425_v6  ;;  %v429_v12 = vunpack.c.l.bf16 %v426_v7  ;;  %v430_v13 = vunpack.c.h.bf16 %v426_v7  ;;  %v986_v24 = vld [vmem:[%s1194_s1 + $0x50] sm:$0xff]  ;;  %v977_v27 = vld [vmem:[%s1194_s1 + $0x8] sm:$0xff] }
  0x11   : > { %586 = vmatpush.bf16.msra.mxu0 %v982_v2  ;;  %v985_v28 = vld [vmem:[%s1194_s1 + $0x48] sm:$0xff]  ;;  %v976_v35 = vld [vmem:[%s1194_s1] sm:$0xff] }
  0x12   : > { %600 = vmatpush.bf16.msra.mxu1 %v990_v3  ;;  %v435_v16 = vmul.f32 0.20019531, %v427_v10  ;;  %v436_v17 = vmul.f32 0.20019531, %v428_v11  ;;  %v437_v18 = vmul.f32 0.20019531, %v429_v12  ;;  %v438_v19 = vmul.f32 0.20019531, %v430_v13  ;;  %v984_v36 = vld [vmem:[%s1194_s1 + $0x40] sm:$0xff] }
  0x13   : > { %vm1133_vm0 = vcmp.gt.f32.partialorder %v427_v10, 0.0  ;;  %vm1137_vm1 = vcmp.gt.f32.partialorder %v428_v11, 0.0  ;;  %vm1141_vm2 = vcmp.gt.f32.partialorder %v429_v12, 0.0  ;;  %vm434_vm3 = vcmp.gt.f32.partialorder %v430_v13, 0.0  ;;  %v1021_v42 = vld [vmem:[%s1195_s2] ss:$0 sm:$0xff] }
  0x14   : > { %v439_v25 = vpack.c.bf16 %v436_v17, %v435_v16  ;;  %v440_v26 = vpack.c.bf16 %v438_v19, %v437_v18  ;;  %vm441_vm4 = vmpackc.low %vm1137_vm1, %vm1133_vm0 }
  0x15   : > { %587 = vmatpush.bf16.msra.mxu0 %v981_v4  ;;  %vm442_vm5 = vmpackc.low %vm434_vm3, %vm1141_vm2 }
  0x16   : > { %601 = vmatpush.bf16.msra.mxu1 %v989_v5  ;;  %v443_v29 = vsel %vm441_vm4, %v425_v6, %v439_v25  ;;  %v444_v30 = vsel %vm442_vm5, %v426_v7, %v440_v26 }
  0x17   : > { %v481_v31 = vunpack.c.l.b16 %v443_v29  ;;  %v483_v32 = vunpack.c.l.b16 %v444_v30  ;;  %v482_v33 = vunpack.c.h.b16 %v443_v29  ;;  %v484_v34 = vunpack.c.h.b16 %v444_v30 }
  0x19   : > { %588 = vmatpush.bf16.msra.mxu0 %v980_v8  ;;  %v485_v37 = vpack.c.b16 %v483_v32, %v481_v31  ;;  %v486_v38 = vpack.c.b16 %v484_v34, %v482_v33 }
  0x1a   : > { %602 = vmatpush.bf16.msra.mxu1 %v988_v9 }
  0x1d   : > { %589 = vmatpush.bf16.msra.mxu0 %v979_v14 }
  0x1e   : > { %603 = vmatpush.bf16.msra.mxu1 %v987_v15 }
  0x21   : > { %590 = vmatpush.bf16.msra.mxu0 %v978_v23 }
  0x22   : > { %604 = vmatpush.bf16.msra.mxu1 %v986_v24 }
  0x25   : > { %591 = vmatpush.bf16.msra.mxu0 %v977_v27 }
  0x26   : > { %605 = vmatpush.bf16.msra.mxu1 %v985_v28 }
  0x29   : > { %592 = vmatpush.bf16.msra.mxu0 %v976_v35 }
  0x2a   : > { %606 = vmatpush.bf16.msra.mxu1 %v984_v36 }
  0x2c   : > { %593 = vmatmul.bf16.vlgmr.msra.gmra.mxu0 %v485_v37 }
  0x2d   : > { %607 = vmatmul.bf16.vlgmr.msra.gmra.mxu1 %v486_v38 }
  0xa9   : > { %v594_v39 = vpop.f32.mrf.mxu0 }
  0xaa   : > { %v608_v40 = vpop.f32.mrf.mxu1 }
  0xab   : > { %v609_v41 = vadd.f32 %v608_v40, %v594_v39 }
  0xad   : > { %v626_v45 = vadd.f32 %v1021_v42, %v609_v41 }
  0xaf   : > { %v640_v48 = vmul.f32 %v626_v45, %v626_v45 }
  0xb1   : > { %v596_v43 = vpop.f32.mrf.mxu0 }
  0xb2   : > { %v610_v44 = vpop.f32.mrf.mxu1 }
  0xb3   : > { %v611_v46 = vadd.f32 %v610_v44, %v596_v43 }
  0xb5   : > { %v627_v47 = vadd.f32 %v1021_v42, %v611_v46 }
  0xb7   : > { %v995_v49 = vpack.c.bf16 %v627_v47, %v626_v45  ;;  %v632_v50 = vadd.f32 %v627_v47, %v626_v45  ;;  %v641_v51 = vmul.f32 %v627_v47, %v627_v47 }
  0xb9   : > { %996 = vst [vmem:[%s397_s23] sm:$0xff] %v995_v49   ;;  %v633_v52 = vrot.slane %v632_v50, 4  ;;  %v642_v53 = vadd.f32 %v641_v51, %v640_v48 }
  0xbb   : > { %v634_v54 = vadd.f32 %v633_v52, %v632_v50  ;;  %v643_v55 = vrot.slane %v642_v53, 4 }
  0xbd   : > { %v635_v56 = vrot.slane %v634_v54, 2  ;;  %v644_v57 = vadd.f32 %v643_v55, %v642_v53 }
  0xbf   : > { %v636_v58 = vadd.f32 %v635_v56, %v634_v54  ;;  %v645_v59 = vrot.slane %v644_v57, 2 }
  0xc1   : > { %v637_v60 = vrot.slane %v636_v58, 1  ;;  %v646_v61 = vadd.f32 %v645_v59, %v644_v57 }
  0xc3   : > { %v638_v62 = vadd.f32 %v637_v60, %v636_v58  ;;  %v647_v63 = vrot.slane %v646_v61, 1 }
  0xc5   : > { %639 = vst [vmem:[%s408_s25] sm:$0x1] %v638_v62  ;;  %v648_v0 = vadd.f32 %v647_v63, %v646_v61 }
  0xc7   : > { %649 = vst [vmem:[%s418_s29] sm:$0x1] %v648_v0 }
  0xc8 PF: > { %s16_s20 = sadd.s32 1, %s1044_s20   ;;  %s1205_s18 = smov %s1040_s19 }
  0xc9   : > { %p13_p6 = scmp.ge.s32.totalorder %s16_s20, 4   ;;  %s1206_s19 = smov %s1208_s21 }
  0xcb   :  { %15 = sbr.rel (!%p13_p6) target bundleno = 2 (0x2), region = 100 }

// kernel: squeeze.8
= control target key start
LH: loop header
LB: loop body
LE: loop exit
PB: predicated region body
PF: predicated region fallthrough
CT: control target
= control target key end

     0   :  { %vm18_vm0 = vcmask 523264   ;;  %vm24_vm1 = vcmask 1048064   ;;  %s51_s0 = inlined_call_operand.vmem [shape: bf16[1,8,64], index: 0, kind: input, shape index: {}]   ;;  %s52_s1 = inlined_call_operand.vmem [shape: bf16[4,128], index: 1, kind: output, shape index: {}]  }
   0x1   :  { %v13_v0 = vld [vmem:[%s51_s0] sm:$0xf]  ;;  %s34_s0 = smov 64  }
   0x2   :  { %v14_v1 = vunpack.c.l.bf16 %v13_v0 }
   0x4   :  { %16 = vst [vmem:[#allocation1] sm:$0xff] %v14_v1 }
   0xb   :  { %v21_v2 = vld [vmem:[#allocation1 + $0x1] ss:$2 sm:$0xf]   ;;  %v17_v3 = vld [vmem:[#allocation1] ss:$2 sm:$0xf]  }
   0xc   :  { %22 = vrot.lane.b32.xlu0 %v21_v2, %s34_s0  ;;  %19 = vst.msk [vmem:[#allocation0] sm:$0xf] %vm18_vm0, %v17_v3  }
  0x7e   :  { %v23_v4 = vpop.permute.xlu0 %22  }
  0x7f   :  { %25 = vst.msk [vmem:[#allocation0] sm:$0xf] %vm24_vm1, %v23_v4  }
  0x86   :  { %v28_v5 = vld [vmem:[#allocation0] sm:$0xf] }
  0x87   :  { %v29_v6 = vpack.c.bf16 0.0, %v28_v5 }
  0x89   :  { %32 = vst [vmem:[%s52_s1] sm:$0x3] %v29_v6 }

// kernel: _lambda_.22
= control target key start
LH: loop header
LB: loop body
LE: loop exit
PB: predicated region body
PF: predicated region fallthrough
CT: control target
= control target key end

     0   :  { %s734_s1 = inlined_call_operand.vmem [shape: bf16[1,512,128], index: 1, kind: input, shape index: {}]   ;;  %s735_s0 = inlined_call_operand.vmem [shape: bf16[1,8,512], index: 0, kind: input, shape index: {}]   ;;  %s736_s2 = inlined_call_operand.vmem [shape: f32[1,128], index: 2, kind: input, shape index: {}]   ;;  %s737_s3 = inlined_call_operand.vmem [shape: bf16[1,8,128], index: 3, kind: output, shape index: {0}]   ;;  %s738_s4 = inlined_call_operand.vmem [shape: f32[1,1,1,128], index: 4, kind: output, shape index: {1}]   ;;  %s739_s5 = inlined_call_operand.vmem [shape: f32[1,1,1,128], index: 5, kind: output, shape index: {2}]  }
   0x1   :  { %v540_v0 = vld [vmem:[%s734_s1 + $0x38] sm:$0xff]  ;;  %v539_v4 = vld [vmem:[%s734_s1 + $0x30] sm:$0xff]  ;;  %v538_v8 = vld [vmem:[%s734_s1 + $0x28] sm:$0xff] }
   0x2   :  { %v548_v1 = vld [vmem:[%s734_s1 + $0x78] sm:$0xff]  ;;  %313 = vmatpush.bf16.msra.mxu0 %v540_v0  ;;  %v547_v5 = vld [vmem:[%s734_s1 + $0x70] sm:$0xff]  ;;  %v546_v9 = vld [vmem:[%s734_s1 + $0x68] sm:$0xff] }
   0x3   :  { %v556_v2 = vld [vmem:[%s734_s1 + $0xb8] sm:$0xff]  ;;  %326 = vmatpush.bf16.msra.mxu1 %v548_v1  ;;  %v555_v6 = vld [vmem:[%s734_s1 + $0xb0] sm:$0xff]  ;;  %v554_v10 = vld [vmem:[%s734_s1 + $0xa8] sm:$0xff] }
   0x4   :  { %v564_v3 = vld [vmem:[%s734_s1 + $0xf8] sm:$0xff]  ;;  %339 = vmatpush.bf16.msra.mxu2 %v556_v2  ;;  %v563_v7 = vld [vmem:[%s734_s1 + $0xf0] sm:$0xff]  ;;  %v562_v11 = vld [vmem:[%s734_s1 + $0xe8] sm:$0xff] }
   0x5   :  { %352 = vmatpush.bf16.msra.mxu3 %v564_v3  ;;  %v537_v12 = vld [vmem:[%s734_s1 + $0x20] sm:$0xff]  ;;  %v23_v19 = vld [vmem:[%s735_s0 + $0x8] sm:$0xff]  ;;  %v536_v22 = vld [vmem:[%s734_s1 + $0x18] sm:$0xff] }
   0x6   :  { %314 = vmatpush.bf16.msra.mxu0 %v539_v4  ;;  %v545_v13 = vld [vmem:[%s734_s1 + $0x60] sm:$0xff]  ;;  %v26_v20 = vunpack.c.l.bf16 %v23_v19  ;;  %v27_v21 = vunpack.c.h.bf16 %v23_v19  ;;  %v544_v23 = vld [vmem:[%s734_s1 + $0x58] sm:$0xff]  ;;  %v535_v34 = vld [vmem:[%s734_s1 + $0x10] sm:$0xff] }
   0x7   :  { %327 = vmatpush.bf16.msra.mxu1 %v547_v5  ;;  %v22_v14 = vld [vmem:[%s735_s0] sm:$0xff]  ;;  %v552_v26 = vld [vmem:[%s734_s1 + $0x98] sm:$0xff]  ;;  %v543_v35 = vld [vmem:[%s734_s1 + $0x50] sm:$0xff] }
   0x8   :  { %340 = vmatpush.bf16.msra.mxu2 %v555_v6  ;;  %v553_v15 = vld [vmem:[%s734_s1 + $0xa0] sm:$0xff]  ;;  %v24_v17 = vunpack.c.l.bf16 %v22_v14  ;;  %v25_v18 = vunpack.c.h.bf16 %v22_v14  ;;  %v560_v27 = vld [vmem:[%s734_s1 + $0xd8] sm:$0xff]  ;;  %v34_v28 = vmul.f32 0.20019531, %v26_v20  ;;  %v35_v29 = vmul.f32 0.20019531, %v27_v21  ;;  %v551_v37 = vld [vmem:[%s734_s1 + $0x90] sm:$0xff] }
   0x9   :  { %353 = vmatpush.bf16.msra.mxu3 %v563_v7  ;;  %v561_v16 = vld [vmem:[%s734_s1 + $0xe0] sm:$0xff]  ;;  %vm670_vm2 = vcmp.gt.f32.partialorder %v26_v20, 0.0  ;;  %vm674_vm3 = vcmp.gt.f32.partialorder %v27_v21, 0.0  ;;  %v559_v38 = vld [vmem:[%s734_s1 + $0xd0] sm:$0xff]  ;;  %v534_v40 = vld [vmem:[%s734_s1 + $0x8] sm:$0xff] }
   0xa   :  { %315 = vmatpush.bf16.msra.mxu0 %v538_v8  ;;  %v32_v24 = vmul.f32 0.20019531, %v24_v17  ;;  %v33_v25 = vmul.f32 0.20019531, %v25_v18  ;;  %vm662_vm0 = vcmp.gt.f32.partialorder %v24_v17, 0.0  ;;  %vm666_vm1 = vcmp.gt.f32.partialorder %v25_v18, 0.0  ;;  %vm39_vm5 = vmpackc.low %vm674_vm3, %vm670_vm2  ;;  %v542_v41 = vld [vmem:[%s734_s1 + $0x48] sm:$0xff]  ;;  %v533_v48 = vld [vmem:[%s734_s1] sm:$0xff] }
   0xb   :  { %328 = vmatpush.bf16.msra.mxu1 %v546_v9  ;;  %vm38_vm4 = vmpackc.low %vm666_vm1, %vm662_vm0  ;;  %v37_v39 = vpack.c.bf16 %v35_v29, %v34_v28  ;;  %v550_v43 = vld [vmem:[%s734_s1 + $0x88] sm:$0xff]  ;;  %v541_v49 = vld [vmem:[%s734_s1 + $0x40] sm:$0xff] }
   0xc   :  { %341 = vmatpush.bf16.msra.mxu2 %v554_v10  ;;  %v36_v36 = vpack.c.bf16 %v33_v25, %v32_v24  ;;  %v558_v44 = vld [vmem:[%s734_s1 + $0xc8] sm:$0xff]  ;;  %v549_v52 = vld [vmem:[%s734_s1 + $0x80] sm:$0xff] }
   0xd   :  { %354 = vmatpush.bf16.msra.mxu3 %v562_v11  ;;  %v41_v45 = vsel %vm39_vm5, %v23_v19, %v37_v39  ;;  %v557_v53 = vld [vmem:[%s734_s1 + $0xc0] sm:$0xff] }
   0xe   :  { %316 = vmatpush.bf16.msra.mxu0 %v537_v12  ;;  %v40_v42 = vsel %vm38_vm4, %v22_v14, %v36_v36  ;;  %v111_v50 = vunpack.c.l.b16 %v41_v45  ;;  %v112_v51 = vunpack.c.h.b16 %v41_v45  ;;  %v565_v0 = vld [vmem:[%s736_s2] ss:$0 sm:$0xff] }
   0xf   :  { %329 = vmatpush.bf16.msra.mxu1 %v545_v13  ;;  %v109_v46 = vunpack.c.l.b16 %v40_v42  ;;  %v110_v47 = vunpack.c.h.b16 %v40_v42 }
  0x10   :  { %342 = vmatpush.bf16.msra.mxu2 %v553_v15  ;;  %v115_v56 = vpack.c.b16 %v111_v50, %v111_v50  ;;  %v116_v57 = vpack.c.b16 %v112_v51, %v112_v51 }
  0x11   :  { %355 = vmatpush.bf16.msra.mxu3 %v561_v16  ;;  %v113_v54 = vpack.c.b16 %v109_v46, %v109_v46  ;;  %v114_v55 = vpack.c.b16 %v110_v47, %v110_v47 }
  0x12   :  { %317 = vmatpush.bf16.msra.mxu0 %v536_v22 }
  0x13   :  { %330 = vmatpush.bf16.msra.mxu1 %v544_v23 }
  0x14   :  { %343 = vmatpush.bf16.msra.mxu2 %v552_v26 }
  0x15   :  { %356 = vmatpush.bf16.msra.mxu3 %v560_v27 }
  0x16   :  { %318 = vmatpush.bf16.msra.mxu0 %v535_v34 }
  0x17   :  { %331 = vmatpush.bf16.msra.mxu1 %v543_v35 }
  0x18   :  { %344 = vmatpush.bf16.msra.mxu2 %v551_v37 }
  0x19   :  { %357 = vmatpush.bf16.msra.mxu3 %v559_v38 }
  0x1a   :  { %319 = vmatpush.bf16.msra.mxu0 %v534_v40 }
  0x1b   :  { %332 = vmatpush.bf16.msra.mxu1 %v542_v41 }
  0x1c   :  { %345 = vmatpush.bf16.msra.mxu2 %v550_v43 }
  0x1d   :  { %358 = vmatpush.bf16.msra.mxu3 %v558_v44 }
  0x1e   :  { %320 = vmatpush.bf16.msra.mxu0 %v533_v48 }
  0x1f   :  { %333 = vmatpush.bf16.msra.mxu1 %v541_v49 }
  0x20   :  { %346 = vmatpush.bf16.msra.mxu2 %v549_v52 }
  0x21   :  { %359 = vmatpush.bf16.msra.mxu3 %v557_v53  ;;  %321 = vmatmul.bf16.vlgmr.msra.gmra.mxu0 %v113_v54 }
  0x22   :  { %334 = vmatmul.bf16.vlgmr.msra.gmra.mxu1 %v114_v55 }
  0x23   :  { %347 = vmatmul.bf16.vlgmr.msra.gmra.mxu2 %v115_v56 }
  0x24   :  { %360 = vmatmul.bf16.vlgmr.msra.gmra.mxu3 %v116_v57 }
  0x9e   :  { %v322_v58 = vpop.f32.mrf.mxu0 }
  0x9f   :  { %v335_v59 = vpop.f32.mrf.mxu1 }
  0xa0   :  { %v336_v60 = vadd.f32 %v335_v59, %v322_v58 }
  0xa6   :  { %v348_v61 = vpop.f32.mrf.mxu2  ;;  %v324_v1 = vpop.f32.mrf.mxu0 }
  0xa7   :  { %v361_v62 = vpop.f32.mrf.mxu3  ;;  %v349_v63 = vadd.f32 %v348_v61, %v336_v60  ;;  %v337_v2 = vpop.f32.mrf.mxu1 }
  0xa9   :  { %v362_v3 = vadd.f32 %v361_v62, %v349_v63 }
  0xab   :  { %v375_v4 = vadd.f32 %v565_v0, %v362_v3 }
  0xad   :  { %v376_v5 = vpack.c.bf16 %v375_v4, %v375_v4  ;;  %v378_v6 = vrot.slane %v375_v4, 4  ;;  %v385_v7 = vmul.f32 %v375_v4, %v375_v4 }
  0xae   :  { %v350_v8 = vpop.f32.mrf.mxu2 }
  0xaf   :  { %v363_v9 = vpop.f32.mrf.mxu3  ;;  %377 = vst [vmem:[%s737_s3] sm:$0xf] %v376_v5  ;;  %v379_v10 = vadd.f32 %v378_v6, %v375_v4  ;;  %v386_v11 = vrot.slane %v385_v7, 4 }
  0xb1   :  { %v380_v12 = vrot.slane %v379_v10, 2  ;;  %v387_v13 = vadd.f32 %v386_v11, %v385_v7 }
  0xb3   :  { %v381_v14 = vadd.f32 %v380_v12, %v379_v10  ;;  %v388_v15 = vrot.slane %v387_v13, 2 }
  0xb5   :  { %v382_v16 = vrot.slane %v381_v14, 1  ;;  %v389_v17 = vadd.f32 %v388_v15, %v387_v13 }
  0xb7   :  { %v383_v18 = vadd.f32 %v382_v16, %v381_v14  ;;  %v390_v19 = vrot.slane %v389_v17, 1 }
  0xb9   :  { %384 = vst [vmem:[%s738_s4] sm:$0x1] %v383_v18  ;;  %v391_v20 = vadd.f32 %v390_v19, %v389_v17 }
  0xbb   :  { %392 = vst [vmem:[%s739_s5] sm:$0x1] %v391_v20 }

// kernel: _lambda_.25
= control target key start
LH: loop header
LB: loop body
LE: loop exit
PB: predicated region body
PF: predicated region fallthrough
CT: control target
= control target key end

     0   :  { %s997_s18 = smov 0   ;;  %s999_s19 = smov 0   ;;  %s1067_s0 = inlined_call_operand.vmem [shape: bf16[4,8,256], index: 0, kind: input, shape index: {}]   ;;  %s1068_s1 = inlined_call_operand.vmem [shape: bf16[4,256,128], index: 1, kind: input, shape index: {}]   ;;  %s1069_s2 = inlined_call_operand.vmem [shape: f32[1,128], index: 2, kind: input, shape index: {}]   ;;  %s1070_s3 = inlined_call_operand.vmem [shape: bf16[4,8,128], index: 3, kind: output, shape index: {0}]   ;;  %s1071_s4 = inlined_call_operand.vmem [shape: f32[4,1,1,128], index: 4, kind: output, shape index: {1}]   ;;  %s1072_s5 = inlined_call_operand.vmem [shape: f32[4,1,1,128], index: 5, kind: output, shape index: {2}]  }
   0x1   :  { %s1001_s20 = smov 0  }
   0x2 LB: > { %s42_s21 = sadd.s32 1, %s961_s19  ;;  %p828_p0 = scmp.ge.s32.totalorder %s965_s20, 1  ;;  %s965_s20 = sphi %s1001_s20, %s16_s20   ;;  %s961_s19 = sphi %s999_s19, %s1074_s19   ;;  %s957_s18 = sphi %s997_s18, %s1073_s18  }
   0x3   : > { %p44_p1 = scmp.ge.s32.totalorder %s42_s21, 4  ;;  %p273_p2 = scmp.lt.s32.totalorder %s965_s20, 5 }
   0x5   : > { %s1076_s21 = smov (%p44_p1, %s42_s21), 0  ;;  %p274_p3 = pnand %p828_p0, %p273_p2 }
   0x6   : > { %p348_p4 = scmp.lt.s32.totalorder (!%p274_p3), %s957_s18, 3 }
   0x7   : > { %277 = sbr.rel (%p274_p3) target bundleno = 193 (0xc1), region = 32 }
   0xc   : > { %s1078_s18 = smov (!%p348_p4, %s957_s18), 3  ;;  %v942_v23 = vld [vmem:[%s1069_s2] ss:$0 sm:$0xff] }
   0xd   : > { %s901_s22 = sshll.u32 %s1078_s18, 7  ;;  %s900_s26 = sshll.u32 %s1078_s18, 3 }
   0xe   : > { %s1021_s25 = scalar_lea.vmem %s1068_s1, %s901_s22  ;;  %s359_s29 = scalar_lea.vmem %s1067_s0, %s900_s26 }
   0xf   : > { %v909_v0 = vld [vmem:[%s1021_s25 + $0x38] sm:$0xff]  ;;  %v908_v2 = vld [vmem:[%s1021_s25 + $0x30] sm:$0xff]  ;;  %v907_v4 = vld [vmem:[%s1021_s25 + $0x28] sm:$0xff]  ;;  %s833_s7 = sshll.u32 %s1078_s18, 2  ;;  %s395_s13 = scalar_lea.vmem %s1071_s4, %s1078_s18 }
  0x10   : > { %v917_v1 = vld [vmem:[%s1021_s25 + $0x78] sm:$0xff]  ;;  %546 = vmatpush.bf16.msra.mxu0 %v909_v0  ;;  %v916_v3 = vld [vmem:[%s1021_s25 + $0x70] sm:$0xff]  ;;  %v915_v5 = vld [vmem:[%s1021_s25 + $0x68] sm:$0xff]  ;;  %s386_s10 = scalar_lea.vmem %s1070_s3, %s833_s7  ;;  %s404_s16 = scalar_lea.vmem %s1072_s5, %s1078_s18 }
  0x11   : > { %559 = vmatpush.bf16.msra.mxu1 %v917_v1  ;;  %v906_v6 = vld [vmem:[%s1021_s25 + $0x20] sm:$0xff]  ;;  %v905_v8 = vld [vmem:[%s1021_s25 + $0x18] sm:$0xff]  ;;  %v904_v10 = vld [vmem:[%s1021_s25 + $0x10] sm:$0xff] }
  0x12   : > { %v914_v7 = vld [vmem:[%s1021_s25 + $0x60] sm:$0xff]  ;;  %v913_v9 = vld [vmem:[%s1021_s25 + $0x58] sm:$0xff]  ;;  %v912_v11 = vld [vmem:[%s1021_s25 + $0x50] sm:$0xff] }
  0x13   : > { %v410_v12 = vld [vmem:[%s359_s29] sm:$0xff]  ;;  %v903_v15 = vld [vmem:[%s1021_s25 + $0x8] sm:$0xff] }
  0x14   : > { %547 = vmatpush.bf16.msra.mxu0 %v908_v2  ;;  %v411_v13 = vunpack.c.l.bf16 %v410_v12  ;;  %v412_v14 = vunpack.c.h.bf16 %v410_v12  ;;  %v911_v16 = vld [vmem:[%s1021_s25 + $0x48] sm:$0xff]  ;;  %v902_v19 = vld [vmem:[%s1021_s25] sm:$0xff] }
  0x15   : > { %560 = vmatpush.bf16.msra.mxu1 %v916_v3  ;;  %v910_v20 = vld [vmem:[%s1021_s25 + $0x40] sm:$0xff] }
  0x16   : > { %v413_v17 = vmax.f32 %v411_v13, 0.0  ;;  %v414_v18 = vmax.f32 %v412_v14, 0.0 }
  0x18   : > { %548 = vmatpush.bf16.msra.mxu0 %v907_v4  ;;  %v415_v21 = vpack.c.bf16 %v413_v17, %v413_v17  ;;  %v416_v22 = vpack.c.bf16 %v414_v18, %v414_v18 }
  0x19   : > { %561 = vmatpush.bf16.msra.mxu1 %v915_v5 }
  0x1c   : > { %549 = vmatpush.bf16.msra.mxu0 %v906_v6 }
  0x1d   : > { %562 = vmatpush.bf16.msra.mxu1 %v914_v7 }
  0x20   : > { %550 = vmatpush.bf16.msra.mxu0 %v905_v8 }
  0x21   : > { %563 = vmatpush.bf16.msra.mxu1 %v913_v9 }
  0x24   : > { %551 = vmatpush.bf16.msra.mxu0 %v904_v10 }
  0x25   : > { %564 = vmatpush.bf16.msra.mxu1 %v912_v11 }
  0x28   : > { %552 = vmatpush.bf16.msra.mxu0 %v903_v15 }
  0x29   : > { %565 = vmatpush.bf16.msra.mxu1 %v911_v16 }
  0x2c   : > { %553 = vmatpush.bf16.msra.mxu0 %v902_v19 }
  0x2d   : > { %566 = vmatpush.bf16.msra.mxu1 %v910_v20 }
  0x2f   : > { %554 = vmatmul.bf16.vlgmr.msra.gmra.mxu0 %v415_v21 }
  0x30   : > { %567 = vmatmul.bf16.vlgmr.msra.gmra.mxu1 %v416_v22 }
  0xac   : > { %v555_v24 = vpop.f32.mrf.mxu0 }
  0xad   : > { %v568_v25 = vpop.f32.mrf.mxu1 }
  0xae   : > { %v569_v26 = vadd.f32 %v568_v25, %v555_v24 }
  0xb0   : > { %v582_v27 = vadd.f32 %v942_v23, %v569_v26 }
  0xb2   : > { %v583_v28 = vpack.c.bf16 %v582_v27, %v582_v27  ;;  %v585_v29 = vrot.slane %v582_v27, 4  ;;  %v592_v30 = vmul.f32 %v582_v27, %v582_v27 }
  0xb4   : > { %584 = vst [vmem:[%s386_s10] sm:$0xf] %v583_v28  ;;  %v586_v31 = vadd.f32 %v585_v29, %v582_v27  ;;  %v593_v32 = vrot.slane %v592_v30, 4  ;;  %v557_v33 = vpop.f32.mrf.mxu0 }
  0xb5   : > { %v570_v34 = vpop.f32.mrf.mxu1 }
  0xb6   : > { %v587_v35 = vrot.slane %v586_v31, 2  ;;  %v594_v36 = vadd.f32 %v593_v32, %v592_v30 }
  0xb8   : > { %v588_v37 = vadd.f32 %v587_v35, %v586_v31  ;;  %v595_v38 = vrot.slane %v594_v36, 2 }
  0xba   : > { %v589_v39 = vrot.slane %v588_v37, 1  ;;  %v596_v40 = vadd.f32 %v595_v38, %v594_v36 }
  0xbc   : > { %v590_v41 = vadd.f32 %v589_v39, %v588_v37  ;;  %v597_v42 = vrot.slane %v596_v40, 1 }
  0xbe   : > { %591 = vst [vmem:[%s395_s13] sm:$0x1] %v590_v41  ;;  %v598_v43 = vadd.f32 %v597_v42, %v596_v40 }
  0xc0   : > { %599 = vst [vmem:[%s404_s16] sm:$0x1] %v598_v43 }
  0xc1 PF: > { %s16_s20 = sadd.s32 1, %s965_s20   ;;  %s1073_s18 = smov %s961_s19 }
  0xc2   : > { %p13_p5 = scmp.ge.s32.totalorder %s16_s20, 6   ;;  %s1074_s19 = smov %s1076_s21 }
  0xc4   :  { %15 = sbr.rel (!%p13_p5) target bundleno = 2 (0x2), region = 100 }

// kernel: _lambda_.24
= control target key start
LH: loop header
LB: loop body
LE: loop exit
PB: predicated region body
PF: predicated region fallthrough
CT: control target
= control target key end

     0   :  { %s1320_s1 = inlined_call_operand.vmem [shape: bf16[1,1024,128], index: 1, kind: input, shape index: {}]   ;;  %s1321_s0 = inlined_call_operand.vmem [shape: bf16[1,8,1024], index: 0, kind: input, shape index: {}]   ;;  %s1322_s2 = inlined_call_operand.vmem [shape: f32[1,128], index: 2, kind: input, shape index: {}]   ;;  %s1323_s3 = inlined_call_operand.vmem [shape: bf16[1,8,128], index: 3, kind: output, shape index: {}]  }
   0x1   :  { %v984_v0 = vld [vmem:[%s1320_s1 + $0x38] sm:$0xff]  ;;  %v983_v4 = vld [vmem:[%s1320_s1 + $0x30] sm:$0xff]  ;;  %v982_v8 = vld [vmem:[%s1320_s1 + $0x28] sm:$0xff] }
   0x2   :  { %v992_v1 = vld [vmem:[%s1320_s1 + $0x78] sm:$0xff]  ;;  %600 = vmatpush.bf16.msra.mxu0 %v984_v0  ;;  %v991_v5 = vld [vmem:[%s1320_s1 + $0x70] sm:$0xff]  ;;  %v990_v9 = vld [vmem:[%s1320_s1 + $0x68] sm:$0xff] }
   0x3   :  { %v1000_v2 = vld [vmem:[%s1320_s1 + $0xb8] sm:$0xff]  ;;  %613 = vmatpush.bf16.msra.mxu1 %v992_v1  ;;  %v999_v6 = vld [vmem:[%s1320_s1 + $0xb0] sm:$0xff]  ;;  %v998_v10 = vld [vmem:[%s1320_s1 + $0xa8] sm:$0xff] }
   0x4   :  { %v1008_v3 = vld [vmem:[%s1320_s1 + $0xf8] sm:$0xff]  ;;  %626 = vmatpush.bf16.msra.mxu2 %v1000_v2  ;;  %v1007_v7 = vld [vmem:[%s1320_s1 + $0xf0] sm:$0xff]  ;;  %v1006_v11 = vld [vmem:[%s1320_s1 + $0xe8] sm:$0xff] }
   0x5   :  { %639 = vmatpush.bf16.msra.mxu3 %v1008_v3  ;;  %v981_v12 = vld [vmem:[%s1320_s1 + $0x20] sm:$0xff]  ;;  %v20_v16 = vld [vmem:[%s1321_s0 + $0x8] sm:$0xff]  ;;  %v980_v17 = vld [vmem:[%s1320_s1 + $0x18] sm:$0xff] }
   0x6   :  { %601 = vmatpush.bf16.msra.mxu0 %v983_v4  ;;  %v989_v13 = vld [vmem:[%s1320_s1 + $0x60] sm:$0xff]  ;;  %v988_v18 = vld [vmem:[%s1320_s1 + $0x58] sm:$0xff]  ;;  %v25_v19 = vunpack.c.l.bf16 %v20_v16  ;;  %v26_v20 = vunpack.c.h.bf16 %v20_v16  ;;  %v979_v30 = vld [vmem:[%s1320_s1 + $0x10] sm:$0xff] }
   0x7   :  { %614 = vmatpush.bf16.msra.mxu1 %v991_v5  ;;  %v997_v14 = vld [vmem:[%s1320_s1 + $0xa0] sm:$0xff]  ;;  %v996_v21 = vld [vmem:[%s1320_s1 + $0x98] sm:$0xff]  ;;  %v987_v31 = vld [vmem:[%s1320_s1 + $0x50] sm:$0xff] }
   0x8   :  { %627 = vmatpush.bf16.msra.mxu2 %v999_v6  ;;  %v1005_v15 = vld [vmem:[%s1320_s1 + $0xe0] sm:$0xff]  ;;  %v1004_v22 = vld [vmem:[%s1320_s1 + $0xd8] sm:$0xff]  ;;  %v41_v24 = vmul.f32 0.20019531, %v25_v19  ;;  %v42_v25 = vmul.f32 0.20019531, %v26_v20  ;;  %vm1128_vm0 = vcmp.gt.f32.partialorder %v25_v19, 0.0  ;;  %vm1132_vm1 = vcmp.gt.f32.partialorder %v26_v20, 0.0 }
   0x9   :  { %640 = vmatpush.bf16.msra.mxu3 %v1007_v7  ;;  %v19_v23 = vld [vmem:[%s1321_s0] sm:$0xff]  ;;  %v995_v33 = vld [vmem:[%s1320_s1 + $0x90] sm:$0xff]  ;;  %vm52_vm4 = vmpackc.low %vm1132_vm1, %vm1128_vm0 }
   0xa   :  { %602 = vmatpush.bf16.msra.mxu0 %v982_v8  ;;  %v23_v28 = vunpack.c.l.bf16 %v19_v23  ;;  %v24_v29 = vunpack.c.h.bf16 %v19_v23  ;;  %v48_v32 = vpack.c.bf16 %v42_v25, %v41_v24  ;;  %v1003_v34 = vld [vmem:[%s1320_s1 + $0xd0] sm:$0xff]  ;;  %v978_v40 = vld [vmem:[%s1320_s1 + $0x8] sm:$0xff]  ;;  %v977_v46 = vld [vmem:[%s1320_s1] sm:$0xff] }
   0xb   :  { %615 = vmatpush.bf16.msra.mxu1 %v990_v9  ;;  %v986_v41 = vld [vmem:[%s1320_s1 + $0x48] sm:$0xff]  ;;  %v985_v47 = vld [vmem:[%s1320_s1 + $0x40] sm:$0xff]  ;;  %v1016_v54 = vld [vmem:[%s1320_s1 + $0x138] sm:$0xff] }
   0xc   :  { %628 = vmatpush.bf16.msra.mxu2 %v998_v10  ;;  %vm1148_vm2 = vcmp.gt.f32.partialorder %v23_v28, 0.0  ;;  %vm1152_vm3 = vcmp.gt.f32.partialorder %v24_v29, 0.0  ;;  %v39_v37 = vmul.f32 0.20019531, %v23_v28  ;;  %v40_v38 = vmul.f32 0.20019531, %v24_v29  ;;  %v994_v42 = vld [vmem:[%s1320_s1 + $0x88] sm:$0xff]  ;;  %v993_v50 = vld [vmem:[%s1320_s1 + $0x80] sm:$0xff] }
   0xd   :  { %641 = vmatpush.bf16.msra.mxu3 %v1006_v11  ;;  %vm51_vm5 = vmpackc.low %vm1152_vm3, %vm1148_vm2  ;;  %v1002_v43 = vld [vmem:[%s1320_s1 + $0xc8] sm:$0xff]  ;;  %v56_v44 = vsel %vm52_vm4, %v20_v16, %v48_v32  ;;  %v1001_v51 = vld [vmem:[%s1320_s1 + $0xc0] sm:$0xff] }
   0xe   :  { %603 = vmatpush.bf16.msra.mxu0 %v981_v12  ;;  %v47_v39 = vpack.c.bf16 %v40_v38, %v39_v37  ;;  %v194_v48 = vunpack.c.l.b16 %v56_v44  ;;  %v195_v49 = vunpack.c.h.b16 %v56_v44  ;;  %v1024_v55 = vld [vmem:[%s1320_s1 + $0x178] sm:$0xff]  ;;  %v1015_v62 = vld [vmem:[%s1320_s1 + $0x130] sm:$0xff]  ;;  %v1014_v2 = vld [vmem:[%s1320_s1 + $0x128] sm:$0xff] }
   0xf   :  { %616 = vmatpush.bf16.msra.mxu1 %v989_v13  ;;  %v1032_v56 = vld [vmem:[%s1320_s1 + $0x1b8] sm:$0xff]  ;;  %v1023_v63 = vld [vmem:[%s1320_s1 + $0x170] sm:$0xff]  ;;  %v1022_v3 = vld [vmem:[%s1320_s1 + $0x168] sm:$0xff] }
  0x10   :  { %629 = vmatpush.bf16.msra.mxu2 %v997_v14  ;;  %v55_v45 = vsel %vm51_vm5, %v19_v23, %v47_v39  ;;  %v1040_v57 = vld [vmem:[%s1320_s1 + $0x1f8] sm:$0xff]  ;;  %v202_v58 = vpack.c.b16 %v194_v48, %v194_v48  ;;  %v203_v59 = vpack.c.b16 %v195_v49, %v195_v49  ;;  %v1031_v0 = vld [vmem:[%s1320_s1 + $0x1b0] sm:$0xff]  ;;  %v1030_v4 = vld [vmem:[%s1320_s1 + $0x1a8] sm:$0xff] }
  0x11   :  { %642 = vmatpush.bf16.msra.mxu3 %v1005_v15  ;;  %v192_v52 = vunpack.c.l.b16 %v55_v45  ;;  %v193_v53 = vunpack.c.h.b16 %v55_v45  ;;  %v1039_v1 = vld [vmem:[%s1320_s1 + $0x1f0] sm:$0xff]  ;;  %v1038_v5 = vld [vmem:[%s1320_s1 + $0x1e8] sm:$0xff]  ;;  %v22_v7 = vld [vmem:[%s1321_s0 + $0x18] sm:$0xff] }
  0x12   :  { %604 = vmatpush.bf16.msra.mxu0 %v980_v17  ;;  %v21_v6 = vld [vmem:[%s1321_s0 + $0x10] sm:$0xff]  ;;  %v1013_v8 = vld [vmem:[%s1320_s1 + $0x120] sm:$0xff]  ;;  %v29_v14 = vunpack.c.l.bf16 %v22_v7  ;;  %v30_v15 = vunpack.c.h.bf16 %v22_v7  ;;  %v1012_v16 = vld [vmem:[%s1320_s1 + $0x118] sm:$0xff] }
  0x13   :  { %617 = vmatpush.bf16.msra.mxu1 %v988_v18  ;;  %v200_v60 = vpack.c.b16 %v192_v52, %v192_v52  ;;  %v201_v61 = vpack.c.b16 %v193_v53, %v193_v53  ;;  %v1021_v9 = vld [vmem:[%s1320_s1 + $0x160] sm:$0xff]  ;;  %v27_v10 = vunpack.c.l.bf16 %v21_v6  ;;  %v28_v11 = vunpack.c.h.bf16 %v21_v6  ;;  %v1020_v17 = vld [vmem:[%s1320_s1 + $0x158] sm:$0xff]  ;;  %v1011_v28 = vld [vmem:[%s1320_s1 + $0x110] sm:$0xff] }
  0x14   :  { %630 = vmatpush.bf16.msra.mxu2 %v996_v21  ;;  %v1029_v12 = vld [vmem:[%s1320_s1 + $0x1a0] sm:$0xff]  ;;  %v1028_v20 = vld [vmem:[%s1320_s1 + $0x198] sm:$0xff]  ;;  %v46_v23 = vmul.f32 0.20019531, %v30_v15  ;;  %vm1262_vm8 = vcmp.gt.f32.partialorder %v29_v14, 0.0  ;;  %vm1266_vm9 = vcmp.gt.f32.partialorder %v30_v15, 0.0  ;;  %v1019_v29 = vld [vmem:[%s1320_s1 + $0x150] sm:$0xff] }
  0x15   :  { %643 = vmatpush.bf16.msra.mxu3 %v1004_v22  ;;  %v1037_v13 = vld [vmem:[%s1320_s1 + $0x1e0] sm:$0xff]  ;;  %v43_v18 = vmul.f32 0.20019531, %v27_v10  ;;  %v44_v19 = vmul.f32 0.20019531, %v28_v11  ;;  %v1036_v21 = vld [vmem:[%s1320_s1 + $0x1d8] sm:$0xff]  ;;  %v45_v22 = vmul.f32 0.20019531, %v29_v14  ;;  %vm1254_vm6 = vcmp.gt.f32.partialorder %v27_v10, 0.0  ;;  %vm54_vm11 = vmpackc.low %vm1266_vm9, %vm1262_vm8 }
  0x16   :  { %605 = vmatpush.bf16.msra.mxu0 %v979_v30  ;;  %vm1258_vm7 = vcmp.gt.f32.partialorder %v28_v11, 0.0  ;;  %v1035_v32 = vld [vmem:[%s1320_s1 + $0x1d0] sm:$0xff]  ;;  %v1018_v35 = vld [vmem:[%s1320_s1 + $0x148] sm:$0xff] }
  0x17   :  { %618 = vmatpush.bf16.msra.mxu1 %v987_v31  ;;  %v49_v30 = vpack.c.bf16 %v44_v19, %v43_v18  ;;  %v1027_v31 = vld [vmem:[%s1320_s1 + $0x190] sm:$0xff]  ;;  %vm53_vm10 = vmpackc.low %vm1258_vm7, %vm1254_vm6  ;;  %v1026_v37 = vld [vmem:[%s1320_s1 + $0x188] sm:$0xff] }
  0x18   :  { %631 = vmatpush.bf16.msra.mxu2 %v995_v33  ;;  %v50_v33 = vpack.c.bf16 %v46_v23, %v45_v22  ;;  %v1034_v38 = vld [vmem:[%s1320_s1 + $0x1c8] sm:$0xff] }
  0x19   :  { %644 = vmatpush.bf16.msra.mxu3 %v1003_v34  ;;  %v1010_v34 = vld [vmem:[%s1320_s1 + $0x108] sm:$0xff]  ;;  %v57_v36 = vsel %vm53_vm10, %v21_v6, %v49_v30  ;;  %v1041_v6 = vld [vmem:[%s1322_s2] ss:$0 sm:$0xff] }
  0x1a   :  { %606 = vmatpush.bf16.msra.mxu0 %v978_v40  ;;  %v58_v39 = vsel %vm54_vm11, %v22_v7, %v50_v33  ;;  %v196_v40 = vunpack.c.l.b16 %v57_v36 }
  0x1b   :  { %619 = vmatpush.bf16.msra.mxu1 %v986_v41  ;;  %v197_v41 = vunpack.c.h.b16 %v57_v36  ;;  %v198_v44 = vunpack.c.l.b16 %v58_v39  ;;  %v199_v45 = vunpack.c.h.b16 %v58_v39 }
  0x1c   :  { %632 = vmatpush.bf16.msra.mxu2 %v994_v42  ;;  %v1009_v42 = vld [vmem:[%s1320_s1 + $0x100] sm:$0xff]  ;;  %v204_v48 = vpack.c.b16 %v196_v40, %v196_v40 }
  0x1d   :  { %645 = vmatpush.bf16.msra.mxu3 %v1002_v43  ;;  %v1017_v43 = vld [vmem:[%s1320_s1 + $0x140] sm:$0xff]  ;;  %v205_v49 = vpack.c.b16 %v197_v41, %v197_v41 }
  0x1e   :  { %607 = vmatpush.bf16.msra.mxu0 %v977_v46  ;;  %v1025_v46 = vld [vmem:[%s1320_s1 + $0x180] sm:$0xff] }
  0x1f   :  { %620 = vmatpush.bf16.msra.mxu1 %v985_v47  ;;  %v1033_v47 = vld [vmem:[%s1320_s1 + $0x1c0] sm:$0xff] }
  0x20   :  { %633 = vmatpush.bf16.msra.mxu2 %v993_v50  ;;  %v206_v50 = vpack.c.b16 %v198_v44, %v198_v44 }
  0x21   :  { %646 = vmatpush.bf16.msra.mxu3 %v1001_v51  ;;  %608 = vmatmul.bf16.vlgmr.msra.gmra.mxu0 %v200_v60  ;;  %v207_v51 = vpack.c.b16 %v199_v45, %v199_v45 }
  0x22   :  { %652 = vmatpush.bf16.msrb.mxu0 %v1016_v54  ;;  %621 = vmatmul.bf16.vlgmr.msra.gmra.mxu1 %v201_v61 }
  0x23   :  { %665 = vmatpush.bf16.msrb.mxu1 %v1024_v55  ;;  %634 = vmatmul.bf16.vlgmr.msra.gmra.mxu2 %v202_v58 }
  0x24   :  { %678 = vmatpush.bf16.msrb.mxu2 %v1032_v56  ;;  %647 = vmatmul.bf16.vlgmr.msra.gmra.mxu3 %v203_v59 }
  0x25   :  { %691 = vmatpush.bf16.msrb.mxu3 %v1040_v57 }
  0x26   :  { %653 = vmatpush.bf16.msrb.mxu0 %v1015_v62 }
  0x27   :  { %666 = vmatpush.bf16.msrb.mxu1 %v1023_v63 }
  0x28   :  { %679 = vmatpush.bf16.msrb.mxu2 %v1031_v0 }
  0x29   :  { %692 = vmatpush.bf16.msrb.mxu3 %v1039_v1 }
  0x2a   :  { %654 = vmatpush.bf16.msrb.mxu0 %v1014_v2 }
  0x2b   :  { %667 = vmatpush.bf16.msrb.mxu1 %v1022_v3 }
  0x2c   :  { %680 = vmatpush.bf16.msrb.mxu2 %v1030_v4 }
  0x2d   :  { %693 = vmatpush.bf16.msrb.mxu3 %v1038_v5 }
  0x2e   :  { %655 = vmatpush.bf16.msrb.mxu0 %v1013_v8 }
  0x2f   :  { %668 = vmatpush.bf16.msrb.mxu1 %v1021_v9 }
  0x30   :  { %681 = vmatpush.bf16.msrb.mxu2 %v1029_v12 }
  0x31   :  { %694 = vmatpush.bf16.msrb.mxu3 %v1037_v13 }
  0x32   :  { %656 = vmatpush.bf16.msrb.mxu0 %v1012_v16 }
  0x33   :  { %669 = vmatpush.bf16.msrb.mxu1 %v1020_v17 }
  0x34   :  { %682 = vmatpush.bf16.msrb.mxu2 %v1028_v20 }
  0x35   :  { %695 = vmatpush.bf16.msrb.mxu3 %v1036_v21 }
  0x36   :  { %657 = vmatpush.bf16.msrb.mxu0 %v1011_v28 }
  0x37   :  { %670 = vmatpush.bf16.msrb.mxu1 %v1019_v29 }
  0x38   :  { %683 = vmatpush.bf16.msrb.mxu2 %v1027_v31 }
  0x39   :  { %696 = vmatpush.bf16.msrb.mxu3 %v1035_v32 }
  0x3a   :  { %658 = vmatpush.bf16.msrb.mxu0 %v1010_v34 }
  0x3b   :  { %671 = vmatpush.bf16.msrb.mxu1 %v1018_v35 }
  0x3c   :  { %684 = vmatpush.bf16.msrb.mxu2 %v1026_v37 }
  0x3d   :  { %697 = vmatpush.bf16.msrb.mxu3 %v1034_v38 }
  0x3e   :  { %659 = vmatpush.bf16.msrb.mxu0 %v1009_v42 }
  0x3f   :  { %672 = vmatpush.bf16.msrb.mxu1 %v1017_v43 }
  0x40   :  { %685 = vmatpush.bf16.msrb.mxu2 %v1025_v46 }
  0x41   :  { %698 = vmatpush.bf16.msrb.mxu3 %v1033_v47  ;;  %660 = vmatmul.bf16.vlgmr.msrb.gmra.mxu0 %v204_v48 }
  0x42   :  { %673 = vmatmul.bf16.vlgmr.msrb.gmra.mxu1 %v205_v49 }
  0x43   :  { %686 = vmatmul.bf16.vlgmr.msrb.gmra.mxu2 %v206_v50 }
  0x44   :  { %699 = vmatmul.bf16.vlgmr.msrb.gmra.mxu3 %v207_v51 }
  0x9e   :  { %v609_v52 = vpop.f32.mrf.mxu0 }
  0x9f   :  { %v622_v53 = vpop.f32.mrf.mxu1 }
  0xa0   :  { %v623_v60 = vadd.f32 %v622_v53, %v609_v52 }
  0xa6   :  { %v635_v54 = vpop.f32.mrf.mxu2  ;;  %v611_v56 = vpop.f32.mrf.mxu0 }
  0xa7   :  { %v648_v55 = vpop.f32.mrf.mxu3  ;;  %v624_v57 = vpop.f32.mrf.mxu1  ;;  %v636_v61 = vadd.f32 %v635_v54, %v623_v60 }
  0xa9   :  { %v649_v62 = vadd.f32 %v648_v55, %v636_v61 }
  0xae   :  { %v637_v58 = vpop.f32.mrf.mxu2 }
  0xaf   :  { %v650_v59 = vpop.f32.mrf.mxu3 }
  0xbe   :  { %v661_v63 = vpop.f32.mrf.mxu0 }
  0xbf   :  { %v674_v0 = vpop.f32.mrf.mxu1  ;;  %v662_v1 = vadd.f32 %v661_v63, %v649_v62 }
  0xc1   :  { %v675_v2 = vadd.f32 %v674_v0, %v662_v1 }
  0xc6   :  { %v687_v3 = vpop.f32.mrf.mxu2  ;;  %v663_v7 = vpop.f32.mrf.mxu0 }
  0xc7   :  { %v700_v4 = vpop.f32.mrf.mxu3  ;;  %v688_v5 = vadd.f32 %v687_v3, %v675_v2  ;;  %v676_v8 = vpop.f32.mrf.mxu1 }
  0xc9   :  { %v701_v9 = vadd.f32 %v700_v4, %v688_v5 }
  0xcb   :  { %v714_v10 = vadd.f32 %v1041_v6, %v701_v9 }
  0xcd   :  { %v715_v11 = vpack.c.bf16 %v714_v10, %v714_v10 }
  0xce   :  { %v689_v12 = vpop.f32.mrf.mxu2 }
  0xcf   :  { %v702_v13 = vpop.f32.mrf.mxu3  ;;  %716 = vst [vmem:[%s1323_s3] sm:$0xf] %v715_v11 }

// kernel: _lambda_.27
= control target key start
LH: loop header
LB: loop body
LE: loop exit
PB: predicated region body
PF: predicated region fallthrough
CT: control target
= control target key end

     0   :  { %s1238_s18 = smov 0   ;;  %s1240_s19 = smov 0   ;;  %s1324_s0 = inlined_call_operand.vmem [shape: bf16[4,8,512], index: 0, kind: input, shape index: {}]   ;;  %s1325_s1 = inlined_call_operand.vmem [shape: bf16[4,512,128], index: 1, kind: input, shape index: {}]   ;;  %s1326_s2 = inlined_call_operand.vmem [shape: f32[1,128], index: 2, kind: input, shape index: {}]   ;;  %s1327_s3 = inlined_call_operand.vmem [shape: bf16[4,8,128], index: 3, kind: output, shape index: {0}]   ;;  %s1328_s4 = inlined_call_operand.vmem [shape: f32[4,1,1,128], index: 4, kind: output, shape index: {1}]   ;;  %s1329_s5 = inlined_call_operand.vmem [shape: f32[4,1,1,128], index: 5, kind: output, shape index: {2}]  }
   0x1   :  { %s1242_s20 = smov 0  }
   0x2 LB: > { %s42_s21 = sadd.s32 1, %s1202_s19  ;;  %p989_p0 = scmp.ge.s32.totalorder %s1206_s20, 1  ;;  %s1206_s20 = sphi %s1242_s20, %s16_s20   ;;  %s1202_s19 = sphi %s1240_s19, %s1331_s19   ;;  %s1198_s18 = sphi %s1238_s18, %s1330_s18  }
   0x3   : > { %p44_p1 = scmp.ge.s32.totalorder %s42_s21, 4  ;;  %p273_p2 = scmp.lt.s32.totalorder %s1206_s20, 5 }
   0x5   : > { %s1333_s21 = smov (%p44_p1, %s42_s21), 0  ;;  %p274_p3 = pnand %p989_p0, %p273_p2 }
   0x6   : > { %p348_p4 = scmp.lt.s32.totalorder (!%p274_p3), %s1198_s18, 3 }
   0x7   : > { %277 = sbr.rel (%p274_p3) target bundleno = 202 (0xca), region = 32 }
   0xc   : > { %s1335_s18 = smov (!%p348_p4, %s1198_s18), 3  ;;  %v1183_v52 = vld [vmem:[%s1326_s2] ss:$0 sm:$0xff] }
   0xd   : > { %s1126_s22 = sshll.u32 %s1335_s18, 8  ;;  %s1125_s26 = sshll.u32 %s1335_s18, 4 }
   0xe   : > { %s1262_s25 = scalar_lea.vmem %s1325_s1, %s1126_s22  ;;  %s359_s29 = scalar_lea.vmem %s1324_s0, %s1125_s26 }
   0xf   : > { %v1134_v0 = vld [vmem:[%s1262_s25 + $0x38] sm:$0xff]  ;;  %v1133_v4 = vld [vmem:[%s1262_s25 + $0x30] sm:$0xff]  ;;  %v1132_v8 = vld [vmem:[%s1262_s25 + $0x28] sm:$0xff]  ;;  %s994_s7 = sshll.u32 %s1335_s18, 2  ;;  %s395_s13 = scalar_lea.vmem %s1328_s4, %s1335_s18 }
  0x10   : > { %v1142_v1 = vld [vmem:[%s1262_s25 + $0x78] sm:$0xff]  ;;  %681 = vmatpush.bf16.msra.mxu0 %v1134_v0  ;;  %v1141_v5 = vld [vmem:[%s1262_s25 + $0x70] sm:$0xff]  ;;  %v1140_v9 = vld [vmem:[%s1262_s25 + $0x68] sm:$0xff]  ;;  %s386_s10 = scalar_lea.vmem %s1327_s3, %s994_s7  ;;  %s404_s16 = scalar_lea.vmem %s1329_s5, %s1335_s18 }
  0x11   : > { %v1150_v2 = vld [vmem:[%s1262_s25 + $0xb8] sm:$0xff]  ;;  %694 = vmatpush.bf16.msra.mxu1 %v1142_v1  ;;  %v1149_v6 = vld [vmem:[%s1262_s25 + $0xb0] sm:$0xff]  ;;  %v1148_v10 = vld [vmem:[%s1262_s25 + $0xa8] sm:$0xff] }
  0x12   : > { %v1158_v3 = vld [vmem:[%s1262_s25 + $0xf8] sm:$0xff]  ;;  %707 = vmatpush.bf16.msra.mxu2 %v1150_v2  ;;  %v1157_v7 = vld [vmem:[%s1262_s25 + $0xf0] sm:$0xff]  ;;  %v1156_v11 = vld [vmem:[%s1262_s25 + $0xe8] sm:$0xff] }
  0x13   : > { %720 = vmatpush.bf16.msra.mxu3 %v1158_v3  ;;  %v1131_v12 = vld [vmem:[%s1262_s25 + $0x20] sm:$0xff]  ;;  %v1130_v16 = vld [vmem:[%s1262_s25 + $0x18] sm:$0xff]  ;;  %v1129_v20 = vld [vmem:[%s1262_s25 + $0x10] sm:$0xff] }
  0x14   : > { %682 = vmatpush.bf16.msra.mxu0 %v1133_v4  ;;  %v1139_v13 = vld [vmem:[%s1262_s25 + $0x60] sm:$0xff]  ;;  %v1138_v17 = vld [vmem:[%s1262_s25 + $0x58] sm:$0xff]  ;;  %v1137_v21 = vld [vmem:[%s1262_s25 + $0x50] sm:$0xff] }
  0x15   : > { %695 = vmatpush.bf16.msra.mxu1 %v1141_v5  ;;  %v1147_v14 = vld [vmem:[%s1262_s25 + $0xa0] sm:$0xff]  ;;  %v1146_v18 = vld [vmem:[%s1262_s25 + $0x98] sm:$0xff]  ;;  %v1145_v23 = vld [vmem:[%s1262_s25 + $0x90] sm:$0xff] }
  0x16   : > { %708 = vmatpush.bf16.msra.mxu2 %v1149_v6  ;;  %v1155_v15 = vld [vmem:[%s1262_s25 + $0xe0] sm:$0xff]  ;;  %v1154_v19 = vld [vmem:[%s1262_s25 + $0xd8] sm:$0xff]  ;;  %v1153_v24 = vld [vmem:[%s1262_s25 + $0xd0] sm:$0xff] }
  0x17   : > { %721 = vmatpush.bf16.msra.mxu3 %v1157_v7  ;;  %v410_v22 = vld [vmem:[%s359_s29] sm:$0xff]  ;;  %v411_v25 = vld [vmem:[%s359_s29 + $0x8] sm:$0xff] }
  0x18   : > { %683 = vmatpush.bf16.msra.mxu0 %v1132_v8  ;;  %v412_v26 = vunpack.c.l.bf16 %v410_v22  ;;  %v413_v27 = vunpack.c.h.bf16 %v410_v22  ;;  %v1128_v28 = vld [vmem:[%s1262_s25 + $0x8] sm:$0xff]  ;;  %v414_v30 = vunpack.c.l.bf16 %v411_v25  ;;  %v415_v31 = vunpack.c.h.bf16 %v411_v25  ;;  %v1127_v36 = vld [vmem:[%s1262_s25] sm:$0xff] }
  0x19   : > { %696 = vmatpush.bf16.msra.mxu1 %v1140_v9  ;;  %v1136_v29 = vld [vmem:[%s1262_s25 + $0x48] sm:$0xff]  ;;  %v1135_v37 = vld [vmem:[%s1262_s25 + $0x40] sm:$0xff] }
  0x1a   : > { %709 = vmatpush.bf16.msra.mxu2 %v1148_v10  ;;  %v1144_v32 = vld [vmem:[%s1262_s25 + $0x88] sm:$0xff]  ;;  %v416_v34 = vmax.f32 %v412_v26, 0.0  ;;  %v417_v35 = vmax.f32 %v413_v27, 0.0  ;;  %v418_v38 = vmax.f32 %v414_v30, 0.0  ;;  %v419_v39 = vmax.f32 %v415_v31, 0.0  ;;  %v1143_v40 = vld [vmem:[%s1262_s25 + $0x80] sm:$0xff] }
  0x1b   : > { %722 = vmatpush.bf16.msra.mxu3 %v1156_v11  ;;  %v1152_v33 = vld [vmem:[%s1262_s25 + $0xc8] sm:$0xff]  ;;  %v1151_v41 = vld [vmem:[%s1262_s25 + $0xc0] sm:$0xff] }
  0x1c   : > { %684 = vmatpush.bf16.msra.mxu0 %v1131_v12  ;;  %v420_v42 = vpack.c.bf16 %v416_v34, %v416_v34  ;;  %v421_v43 = vpack.c.bf16 %v417_v35, %v417_v35  ;;  %v422_v44 = vpack.c.bf16 %v418_v38, %v418_v38  ;;  %v423_v45 = vpack.c.bf16 %v419_v39, %v419_v39 }
  0x1d   : > { %697 = vmatpush.bf16.msra.mxu1 %v1139_v13 }
  0x1e   : > { %710 = vmatpush.bf16.msra.mxu2 %v1147_v14 }
  0x1f   : > { %723 = vmatpush.bf16.msra.mxu3 %v1155_v15 }
  0x20   : > { %685 = vmatpush.bf16.msra.mxu0 %v1130_v16 }
  0x21   : > { %698 = vmatpush.bf16.msra.mxu1 %v1138_v17 }
  0x22   : > { %711 = vmatpush.bf16.msra.mxu2 %v1146_v18 }
  0x23   : > { %724 = vmatpush.bf16.msra.mxu3 %v1154_v19 }
  0x24   : > { %686 = vmatpush.bf16.msra.mxu0 %v1129_v20 }
  0x25   : > { %699 = vmatpush.bf16.msra.mxu1 %v1137_v21 }
  0x26   : > { %712 = vmatpush.bf16.msra.mxu2 %v1145_v23 }
  0x27   : > { %725 = vmatpush.bf16.msra.mxu3 %v1153_v24 }
  0x28   : > { %687 = vmatpush.bf16.msra.mxu0 %v1128_v28 }
  0x29   : > { %700 = vmatpush.bf16.msra.mxu1 %v1136_v29 }
  0x2a   : > { %713 = vmatpush.bf16.msra.mxu2 %v1144_v32 }
  0x2b   : > { %726 = vmatpush.bf16.msra.mxu3 %v1152_v33 }
  0x2c   : > { %688 = vmatpush.bf16.msra.mxu0 %v1127_v36 }
  0x2d   : > { %701 = vmatpush.bf16.msra.mxu1 %v1135_v37 }
  0x2e   : > { %714 = vmatpush.bf16.msra.mxu2 %v1143_v40 }
  0x2f   : > { %727 = vmatpush.bf16.msra.mxu3 %v1151_v41  ;;  %689 = vmatmul.bf16.vlgmr.msra.gmra.mxu0 %v420_v42 }
  0x30   : > { %702 = vmatmul.bf16.vlgmr.msra.gmra.mxu1 %v421_v43 }
  0x31   : > { %715 = vmatmul.bf16.vlgmr.msra.gmra.mxu2 %v422_v44 }
  0x32   : > { %728 = vmatmul.bf16.vlgmr.msra.gmra.mxu3 %v423_v45 }
  0xac   : > { %v690_v46 = vpop.f32.mrf.mxu0 }
  0xad   : > { %v703_v47 = vpop.f32.mrf.mxu1 }
  0xae   : > { %v704_v48 = vadd.f32 %v703_v47, %v690_v46 }
  0xb4   : > { %v716_v49 = vpop.f32.mrf.mxu2  ;;  %v692_v53 = vpop.f32.mrf.mxu0 }
  0xb5   : > { %v729_v50 = vpop.f32.mrf.mxu3  ;;  %v717_v51 = vadd.f32 %v716_v49, %v704_v48  ;;  %v705_v54 = vpop.f32.mrf.mxu1 }
  0xb7   : > { %v730_v55 = vadd.f32 %v729_v50, %v717_v51 }
  0xb9   : > { %v743_v56 = vadd.f32 %v1183_v52, %v730_v55 }
  0xbb   : > { %v744_v57 = vpack.c.bf16 %v743_v56, %v743_v56  ;;  %v746_v58 = vrot.slane %v743_v56, 4  ;;  %v753_v59 = vmul.f32 %v743_v56, %v743_v56 }
  0xbc   : > { %v718_v60 = vpop.f32.mrf.mxu2 }
  0xbd   : > { %v731_v61 = vpop.f32.mrf.mxu3  ;;  %745 = vst [vmem:[%s386_s10] sm:$0xf] %v744_v57  ;;  %v747_v62 = vadd.f32 %v746_v58, %v743_v56  ;;  %v754_v63 = vrot.slane %v753_v59, 4 }
  0xbf   : > { %v748_v0 = vrot.slane %v747_v62, 2  ;;  %v755_v1 = vadd.f32 %v754_v63, %v753_v59 }
  0xc1   : > { %v749_v2 = vadd.f32 %v748_v0, %v747_v62  ;;  %v756_v3 = vrot.slane %v755_v1, 2 }
  0xc3   : > { %v750_v4 = vrot.slane %v749_v2, 1  ;;  %v757_v5 = vadd.f32 %v756_v3, %v755_v1 }
  0xc5   : > { %v751_v6 = vadd.f32 %v750_v4, %v749_v2  ;;  %v758_v7 = vrot.slane %v757_v5, 1 }
  0xc7   : > { %752 = vst [vmem:[%s395_s13] sm:$0x1] %v751_v6  ;;  %v759_v8 = vadd.f32 %v758_v7, %v757_v5 }
  0xc9   : > { %760 = vst [vmem:[%s404_s16] sm:$0x1] %v759_v8 }
  0xca PF: > { %s16_s20 = sadd.s32 1, %s1206_s20   ;;  %s1330_s18 = smov %s1202_s19 }
  0xcb   : > { %p13_p5 = scmp.ge.s32.totalorder %s16_s20, 6   ;;  %s1331_s19 = smov %s1333_s21 }
  0xcd   :  { %15 = sbr.rel (!%p13_p5) target bundleno = 2 (0x2), region = 100 }

// kernel: _lambda_.29
= control target key start
LH: loop header
LB: loop body
LE: loop exit
PB: predicated region body
PF: predicated region fallthrough
CT: control target
= control target key end

     0   :  { %s1107_s18 = smov 0   ;;  %s1109_s19 = smov 0   ;;  %s1177_s0 = inlined_call_operand.vmem [shape: bf16[4,32,256], index: 0, kind: input, shape index: {}]   ;;  %s1178_s1 = inlined_call_operand.vmem [shape: bf16[4,256,128], index: 1, kind: input, shape index: {}]   ;;  %s1179_s2 = inlined_call_operand.vmem [shape: f32[1,128], index: 2, kind: input, shape index: {}]   ;;  %s1180_s3 = inlined_call_operand.vmem [shape: bf16[4,32,128], index: 3, kind: output, shape index: {0}]   ;;  %s1181_s4 = inlined_call_operand.vmem [shape: f32[4,1,1,128], index: 4, kind: output, shape index: {1}]   ;;  %s1182_s5 = inlined_call_operand.vmem [shape: f32[4,1,1,128], index: 5, kind: output, shape index: {2}]  }
   0x1   :  { %s1111_s20 = smov 0  }
   0x2 LB: > { %s42_s21 = sadd.s32 1, %s1071_s19  ;;  %p909_p0 = scmp.ge.s32.totalorder %s1075_s20, 1  ;;  %s1075_s20 = sphi %s1111_s20, %s16_s20   ;;  %s1071_s19 = sphi %s1109_s19, %s1184_s19   ;;  %s1067_s18 = sphi %s1107_s18, %s1183_s18  }
   0x3   : > { %p44_p1 = scmp.ge.s32.totalorder %s42_s21, 4  ;;  %p275_p2 = scmp.lt.s32.totalorder %s1075_s20, 5 }
   0x5   : > { %s1186_s21 = smov (%p44_p1, %s42_s21), 0  ;;  %p276_p3 = pnand %p909_p0, %p275_p2 }
   0x6   : > { %p354_p4 = scmp.lt.s32.totalorder (!%p276_p3), %s1067_s18, 3 }
   0x7   : > { %279 = sbr.rel (%p276_p3) target bundleno = 209 (0xd1), region = 32 }
   0xc   : > { %s1188_s18 = smov (!%p354_p4, %s1067_s18), 3  ;;  %v1052_v43 = vld [vmem:[%s1179_s2] ss:$0 sm:$0xff] }
   0xd   : > { %s983_s22 = sshll.u32 %s1188_s18, 7  ;;  %s982_s26 = sshll.u32 %s1188_s18, 5 }
   0xe   : > { %s1131_s25 = scalar_lea.vmem %s1178_s1, %s983_s22  ;;  %s365_s29 = scalar_lea.vmem %s1177_s0, %s982_s26 }
   0xf   : > { %v992_v0 = vld [vmem:[%s1131_s25 + $0x38] sm:$0xff]  ;;  %v991_v2 = vld [vmem:[%s1131_s25 + $0x30] sm:$0xff]  ;;  %v990_v4 = vld [vmem:[%s1131_s25 + $0x28] sm:$0xff]  ;;  %s984_s7 = sshll.u32 %s1188_s18, 4  ;;  %s405_s13 = scalar_lea.vmem %s1181_s4, %s1188_s18 }
  0x10   : > { %v1000_v1 = vld [vmem:[%s1131_s25 + $0x78] sm:$0xff]  ;;  %579 = vmatpush.bf16.msra.mxu0 %v992_v0  ;;  %1012 = vmatpush.bf16.msra.mxu2 %v992_v0  ;;  %v999_v3 = vld [vmem:[%s1131_s25 + $0x70] sm:$0xff]  ;;  %v998_v5 = vld [vmem:[%s1131_s25 + $0x68] sm:$0xff]  ;;  %s395_s10 = scalar_lea.vmem %s1180_s3, %s984_s7  ;;  %s414_s16 = scalar_lea.vmem %s1182_s5, %s1188_s18 }
  0x11   : > { %598 = vmatpush.bf16.msra.mxu1 %v1000_v1  ;;  %1020 = vmatpush.bf16.msra.mxu3 %v1000_v1  ;;  %v989_v6 = vld [vmem:[%s1131_s25 + $0x20] sm:$0xff]  ;;  %v988_v8 = vld [vmem:[%s1131_s25 + $0x18] sm:$0xff]  ;;  %v987_v10 = vld [vmem:[%s1131_s25 + $0x10] sm:$0xff] }
  0x12   : > { %v997_v7 = vld [vmem:[%s1131_s25 + $0x60] sm:$0xff]  ;;  %v996_v9 = vld [vmem:[%s1131_s25 + $0x58] sm:$0xff]  ;;  %v424_v12 = vld [vmem:[%s365_s29 + $0x8] sm:$0xff] }
  0x13   : > { %v423_v11 = vld [vmem:[%s365_s29] sm:$0xff]  ;;  %v425_v13 = vld [vmem:[%s365_s29 + $0x10] sm:$0xff]  ;;  %v426_v14 = vld [vmem:[%s365_s29 + $0x18] sm:$0xff]  ;;  %v429_v17 = vunpack.c.l.bf16 %v424_v12  ;;  %v430_v22 = vunpack.c.h.bf16 %v424_v12 }
  0x14   : > { %580 = vmatpush.bf16.msra.mxu0 %v991_v2  ;;  %1013 = vmatpush.bf16.msra.mxu2 %v991_v2  ;;  %v995_v15 = vld [vmem:[%s1131_s25 + $0x50] sm:$0xff]  ;;  %v427_v16 = vunpack.c.l.bf16 %v423_v11  ;;  %v431_v18 = vunpack.c.l.bf16 %v425_v13  ;;  %v433_v19 = vunpack.c.l.bf16 %v426_v14  ;;  %v986_v20 = vld [vmem:[%s1131_s25 + $0x8] sm:$0xff]  ;;  %v428_v21 = vunpack.c.h.bf16 %v423_v11  ;;  %v985_v30 = vld [vmem:[%s1131_s25] sm:$0xff] }
  0x15   : > { %599 = vmatpush.bf16.msra.mxu1 %v999_v3  ;;  %1021 = vmatpush.bf16.msra.mxu3 %v999_v3  ;;  %v432_v23 = vunpack.c.h.bf16 %v425_v13  ;;  %v434_v24 = vunpack.c.h.bf16 %v426_v14  ;;  %v994_v25 = vld [vmem:[%s1131_s25 + $0x48] sm:$0xff]  ;;  %v437_v27 = vmax.f32 %v429_v17, 0.0  ;;  %v438_v32 = vmax.f32 %v430_v22, 0.0  ;;  %v993_v35 = vld [vmem:[%s1131_s25 + $0x40] sm:$0xff] }
  0x16   : > { %v435_v26 = vmax.f32 %v427_v16, 0.0  ;;  %v439_v28 = vmax.f32 %v431_v18, 0.0  ;;  %v441_v29 = vmax.f32 %v433_v19, 0.0  ;;  %v436_v31 = vmax.f32 %v428_v21, 0.0 }
  0x17   : > { %v440_v33 = vmax.f32 %v432_v23, 0.0  ;;  %v442_v34 = vmax.f32 %v434_v24, 0.0 }
  0x18   : > { %581 = vmatpush.bf16.msra.mxu0 %v990_v4  ;;  %1014 = vmatpush.bf16.msra.mxu2 %v990_v4  ;;  %v443_v36 = vpack.c.bf16 %v437_v27, %v435_v26  ;;  %v445_v37 = vpack.c.bf16 %v441_v29, %v439_v28  ;;  %v444_v38 = vpack.c.bf16 %v438_v32, %v436_v31 }
  0x19   : > { %600 = vmatpush.bf16.msra.mxu1 %v998_v5  ;;  %1022 = vmatpush.bf16.msra.mxu3 %v998_v5  ;;  %v446_v39 = vpack.c.bf16 %v442_v34, %v440_v33 }
  0x1c   : > { %582 = vmatpush.bf16.msra.mxu0 %v989_v6  ;;  %1015 = vmatpush.bf16.msra.mxu2 %v989_v6 }
  0x1d   : > { %601 = vmatpush.bf16.msra.mxu1 %v997_v7  ;;  %1023 = vmatpush.bf16.msra.mxu3 %v997_v7 }
  0x20   : > { %583 = vmatpush.bf16.msra.mxu0 %v988_v8  ;;  %1016 = vmatpush.bf16.msra.mxu2 %v988_v8 }
  0x21   : > { %602 = vmatpush.bf16.msra.mxu1 %v996_v9  ;;  %1024 = vmatpush.bf16.msra.mxu3 %v996_v9 }
  0x24   : > { %584 = vmatpush.bf16.msra.mxu0 %v987_v10  ;;  %1017 = vmatpush.bf16.msra.mxu2 %v987_v10 }
  0x25   : > { %603 = vmatpush.bf16.msra.mxu1 %v995_v15  ;;  %1025 = vmatpush.bf16.msra.mxu3 %v995_v15 }
  0x28   : > { %585 = vmatpush.bf16.msra.mxu0 %v986_v20  ;;  %1018 = vmatpush.bf16.msra.mxu2 %v986_v20 }
  0x29   : > { %604 = vmatpush.bf16.msra.mxu1 %v994_v25  ;;  %1026 = vmatpush.bf16.msra.mxu3 %v994_v25 }
  0x2c   : > { %586 = vmatpush.bf16.msra.mxu0 %v985_v30  ;;  %1019 = vmatpush.bf16.msra.mxu2 %v985_v30 }
  0x2d   : > { %605 = vmatpush.bf16.msra.mxu1 %v993_v35  ;;  %1027 = vmatpush.bf16.msra.mxu3 %v993_v35 }
  0x2f   : > { %587 = vmatmul.bf16.vlgmr.msra.gmra.mxu0 %v443_v36  ;;  %592 = vmatmul.bf16.vlgmr.msra.gmra.mxu2 %v445_v37 }
  0x30   : > { %606 = vmatmul.bf16.vlgmr.msra.gmra.mxu1 %v444_v38  ;;  %611 = vmatmul.bf16.vlgmr.msra.gmra.mxu3 %v446_v39 }
  0xac   : > { %v588_v40 = vpop.f32.mrf.mxu0 }
  0xad   : > { %v607_v41 = vpop.f32.mrf.mxu1 }
  0xae   : > { %v608_v42 = vadd.f32 %v607_v41, %v588_v40 }
  0xb0   : > { %v636_v47 = vadd.f32 %v1052_v43, %v608_v42 }
  0xb2   : > { %v593_v44 = vpop.f32.mrf.mxu2  ;;  %v658_v52 = vmul.f32 %v636_v47, %v636_v47 }
  0xb3   : > { %v612_v45 = vpop.f32.mrf.mxu3 }
  0xb4   : > { %v590_v46 = vpop.f32.mrf.mxu0  ;;  %v613_v49 = vadd.f32 %v612_v45, %v593_v44 }
  0xb5   : > { %v609_v48 = vpop.f32.mrf.mxu1 }
  0xb6   : > { %v610_v50 = vadd.f32 %v609_v48, %v590_v46  ;;  %v638_v53 = vadd.f32 %v1052_v43, %v613_v49 }
  0xb8   : > { %v637_v51 = vadd.f32 %v1052_v43, %v610_v50  ;;  %v660_v61 = vmul.f32 %v638_v53, %v638_v53 }
  0xba   : > { %v1004_v54 = vpack.c.bf16 %v637_v51, %v636_v47  ;;  %v648_v55 = vadd.f32 %v637_v51, %v636_v47  ;;  %v659_v56 = vmul.f32 %v637_v51, %v637_v51  ;;  %v595_v57 = vpop.f32.mrf.mxu2 }
  0xbb   : > { %v614_v58 = vpop.f32.mrf.mxu3 }
  0xbc   : > { %1005 = vst [vmem:[%s395_s10] sm:$0xff] %v1004_v54   ;;  %v662_v59 = vadd.f32 %v659_v56, %v658_v52  ;;  %v615_v60 = vadd.f32 %v614_v58, %v595_v57  ;;  %v649_v63 = vadd.f32 %v648_v55, %v638_v53 }
  0xbe   : > { %v639_v62 = vadd.f32 %v1052_v43, %v615_v60  ;;  %v663_v3 = vadd.f32 %v662_v59, %v660_v61 }
  0xc0   : > { %v1009_v0 = vpack.c.bf16 %v639_v62, %v638_v53  ;;  %v650_v1 = vadd.f32 %v649_v63, %v639_v62  ;;  %v661_v2 = vmul.f32 %v639_v62, %v639_v62 }
  0xc2   : > { %1011 = vst [vmem:[%s395_s10 + $0x8] sm:$0xff] %v1009_v0   ;;  %v651_v4 = vrot.slane %v650_v1, 4  ;;  %v664_v5 = vadd.f32 %v663_v3, %v661_v2 }
  0xc4   : > { %v652_v6 = vadd.f32 %v651_v4, %v650_v1  ;;  %v665_v7 = vrot.slane %v664_v5, 4 }
  0xc6   : > { %v653_v8 = vrot.slane %v652_v6, 2  ;;  %v666_v9 = vadd.f32 %v665_v7, %v664_v5 }
  0xc8   : > { %v654_v10 = vadd.f32 %v653_v8, %v652_v6  ;;  %v667_v11 = vrot.slane %v666_v9, 2 }
  0xca   : > { %v655_v12 = vrot.slane %v654_v10, 1  ;;  %v668_v13 = vadd.f32 %v667_v11, %v666_v9 }
  0xcc   : > { %v656_v14 = vadd.f32 %v655_v12, %v654_v10  ;;  %v669_v15 = vrot.slane %v668_v13, 1 }
  0xce   : > { %657 = vst [vmem:[%s405_s13] sm:$0x1] %v656_v14  ;;  %v670_v16 = vadd.f32 %v669_v15, %v668_v13 }
  0xd0   : > { %671 = vst [vmem:[%s414_s16] sm:$0x1] %v670_v16 }
  0xd1 PF: > { %s16_s20 = sadd.s32 1, %s1075_s20   ;;  %s1183_s18 = smov %s1071_s19 }
  0xd2   : > { %p13_p5 = scmp.ge.s32.totalorder %s16_s20, 6   ;;  %s1184_s19 = smov %s1186_s21 }
  0xd4   :  { %15 = sbr.rel (!%p13_p5) target bundleno = 2 (0x2), region = 100 }

// kernel: _lambda_.31
= control target key start
LH: loop header
LB: loop body
LE: loop exit
PB: predicated region body
PF: predicated region fallthrough
CT: control target
= control target key end

     0   :  { %s1250_s18 = smov 0   ;;  %s1252_s19 = smov 0   ;;  %s1347_s0 = inlined_call_operand.vmem [shape: bf16[4,128,128], index: 0, kind: input, shape index: {}]   ;;  %s1348_s1 = inlined_call_operand.vmem [shape: bf16[4,128,128], index: 1, kind: input, shape index: {}]   ;;  %s1349_s2 = inlined_call_operand.vmem [shape: f32[1,128], index: 2, kind: input, shape index: {}]   ;;  %s1350_s3 = inlined_call_operand.vmem [shape: bf16[4,128,128], index: 3, kind: output, shape index: {0}]   ;;  %s1351_s4 = inlined_call_operand.vmem [shape: f32[4,1,1,128], index: 4, kind: output, shape index: {1}]   ;;  %s1352_s5 = inlined_call_operand.vmem [shape: f32[4,1,1,128], index: 5, kind: output, shape index: {2}]  }
   0x1   :  { %s1254_s20 = smov 0  }
   0x2 LB: > { %s42_s21 = sadd.s32 1, %s1214_s19  ;;  %p1009_p0 = scmp.ge.s32.totalorder %s1218_s20, 1  ;;  %s1218_s20 = sphi %s1254_s20, %s16_s20   ;;  %s1214_s19 = sphi %s1252_s19, %s1354_s19   ;;  %s1210_s18 = sphi %s1250_s18, %s1353_s18  }
   0x3   : > { %p44_p1 = scmp.ge.s32.totalorder %s42_s21, 4  ;;  %p272_p2 = scmp.lt.s32.totalorder %s1218_s20, 5 }
   0x5   : > { %s1356_s21 = smov (%p44_p1, %s42_s21), 0  ;;  %p273_p3 = pnand %p1009_p0, %p272_p2 }
   0x6   : > { %p348_p4 = scmp.lt.s32.totalorder (!%p273_p3), %s1210_s18, 3 }
   0x7   : > { %276 = sbr.rel (%p273_p3) target bundleno = 240 (0xf0), region = 32 }
   0xc   : > { %s1358_s18 = smov (!%p348_p4, %s1210_s18), 3  ;;  %v1195_v58 = vld [vmem:[%s1349_s2] ss:$0 sm:$0xff] }
   0xd   : > { %s1271_s22 = sshll.u32 %s1358_s18, 6  ;;  %s397_s11 = scalar_lea.vmem %s1351_s4, %s1358_s18 }
   0xe   : > { %s1277_s25 = scalar_lea.vmem %s1348_s1, %s1271_s22  ;;  %s1288_s28 = scalar_lea.vmem %s1347_s0, %s1271_s22 }
   0xf   : > { %v1060_v0 = vld [vmem:[%s1277_s25 + $0x38] sm:$0xff]  ;;  %v1059_v1 = vld [vmem:[%s1277_s25 + $0x30] sm:$0xff]  ;;  %v1058_v2 = vld [vmem:[%s1277_s25 + $0x28] sm:$0xff]  ;;  %s1308_s8 = scalar_lea.vmem %s1350_s3, %s1271_s22  ;;  %s406_s14 = scalar_lea.vmem %s1352_s5, %s1358_s18 }
  0x10   : > { %563 = vmatpush.bf16.msra.mxu0 %v1060_v0  ;;  %1147 = vmatpush.bf16.msra.mxu1 %v1060_v0  ;;  %v1057_v3 = vld [vmem:[%s1277_s25 + $0x20] sm:$0xff]  ;;  %v1056_v4 = vld [vmem:[%s1277_s25 + $0x18] sm:$0xff]  ;;  %v1055_v5 = vld [vmem:[%s1277_s25 + $0x10] sm:$0xff] }
  0x11   : > { %1148 = vmatpush.bf16.msra.mxu2 %v1060_v0  ;;  %1149 = vmatpush.bf16.msra.mxu3 %v1060_v0  ;;  %v1062_v6 = vld [vmem:[%s1288_s28] sm:$0xff]   ;;  %v1134_v7 = vld [vmem:[%s1288_s28 + $0x10] sm:$0xff]   ;;  %v1054_v14 = vld [vmem:[%s1277_s25 + $0x8] sm:$0xff] }
  0x12   : > { %v1136_v8 = vld [vmem:[%s1288_s28 + $0x20] sm:$0xff]   ;;  %v1138_v9 = vld [vmem:[%s1288_s28 + $0x30] sm:$0xff]   ;;  %v1063_v10 = vunpack.c.l.bf16 %v1062_v6  ;;  %v1064_v11 = vunpack.c.h.bf16 %v1062_v6  ;;  %v1071_v12 = vunpack.c.l.bf16 %v1134_v7  ;;  %v1072_v13 = vunpack.c.h.bf16 %v1134_v7  ;;  %v1133_v32 = vld [vmem:[%s1288_s28 + $0x8] sm:$0xff]  }
  0x13   : > { %v1079_v15 = vunpack.c.l.bf16 %v1136_v8  ;;  %v1080_v16 = vunpack.c.h.bf16 %v1136_v8  ;;  %v1087_v17 = vunpack.c.l.bf16 %v1138_v9  ;;  %v1088_v18 = vunpack.c.h.bf16 %v1138_v9  ;;  %v1053_v23 = vld [vmem:[%s1277_s25] sm:$0xff]  ;;  %v1135_v33 = vld [vmem:[%s1288_s28 + $0x18] sm:$0xff]   ;;  %v1137_v34 = vld [vmem:[%s1288_s28 + $0x28] sm:$0xff]  }
  0x14   : > { %564 = vmatpush.bf16.msra.mxu0 %v1059_v1  ;;  %1150 = vmatpush.bf16.msra.mxu1 %v1059_v1  ;;  %v459_v19 = vmax.f32 %v1063_v10, 0.0  ;;  %v460_v20 = vmax.f32 %v1064_v11, 0.0  ;;  %v463_v21 = vmax.f32 %v1071_v12, 0.0  ;;  %v464_v22 = vmax.f32 %v1072_v13, 0.0  ;;  %v1139_v35 = vld [vmem:[%s1288_s28 + $0x38] sm:$0xff]  }
  0x15   : > { %1151 = vmatpush.bf16.msra.mxu2 %v1059_v1  ;;  %1152 = vmatpush.bf16.msra.mxu3 %v1059_v1  ;;  %v467_v24 = vmax.f32 %v1079_v15, 0.0  ;;  %v468_v25 = vmax.f32 %v1080_v16, 0.0  ;;  %v471_v26 = vmax.f32 %v1087_v17, 0.0  ;;  %v472_v27 = vmax.f32 %v1088_v18, 0.0 }
  0x16   : > { %v475_v28 = vpack.c.bf16 %v460_v20, %v459_v19  ;;  %v477_v29 = vpack.c.bf16 %v464_v22, %v463_v21  ;;  %v1067_v36 = vunpack.c.l.bf16 %v1133_v32  ;;  %v1068_v37 = vunpack.c.h.bf16 %v1133_v32 }
  0x17   : > { %v479_v30 = vpack.c.bf16 %v468_v25, %v467_v24  ;;  %v481_v31 = vpack.c.bf16 %v472_v27, %v471_v26  ;;  %v1075_v38 = vunpack.c.l.bf16 %v1135_v33  ;;  %v1076_v39 = vunpack.c.h.bf16 %v1135_v33 }
  0x18   : > { %565 = vmatpush.bf16.msra.mxu0 %v1058_v2  ;;  %1153 = vmatpush.bf16.msra.mxu1 %v1058_v2  ;;  %v1083_v40 = vunpack.c.l.bf16 %v1137_v34  ;;  %v1084_v41 = vunpack.c.h.bf16 %v1137_v34  ;;  %v1091_v42 = vunpack.c.l.bf16 %v1139_v35  ;;  %v1092_v43 = vunpack.c.h.bf16 %v1139_v35 }
  0x19   : > { %1154 = vmatpush.bf16.msra.mxu2 %v1058_v2  ;;  %1155 = vmatpush.bf16.msra.mxu3 %v1058_v2  ;;  %v461_v44 = vmax.f32 %v1067_v36, 0.0  ;;  %v462_v45 = vmax.f32 %v1068_v37, 0.0  ;;  %v465_v46 = vmax.f32 %v1075_v38, 0.0  ;;  %v466_v47 = vmax.f32 %v1076_v39, 0.0 }
  0x1a   : > { %v469_v48 = vmax.f32 %v1083_v40, 0.0  ;;  %v470_v49 = vmax.f32 %v1084_v41, 0.0  ;;  %v473_v50 = vmax.f32 %v1091_v42, 0.0  ;;  %v474_v51 = vmax.f32 %v1092_v43, 0.0 }
  0x1b   : > { %v476_v52 = vpack.c.bf16 %v462_v45, %v461_v44  ;;  %v478_v53 = vpack.c.bf16 %v466_v47, %v465_v46 }
  0x1c   : > { %566 = vmatpush.bf16.msra.mxu0 %v1057_v3  ;;  %1156 = vmatpush.bf16.msra.mxu1 %v1057_v3  ;;  %v480_v54 = vpack.c.bf16 %v470_v49, %v469_v48  ;;  %v482_v55 = vpack.c.bf16 %v474_v51, %v473_v50 }
  0x1d   : > { %1157 = vmatpush.bf16.msra.mxu2 %v1057_v3  ;;  %1158 = vmatpush.bf16.msra.mxu3 %v1057_v3 }
  0x20   : > { %567 = vmatpush.bf16.msra.mxu0 %v1056_v4  ;;  %1159 = vmatpush.bf16.msra.mxu1 %v1056_v4 }
  0x21   : > { %1160 = vmatpush.bf16.msra.mxu2 %v1056_v4  ;;  %1161 = vmatpush.bf16.msra.mxu3 %v1056_v4 }
  0x24   : > { %568 = vmatpush.bf16.msra.mxu0 %v1055_v5  ;;  %1162 = vmatpush.bf16.msra.mxu1 %v1055_v5 }
  0x25   : > { %1163 = vmatpush.bf16.msra.mxu2 %v1055_v5  ;;  %1164 = vmatpush.bf16.msra.mxu3 %v1055_v5 }
  0x28   : > { %569 = vmatpush.bf16.msra.mxu0 %v1054_v14  ;;  %1165 = vmatpush.bf16.msra.mxu1 %v1054_v14 }
  0x29   : > { %1166 = vmatpush.bf16.msra.mxu2 %v1054_v14  ;;  %1167 = vmatpush.bf16.msra.mxu3 %v1054_v14 }
  0x2c   : > { %570 = vmatpush.bf16.msra.mxu0 %v1053_v23  ;;  %1168 = vmatpush.bf16.msra.mxu1 %v1053_v23 }
  0x2d   : > { %1169 = vmatpush.bf16.msra.mxu2 %v1053_v23  ;;  %1170 = vmatpush.bf16.msra.mxu3 %v1053_v23 }
  0x2f   : > { %571 = vmatmul.bf16.vlgmr.msra.gmra.mxu0 %v475_v28  ;;  %581 = vmatmul.bf16.vlgmr.msra.gmra.mxu1 %v477_v29 }
  0x30   : > { %591 = vmatmul.bf16.vlgmr.msra.gmra.mxu2 %v479_v30  ;;  %601 = vmatmul.bf16.vlgmr.msra.gmra.mxu3 %v481_v31 }
  0x3f   : > { %576 = vmatmul.bf16.gmra.mxu0 %v476_v52  ;;  %586 = vmatmul.bf16.gmra.mxu1 %v478_v53 }
  0x40   : > { %596 = vmatmul.bf16.gmra.mxu2 %v480_v54  ;;  %606 = vmatmul.bf16.gmra.mxu3 %v482_v55 }
  0xac   : > { %v572_v56 = vpop.f32.mrf.mxu0  ;;  %v582_v57 = vpop.f32.mrf.mxu1 }
  0xad   : > { %v671_v59 = vadd.f32 %v1195_v58, %v582_v57  ;;  %v667_v0 = vadd.f32 %v1195_v58, %v572_v56 }
  0xaf   : > { %v737_v17 = vmul.f32 %v667_v0, %v667_v0  ;;  %v741_v34 = vmul.f32 %v671_v59, %v671_v59 }
  0xb3   : > { %v592_v60 = vpop.f32.mrf.mxu2  ;;  %v602_v61 = vpop.f32.mrf.mxu3 }
  0xb4   : > { %v574_v62 = vpop.f32.mrf.mxu0  ;;  %v584_v63 = vpop.f32.mrf.mxu1  ;;  %v675_v5 = vadd.f32 %v1195_v58, %v592_v60  ;;  %v1312_v6 = vadd.f32 %v1195_v58, %v602_v61 }
  0xb5   : > { %v668_v1 = vadd.f32 %v1195_v58, %v574_v62  ;;  %v672_v2 = vadd.f32 %v1195_v58, %v584_v63 }
  0xb6   : > { %v745_v54 = vmul.f32 %v675_v5, %v675_v5 }
  0xb7   : > { %v1096_v3 = vpack.c.bf16 %v668_v1, %v667_v0  ;;  %v1106_v4 = vpack.c.bf16 %v672_v2, %v671_v59  ;;  %v738_v16 = vmul.f32 %v668_v1, %v668_v1  ;;  %v715_v19 = vadd.f32 %v668_v1, %v667_v0 }
  0xb8   : > { %v742_v39 = vmul.f32 %v672_v2, %v672_v2 }
  0xb9   : > { %1097 = vst [vmem:[%s1308_s8] sm:$0xff] %v1096_v3   ;;  %v753_v23 = vadd.f32 %v738_v16, %v737_v17 }
  0xba   : > { %1141 = vst [vmem:[%s1308_s8 + $0x10] sm:$0xff] %v1106_v4  }
  0xbb   : > { %v594_v7 = vpop.f32.mrf.mxu2  ;;  %v604_v8 = vpop.f32.mrf.mxu3 }
  0xbc   : > { %v577_v9 = vpop.f32.mrf.mxu0  ;;  %v587_v10 = vpop.f32.mrf.mxu1  ;;  %v676_v11 = vadd.f32 %v1195_v58, %v594_v7  ;;  %v1314_v12 = vadd.f32 %v1195_v58, %v604_v8 }
  0xbd   : > { %v669_v13 = vadd.f32 %v1195_v58, %v577_v9  ;;  %v673_v20 = vadd.f32 %v1195_v58, %v587_v10 }
  0xbe   : > { %v1116_v14 = vpack.c.bf16 %v676_v11, %v675_v5  ;;  %v1126_v15 = vpack.c.bf16 %v1314_v12, %v1312_v6  ;;  %v746_v57 = vmul.f32 %v676_v11, %v676_v11 }
  0xbf   : > { %v739_v18 = vmul.f32 %v669_v13, %v669_v13  ;;  %v716_v26 = vadd.f32 %v715_v19, %v669_v13  ;;  %v743_v46 = vmul.f32 %v673_v20, %v673_v20 }
  0xc0   : > { %1143 = vst [vmem:[%s1308_s8 + $0x20] sm:$0xff] %v1116_v14  }
  0xc1   : > { %1145 = vst [vmem:[%s1308_s8 + $0x30] sm:$0xff] %v1126_v15   ;;  %v754_v29 = vadd.f32 %v753_v23, %v739_v18 }
  0xc3   : > { %v597_v21 = vpop.f32.mrf.mxu2  ;;  %v607_v22 = vpop.f32.mrf.mxu3 }
  0xc4   : > { %v579_v24 = vpop.f32.mrf.mxu0  ;;  %v589_v25 = vpop.f32.mrf.mxu1  ;;  %v677_v37 = vadd.f32 %v1195_v58, %v597_v21  ;;  %v681_v38 = vadd.f32 %v1195_v58, %v607_v22 }
  0xc5   : > { %v670_v27 = vadd.f32 %v1195_v58, %v579_v24  ;;  %v674_v28 = vadd.f32 %v1195_v58, %v589_v25 }
  0xc6   : > { %v747_v62 = vmul.f32 %v677_v37, %v677_v37  ;;  %v751_v10 = vmul.f32 %v681_v38, %v681_v38 }
  0xc7   : > { %v1101_v30 = vpack.c.bf16 %v670_v27, %v669_v13  ;;  %v717_v31 = vadd.f32 %v716_v26, %v670_v27  ;;  %v740_v32 = vmul.f32 %v670_v27, %v670_v27  ;;  %v1111_v33 = vpack.c.bf16 %v674_v28, %v673_v20 }
  0xc8   : > { %v744_v52 = vmul.f32 %v674_v28, %v674_v28 }
  0xc9   : > { %1140 = vst [vmem:[%s1308_s8 + $0x8] sm:$0xff] %v1101_v30   ;;  %v718_v35 = vadd.f32 %v717_v31, %v671_v59  ;;  %v755_v36 = vadd.f32 %v754_v29, %v740_v32 }
  0xca   : > { %1142 = vst [vmem:[%s1308_s8 + $0x18] sm:$0xff] %v1111_v33  }
  0xcb   : > { %v756_v40 = vadd.f32 %v755_v36, %v741_v34  ;;  %v719_v41 = vadd.f32 %v718_v35, %v672_v2  ;;  %v599_v42 = vpop.f32.mrf.mxu2  ;;  %v609_v43 = vpop.f32.mrf.mxu3  ;;  %v749_v2 = vmul.f32 %v1312_v6, %v1312_v6 }
  0xcc   : > { %v678_v44 = vadd.f32 %v1195_v58, %v599_v42  ;;  %v682_v45 = vadd.f32 %v1195_v58, %v609_v43 }
  0xcd   : > { %v720_v47 = vadd.f32 %v719_v41, %v673_v20  ;;  %v757_v48 = vadd.f32 %v756_v40, %v742_v39 }
  0xce   : > { %v1121_v49 = vpack.c.bf16 %v678_v44, %v677_v37  ;;  %v1131_v50 = vpack.c.bf16 %v682_v45, %v681_v38  ;;  %v748_v1 = vmul.f32 %v678_v44, %v678_v44  ;;  %v752_v15 = vmul.f32 %v682_v45, %v682_v45 }
  0xcf   : > { %v721_v51 = vadd.f32 %v720_v47, %v674_v28  ;;  %v758_v53 = vadd.f32 %v757_v48, %v743_v46 }
  0xd0   : > { %1144 = vst [vmem:[%s1308_s8 + $0x28] sm:$0xff] %v1121_v49  }
  0xd1   : > { %v722_v55 = vadd.f32 %v721_v51, %v675_v5  ;;  %v759_v56 = vadd.f32 %v758_v53, %v744_v52  ;;  %1146 = vst [vmem:[%s1308_s8 + $0x38] sm:$0xff] %v1131_v50   ;;  %v750_v5 = vmul.f32 %v1314_v12, %v1314_v12 }
  0xd3   : > { %v760_v59 = vadd.f32 %v759_v56, %v745_v54  ;;  %v723_v60 = vadd.f32 %v722_v55, %v676_v11 }
  0xd5   : > { %v724_v61 = vadd.f32 %v723_v60, %v677_v37  ;;  %v761_v63 = vadd.f32 %v760_v59, %v746_v57 }
  0xd7   : > { %v762_v58 = vadd.f32 %v761_v63, %v747_v62  ;;  %v725_v0 = vadd.f32 %v724_v61, %v678_v44 }
  0xd9   : > { %v726_v3 = vadd.f32 %v725_v0, %v1312_v6  ;;  %v763_v4 = vadd.f32 %v762_v58, %v748_v1 }
  0xdb   : > { %v764_v7 = vadd.f32 %v763_v4, %v749_v2  ;;  %v727_v8 = vadd.f32 %v726_v3, %v1314_v12 }
  0xdd   : > { %v728_v9 = vadd.f32 %v727_v8, %v681_v38  ;;  %v765_v11 = vadd.f32 %v764_v7, %v750_v5 }
  0xdf   : > { %v766_v13 = vadd.f32 %v765_v11, %v751_v10  ;;  %v729_v14 = vadd.f32 %v728_v9, %v682_v45 }
  0xe1   : > { %v730_v16 = vrot.slane %v729_v14, 4  ;;  %v767_v17 = vadd.f32 %v766_v13, %v752_v15 }
  0xe3   : > { %v731_v18 = vadd.f32 %v730_v16, %v729_v14  ;;  %v768_v19 = vrot.slane %v767_v17, 4 }
  0xe5   : > { %v732_v6 = vrot.slane %v731_v18, 2  ;;  %v769_v20 = vadd.f32 %v768_v19, %v767_v17 }
  0xe7   : > { %v733_v21 = vadd.f32 %v732_v6, %v731_v18  ;;  %v770_v22 = vrot.slane %v769_v20, 2 }
  0xe9   : > { %v734_v23 = vrot.slane %v733_v21, 1  ;;  %v771_v24 = vadd.f32 %v770_v22, %v769_v20 }
  0xeb   : > { %v735_v12 = vadd.f32 %v734_v23, %v733_v21  ;;  %v772_v25 = vrot.slane %v771_v24, 1 }
  0xed   : > { %736 = vst [vmem:[%s397_s11] sm:$0x1] %v735_v12  ;;  %v773_v26 = vadd.f32 %v772_v25, %v771_v24 }
  0xef   : > { %774 = vst [vmem:[%s406_s14] sm:$0x1] %v773_v26 }
  0xf0 PF: > { %s16_s20 = sadd.s32 1, %s1218_s20   ;;  %s1353_s18 = smov %s1214_s19 }
  0xf1   : > { %p13_p5 = scmp.ge.s32.totalorder %s16_s20, 6   ;;  %s1354_s19 = smov %s1356_s21 }
  0xf3   :  { %15 = sbr.rel (!%p13_p5) target bundleno = 2 (0x2), region = 100 }

// kernel: _lambda_.32
= control target key start
LH: loop header
LB: loop body
LE: loop exit
PB: predicated region body
PF: predicated region fallthrough
CT: control target
= control target key end

     0   :  { %s110_s0 = inlined_call_operand.vmem [shape: bf16[32,128], index: 0, kind: input, shape index: {}]   ;;  %s111_s1 = inlined_call_operand.vmem [shape: f32[1,128], index: 1, kind: input, shape index: {}]   ;;  %s112_s2 = inlined_call_operand.vmem [shape: f32[1,128], index: 2, kind: input, shape index: {}]   ;;  %s113_s3 = inlined_call_operand.vmem [shape: bf16[32,128], index: 3, kind: output, shape index: {}]  }
   0x1   :  { %v51_v0 = vld [vmem:[%s110_s0] sm:$0xff]   ;;  %v68_v5 = vld [vmem:[%s110_s0 + $0x8] sm:$0xff]  }
   0x2   :  { %v70_v1 = vld [vmem:[%s111_s1] ss:$0 sm:$0xff]  ;;  %v52_v2 = vunpack.c.l.bf16 %v51_v0  ;;  %v53_v3 = vunpack.c.h.bf16 %v51_v0  ;;  %v56_v6 = vunpack.c.l.bf16 %v68_v5  ;;  %v57_v7 = vunpack.c.h.bf16 %v68_v5 }
   0x3   :  { %v71_v4 = vld [vmem:[%s112_s2] ss:$0 sm:$0xff] }
   0x4   :  { %v26_v8 = vmul.f32 %v70_v1, %v52_v2  ;;  %v27_v9 = vmul.f32 %v70_v1, %v53_v3  ;;  %v28_v10 = vmul.f32 %v70_v1, %v56_v6  ;;  %v29_v11 = vmul.f32 %v70_v1, %v57_v7 }
   0x6   :  { %v34_v12 = vadd.f32 %v71_v4, %v26_v8  ;;  %v35_v13 = vadd.f32 %v71_v4, %v27_v9  ;;  %v36_v14 = vadd.f32 %v71_v4, %v28_v10  ;;  %v37_v15 = vadd.f32 %v71_v4, %v29_v11 }
   0x8   :  { %v61_v16 = vpack.c.bf16 %v35_v13, %v34_v12  ;;  %v66_v17 = vpack.c.bf16 %v37_v15, %v36_v14 }
   0xa   :  { %62 = vst [vmem:[%s113_s3] sm:$0xff] %v61_v16  }
   0xb   :  { %69 = vst [vmem:[%s113_s3 + $0x8] sm:$0xff] %v66_v17  }

// kernel: _lambda_.33
= control target key start
LH: loop header
LB: loop body
LE: loop exit
PB: predicated region body
PF: predicated region fallthrough
CT: control target
= control target key end

     0   :  { %s1926_s12 = smov 0   ;;  %s1928_s13 = smov 0   ;;  %s2168_s0 = inlined_call_operand.vmem [shape: bf16[4,512,64], index: 0, kind: input, shape index: {}]   ;;  %s2169_s1 = inlined_call_operand.vmem [shape: bf16[4,64,128], index: 1, kind: input, shape index: {}]   ;;  %s2170_s2 = inlined_call_operand.vmem [shape: f32[1,128], index: 2, kind: input, shape index: {}]   ;;  %s2171_s3 = inlined_call_operand.vmem [shape: f32[4,512,128], index: 3, kind: output, shape index: {}]  }
   0x1   :  { %s1930_s14 = smov 0  }
   0x2 LB: > { %s39_s15 = sadd.s32 1, %s1900_s13  ;;  %p1494_p0 = scmp.ge.s32.totalorder %s1904_s14, 1  ;;  %s1904_s14 = sphi %s1930_s14, %s13_s14   ;;  %s1900_s13 = sphi %s1928_s13, %s2173_s13   ;;  %s1896_s12 = sphi %s1926_s12, %s2172_s12  }
   0x3   : > { %p41_p1 = scmp.ge.s32.totalorder %s39_s15, 4  ;;  %p209_p2 = scmp.lt.s32.totalorder %s1904_s14, 5 }
   0x5   : > { %s2175_s15 = smov (%p41_p1, %s39_s15), 0  ;;  %p210_p3 = pnand %p1494_p0, %p209_p2 }
   0x6   : > { %p263_p4 = scmp.lt.s32.totalorder (!%p210_p3), %s1896_s12, 3 }
   0x7   : > { %213 = sbr.rel (%p210_p3) target bundleno = 295 (0x127), region = 32 }
   0xc   : > { %s2177_s12 = smov (!%p263_p4, %s1896_s12), 3  ;;  %vm693_vm0 = vcmask 523264  }
   0xd   : > { %s1551_s16 = sshll.u32 %s2177_s12, 8  ;;  %s1552_s17 = sshll.u32 %s2177_s12, 5 }
   0xe   : > { %s1951_s20 = scalar_lea.vmem %s2168_s0, %s1551_s16  ;;  %s286_s23 = scalar_lea.vmem %s2169_s1, %s1552_s17 }
   0xf   : > { %v1557_v0 = vld [vmem:[%s286_s23 + $0x18] sm:$0xff]  ;;  %v1556_v1 = vld [vmem:[%s286_s23 + $0x10] sm:$0xff]  ;;  %v1559_v2 = vld [vmem:[%s1951_s20] sm:$0xff]   ;;  %s1553_s26 = sshll.u32 %s2177_s12, 9 }
  0x10   : > { %794 = vmatpush.bf16.msra.mxu0 %v1557_v0  ;;  %1717 = vmatpush.bf16.msra.mxu1 %v1557_v0  ;;  %v1693_v3 = vld [vmem:[%s1951_s20 + $0x40] sm:$0xff]   ;;  %v1560_v6 = vunpack.c.l.bf16 %v1559_v2  ;;  %v1561_v7 = vunpack.c.h.bf16 %v1559_v2  ;;  %v1555_v10 = vld [vmem:[%s286_s23 + $0x8] sm:$0xff]  ;;  %v1687_v52 = vld [vmem:[%s1951_s20 + $0x10] sm:$0xff]   ;;  %s2031_s29 = scalar_lea.vmem %s2171_s3, %s1553_s26 }
  0x11   : > { %1718 = vmatpush.bf16.msra.mxu2 %v1557_v0  ;;  %1719 = vmatpush.bf16.msra.mxu3 %v1557_v0  ;;  %v1701_v4 = vld [vmem:[%s1951_s20 + $0x80] sm:$0xff]   ;;  %v1592_v8 = vunpack.c.l.bf16 %v1693_v3  ;;  %v1593_v9 = vunpack.c.h.bf16 %v1693_v3  ;;  %v1686_v28 = vld [vmem:[%s1951_s20 + $0x8] sm:$0xff]   ;;  %v1695_v53 = vld [vmem:[%s1951_s20 + $0x50] sm:$0xff]   ;;  %v1568_v56 = vunpack.c.l.bf16 %v1687_v52  ;;  %v1569_v57 = vunpack.c.h.bf16 %v1687_v52 }
  0x12   : > { %v1709_v5 = vld [vmem:[%s1951_s20 + $0xc0] sm:$0xff]   ;;  %v1624_v11 = vunpack.c.l.bf16 %v1701_v4  ;;  %v1625_v12 = vunpack.c.h.bf16 %v1701_v4  ;;  %v501_v15 = vmax.f32 %v1560_v6, 0.0  ;;  %v502_v16 = vmax.f32 %v1561_v7, 0.0  ;;  %v1694_v29 = vld [vmem:[%s1951_s20 + $0x48] sm:$0xff]   ;;  %v1703_v54 = vld [vmem:[%s1951_s20 + $0x90] sm:$0xff]  }
  0x13   : > { %v1656_v13 = vunpack.c.l.bf16 %v1709_v5  ;;  %v1657_v14 = vunpack.c.h.bf16 %v1709_v5  ;;  %v517_v17 = vmax.f32 %v1592_v8, 0.0  ;;  %v518_v18 = vmax.f32 %v1593_v9, 0.0  ;;  %v1554_v19 = vld [vmem:[%s286_s23] sm:$0xff]  ;;  %v1702_v30 = vld [vmem:[%s1951_s20 + $0x88] sm:$0xff]   ;;  %v1711_v55 = vld [vmem:[%s1951_s20 + $0xd0] sm:$0xff]  }
  0x14   : > { %795 = vmatpush.bf16.msra.mxu0 %v1556_v1  ;;  %1720 = vmatpush.bf16.msra.mxu1 %v1556_v1  ;;  %v533_v20 = vmax.f32 %v1624_v11, 0.0  ;;  %v534_v21 = vmax.f32 %v1625_v12, 0.0  ;;  %v565_v24 = vpack.c.bf16 %v502_v16, %v501_v15  ;;  %v1710_v31 = vld [vmem:[%s1951_s20 + $0xc8] sm:$0xff]   ;;  %v1564_v32 = vunpack.c.l.bf16 %v1686_v28  ;;  %v1688_v12 = vld [vmem:[%s1951_s20 + $0x18] sm:$0xff]  }
  0x15   : > { %1721 = vmatpush.bf16.msra.mxu2 %v1556_v1  ;;  %1722 = vmatpush.bf16.msra.mxu3 %v1556_v1  ;;  %v549_v22 = vmax.f32 %v1656_v13, 0.0  ;;  %v550_v23 = vmax.f32 %v1657_v14, 0.0  ;;  %v573_v25 = vpack.c.bf16 %v518_v18, %v517_v17  ;;  %v1565_v33 = vunpack.c.h.bf16 %v1686_v28  ;;  %v1696_v13 = vld [vmem:[%s1951_s20 + $0x58] sm:$0xff]  }
  0x16   : > { %v581_v26 = vpack.c.bf16 %v534_v21, %v533_v20  ;;  %v1596_v34 = vunpack.c.l.bf16 %v1694_v29  ;;  %v1597_v35 = vunpack.c.h.bf16 %v1694_v29  ;;  %v1628_v36 = vunpack.c.l.bf16 %v1702_v30  ;;  %v1704_v14 = vld [vmem:[%s1951_s20 + $0x98] sm:$0xff]  }
  0x17   : > { %v589_v27 = vpack.c.bf16 %v550_v23, %v549_v22  ;;  %v1629_v37 = vunpack.c.h.bf16 %v1702_v30  ;;  %v1660_v38 = vunpack.c.l.bf16 %v1710_v31  ;;  %v1661_v39 = vunpack.c.h.bf16 %v1710_v31  ;;  %v1712_v15 = vld [vmem:[%s1951_s20 + $0xd8] sm:$0xff]  }
  0x18   : > { %796 = vmatpush.bf16.msra.mxu0 %v1555_v10  ;;  %1723 = vmatpush.bf16.msra.mxu1 %v1555_v10  ;;  %v503_v40 = vmax.f32 %v1564_v32, 0.0  ;;  %v504_v41 = vmax.f32 %v1565_v33, 0.0  ;;  %v519_v42 = vmax.f32 %v1596_v34, 0.0  ;;  %v520_v43 = vmax.f32 %v1597_v35, 0.0 }
  0x19   : > { %1724 = vmatpush.bf16.msra.mxu2 %v1555_v10  ;;  %1725 = vmatpush.bf16.msra.mxu3 %v1555_v10  ;;  %v535_v44 = vmax.f32 %v1628_v36, 0.0  ;;  %v536_v45 = vmax.f32 %v1629_v37, 0.0  ;;  %v551_v46 = vmax.f32 %v1660_v38, 0.0  ;;  %v552_v47 = vmax.f32 %v1661_v39, 0.0  ;;  %v1689_v36 = vld [vmem:[%s1951_s20 + $0x20] sm:$0xff]  }
  0x1a   : > { %v566_v48 = vpack.c.bf16 %v504_v41, %v503_v40  ;;  %v574_v49 = vpack.c.bf16 %v520_v43, %v519_v42  ;;  %v1600_v58 = vunpack.c.l.bf16 %v1695_v53  ;;  %v1601_v59 = vunpack.c.h.bf16 %v1695_v53  ;;  %v1697_v37 = vld [vmem:[%s1951_s20 + $0x60] sm:$0xff]  }
  0x1b   : > { %v582_v50 = vpack.c.bf16 %v536_v45, %v535_v44  ;;  %v590_v51 = vpack.c.bf16 %v552_v47, %v551_v46  ;;  %v1632_v60 = vunpack.c.l.bf16 %v1703_v54  ;;  %v1633_v61 = vunpack.c.h.bf16 %v1703_v54  ;;  %v1705_v38 = vld [vmem:[%s1951_s20 + $0xa0] sm:$0xff]  }
  0x1c   : > { %797 = vmatpush.bf16.msra.mxu0 %v1554_v19  ;;  %1726 = vmatpush.bf16.msra.mxu1 %v1554_v19  ;;  %v1664_v62 = vunpack.c.l.bf16 %v1711_v55  ;;  %v1665_v63 = vunpack.c.h.bf16 %v1711_v55  ;;  %v505_v0 = vmax.f32 %v1568_v56, 0.0  ;;  %v506_v1 = vmax.f32 %v1569_v57, 0.0  ;;  %v1713_v39 = vld [vmem:[%s1951_s20 + $0xe0] sm:$0xff]  }
  0x1d   : > { %1727 = vmatpush.bf16.msra.mxu2 %v1554_v19  ;;  %1728 = vmatpush.bf16.msra.mxu3 %v1554_v19  ;;  %v521_v2 = vmax.f32 %v1600_v58, 0.0  ;;  %v522_v3 = vmax.f32 %v1601_v59, 0.0  ;;  %v537_v4 = vmax.f32 %v1632_v60, 0.0  ;;  %v538_v5 = vmax.f32 %v1633_v61, 0.0  ;;  %v1690_v60 = vld [vmem:[%s1951_s20 + $0x28] sm:$0xff]  }
  0x1e   : > { %v553_v6 = vmax.f32 %v1664_v62, 0.0  ;;  %v554_v7 = vmax.f32 %v1665_v63, 0.0  ;;  %v567_v8 = vpack.c.bf16 %v506_v1, %v505_v0  ;;  %v1572_v16 = vunpack.c.l.bf16 %v1688_v12  ;;  %v1698_v61 = vld [vmem:[%s1951_s20 + $0x68] sm:$0xff]  }
  0x1f   : > { %1517 = vmatmul.msk.bf16.vlgmr.msra.gmra.mxu0 %vm693_vm0, %v565_v24  ;;  %1525 = vmatmul.msk.bf16.vlgmr.msra.gmra.mxu1 %vm693_vm0, %v573_v25  ;;  %v575_v9 = vpack.c.bf16 %v522_v3, %v521_v2  ;;  %v583_v10 = vpack.c.bf16 %v538_v5, %v537_v4  ;;  %v1573_v17 = vunpack.c.h.bf16 %v1688_v12  ;;  %v1604_v18 = vunpack.c.l.bf16 %v1696_v13  ;;  %v1706_v62 = vld [vmem:[%s1951_s20 + $0xa8] sm:$0xff]  }
  0x20   : > { %1533 = vmatmul.msk.bf16.vlgmr.msra.gmra.mxu2 %vm693_vm0, %v581_v26  ;;  %1541 = vmatmul.msk.bf16.vlgmr.msra.gmra.mxu3 %vm693_vm0, %v589_v27  ;;  %v591_v11 = vpack.c.bf16 %v554_v7, %v553_v6  ;;  %v1605_v19 = vunpack.c.h.bf16 %v1696_v13  ;;  %v1636_v20 = vunpack.c.l.bf16 %v1704_v14  ;;  %v1637_v21 = vunpack.c.h.bf16 %v1704_v14  ;;  %v1714_v63 = vld [vmem:[%s1951_s20 + $0xe8] sm:$0xff]  }
  0x21   : > { %v1668_v22 = vunpack.c.l.bf16 %v1712_v15  ;;  %v1669_v23 = vunpack.c.h.bf16 %v1712_v15  ;;  %v507_v24 = vmax.f32 %v1572_v16, 0.0  ;;  %v508_v25 = vmax.f32 %v1573_v17, 0.0 }
  0x22   : > { %v523_v26 = vmax.f32 %v1604_v18, 0.0  ;;  %v524_v27 = vmax.f32 %v1605_v19, 0.0  ;;  %v539_v28 = vmax.f32 %v1636_v20, 0.0  ;;  %v540_v29 = vmax.f32 %v1637_v21, 0.0  ;;  %v1691_v20 = vld [vmem:[%s1951_s20 + $0x30] sm:$0xff]  }
  0x23   : > { %v555_v30 = vmax.f32 %v1668_v22, 0.0  ;;  %v556_v31 = vmax.f32 %v1669_v23, 0.0  ;;  %v568_v32 = vpack.c.bf16 %v508_v25, %v507_v24  ;;  %v1576_v40 = vunpack.c.l.bf16 %v1689_v36  ;;  %v1699_v21 = vld [vmem:[%s1951_s20 + $0x70] sm:$0xff]  }
  0x24   : > { %v576_v33 = vpack.c.bf16 %v524_v27, %v523_v26  ;;  %v584_v34 = vpack.c.bf16 %v540_v29, %v539_v28  ;;  %v1577_v41 = vunpack.c.h.bf16 %v1689_v36  ;;  %v1608_v42 = vunpack.c.l.bf16 %v1697_v37  ;;  %v1707_v22 = vld [vmem:[%s1951_s20 + $0xb0] sm:$0xff]  }
  0x25   : > { %v592_v35 = vpack.c.bf16 %v556_v31, %v555_v30  ;;  %v1609_v43 = vunpack.c.h.bf16 %v1697_v37  ;;  %v1640_v44 = vunpack.c.l.bf16 %v1705_v38  ;;  %v1641_v45 = vunpack.c.h.bf16 %v1705_v38  ;;  %v1715_v23 = vld [vmem:[%s1951_s20 + $0xf0] sm:$0xff]  }
  0x26   : > { %v1672_v46 = vunpack.c.l.bf16 %v1713_v39  ;;  %v1673_v47 = vunpack.c.h.bf16 %v1713_v39  ;;  %v1580_v0 = vunpack.c.l.bf16 %v1690_v60  ;;  %v1581_v1 = vunpack.c.h.bf16 %v1690_v60 }
  0x27   : > { %v541_v52 = vmax.f32 %v1640_v44, 0.0  ;;  %v542_v53 = vmax.f32 %v1641_v45, 0.0  ;;  %v1612_v2 = vunpack.c.l.bf16 %v1698_v61  ;;  %v1613_v3 = vunpack.c.h.bf16 %v1698_v61  ;;  %v1692_v44 = vld [vmem:[%s1951_s20 + $0x38] sm:$0xff]  }
  0x28   : > { %v557_v54 = vmax.f32 %v1672_v46, 0.0  ;;  %v558_v55 = vmax.f32 %v1673_v47, 0.0  ;;  %v1644_v4 = vunpack.c.l.bf16 %v1706_v62  ;;  %v1645_v5 = vunpack.c.h.bf16 %v1706_v62  ;;  %v1700_v45 = vld [vmem:[%s1951_s20 + $0x78] sm:$0xff]  }
  0x29   : > { %v585_v58 = vpack.c.bf16 %v542_v53, %v541_v52  ;;  %v1676_v6 = vunpack.c.l.bf16 %v1714_v63  ;;  %v1677_v7 = vunpack.c.h.bf16 %v1714_v63  ;;  %v1584_v24 = vunpack.c.l.bf16 %v1691_v20  ;;  %v1708_v46 = vld [vmem:[%s1951_s20 + $0xb8] sm:$0xff]  }
  0x2a   : > { %v593_v59 = vpack.c.bf16 %v558_v55, %v557_v54  ;;  %v543_v12 = vmax.f32 %v1644_v4, 0.0  ;;  %v544_v13 = vmax.f32 %v1645_v5, 0.0  ;;  %v1585_v25 = vunpack.c.h.bf16 %v1691_v20  ;;  %v1716_v47 = vld [vmem:[%s1951_s20 + $0xf8] sm:$0xff]   ;;  %v2023_v4 = vld [vmem:[%s2170_s2] ss:$0 sm:$0xff] }
  0x2b   : > { %v559_v14 = vmax.f32 %v1676_v6, 0.0  ;;  %v560_v15 = vmax.f32 %v1677_v7, 0.0  ;;  %v1616_v26 = vunpack.c.l.bf16 %v1699_v21  ;;  %v1617_v27 = vunpack.c.h.bf16 %v1699_v21 }
  0x2c   : > { %v586_v18 = vpack.c.bf16 %v544_v13, %v543_v12  ;;  %v1648_v28 = vunpack.c.l.bf16 %v1707_v22  ;;  %v1649_v29 = vunpack.c.h.bf16 %v1707_v22  ;;  %v1680_v30 = vunpack.c.l.bf16 %v1715_v23 }
  0x2d   : > { %v594_v19 = vpack.c.bf16 %v560_v15, %v559_v14  ;;  %v1681_v31 = vunpack.c.h.bf16 %v1715_v23  ;;  %v1652_v52 = vunpack.c.l.bf16 %v1708_v46  ;;  %v1653_v53 = vunpack.c.h.bf16 %v1708_v46 }
  0x2e   : > { %v545_v36 = vmax.f32 %v1648_v28, 0.0  ;;  %v546_v37 = vmax.f32 %v1649_v29, 0.0  ;;  %v561_v38 = vmax.f32 %v1680_v30, 0.0  ;;  %v1684_v54 = vunpack.c.l.bf16 %v1716_v47 }
  0x2f   : > { %1518 = vmatmul.msk.bf16.gmra.mxu0 %vm693_vm0, %v566_v48  ;;  %1526 = vmatmul.msk.bf16.gmra.mxu1 %vm693_vm0, %v574_v49  ;;  %v509_v48 = vmax.f32 %v1576_v40, 0.0  ;;  %v510_v49 = vmax.f32 %v1577_v41, 0.0  ;;  %v562_v39 = vmax.f32 %v1681_v31, 0.0  ;;  %v1685_v55 = vunpack.c.h.bf16 %v1716_v47 }
  0x30   : > { %1534 = vmatmul.msk.bf16.gmra.mxu2 %vm693_vm0, %v582_v50  ;;  %1542 = vmatmul.msk.bf16.gmra.mxu3 %vm693_vm0, %v590_v51  ;;  %v525_v50 = vmax.f32 %v1608_v42, 0.0  ;;  %v526_v51 = vmax.f32 %v1609_v43, 0.0  ;;  %v587_v42 = vpack.c.bf16 %v546_v37, %v545_v36  ;;  %v547_v60 = vmax.f32 %v1652_v52, 0.0 }
  0x31   : > { %v569_v56 = vpack.c.bf16 %v510_v49, %v509_v48  ;;  %v595_v43 = vpack.c.bf16 %v562_v39, %v561_v38  ;;  %v1588_v48 = vunpack.c.l.bf16 %v1692_v44  ;;  %v1589_v49 = vunpack.c.h.bf16 %v1692_v44 }
  0x32   : > { %v577_v57 = vpack.c.bf16 %v526_v51, %v525_v50  ;;  %v1620_v50 = vunpack.c.l.bf16 %v1700_v45  ;;  %v1621_v51 = vunpack.c.h.bf16 %v1700_v45  ;;  %v548_v61 = vmax.f32 %v1653_v53, 0.0 }
  0x33   : > { %v563_v62 = vmax.f32 %v1684_v54, 0.0  ;;  %v564_v63 = vmax.f32 %v1685_v55, 0.0 }
  0x3f   : > { %1519 = vmatmul.msk.bf16.gmra.mxu0 %vm693_vm0, %v567_v8  ;;  %1527 = vmatmul.msk.bf16.gmra.mxu1 %vm693_vm0, %v575_v9  ;;  %v511_v8 = vmax.f32 %v1580_v0, 0.0  ;;  %v512_v9 = vmax.f32 %v1581_v1, 0.0 }
  0x40   : > { %1535 = vmatmul.msk.bf16.gmra.mxu2 %vm693_vm0, %v583_v10  ;;  %1543 = vmatmul.msk.bf16.gmra.mxu3 %vm693_vm0, %v591_v11  ;;  %v527_v10 = vmax.f32 %v1612_v2, 0.0  ;;  %v528_v11 = vmax.f32 %v1613_v3, 0.0  ;;  %v588_v2 = vpack.c.bf16 %v548_v61, %v547_v60  ;;  %v596_v3 = vpack.c.bf16 %v564_v63, %v563_v62 }
  0x41   : > { %v570_v16 = vpack.c.bf16 %v512_v9, %v511_v8 }
  0x42   : > { %v578_v17 = vpack.c.bf16 %v528_v11, %v527_v10 }
  0x4f   : > { %1520 = vmatmul.msk.bf16.gmra.mxu0 %vm693_vm0, %v568_v32  ;;  %1528 = vmatmul.msk.bf16.gmra.mxu1 %vm693_vm0, %v576_v33  ;;  %v513_v32 = vmax.f32 %v1584_v24, 0.0  ;;  %v514_v33 = vmax.f32 %v1585_v25, 0.0 }
  0x50   : > { %1536 = vmatmul.msk.bf16.gmra.mxu2 %vm693_vm0, %v584_v34  ;;  %1544 = vmatmul.msk.bf16.gmra.mxu3 %vm693_vm0, %v592_v35  ;;  %v529_v34 = vmax.f32 %v1616_v26, 0.0  ;;  %v530_v35 = vmax.f32 %v1617_v27, 0.0 }
  0x51   : > { %v571_v40 = vpack.c.bf16 %v514_v33, %v513_v32 }
  0x52   : > { %v579_v41 = vpack.c.bf16 %v530_v35, %v529_v34 }
  0x5f   : > { %1521 = vmatmul.msk.bf16.gmra.mxu0 %vm693_vm0, %v569_v56  ;;  %1529 = vmatmul.msk.bf16.gmra.mxu1 %vm693_vm0, %v577_v57  ;;  %v515_v56 = vmax.f32 %v1588_v48, 0.0  ;;  %v516_v57 = vmax.f32 %v1589_v49, 0.0 }
  0x60   : > { %1537 = vmatmul.msk.bf16.gmra.mxu2 %vm693_vm0, %v585_v58  ;;  %1545 = vmatmul.msk.bf16.gmra.mxu3 %vm693_vm0, %v593_v59  ;;  %v531_v58 = vmax.f32 %v1620_v50, 0.0  ;;  %v532_v59 = vmax.f32 %v1621_v51, 0.0 }
  0x61   : > { %v572_v0 = vpack.c.bf16 %v516_v57, %v515_v56 }
  0x62   : > { %v580_v1 = vpack.c.bf16 %v532_v59, %v531_v58 }
  0x6f   : > { %1522 = vmatmul.msk.bf16.gmra.mxu0 %vm693_vm0, %v570_v16  ;;  %1530 = vmatmul.msk.bf16.gmra.mxu1 %vm693_vm0, %v578_v17 }
  0x70   : > { %1538 = vmatmul.msk.bf16.gmra.mxu2 %vm693_vm0, %v586_v18  ;;  %1546 = vmatmul.msk.bf16.gmra.mxu3 %vm693_vm0, %v594_v19 }
  0x7f   : > { %1523 = vmatmul.msk.bf16.gmra.mxu0 %vm693_vm0, %v571_v40  ;;  %1531 = vmatmul.msk.bf16.gmra.mxu1 %vm693_vm0, %v579_v41 }
  0x80   : > { %1539 = vmatmul.msk.bf16.gmra.mxu2 %vm693_vm0, %v587_v42  ;;  %1547 = vmatmul.msk.bf16.gmra.mxu3 %vm693_vm0, %v595_v43 }
  0x8f   : > { %1524 = vmatmul.msk.bf16.gmra.mxu0 %vm693_vm0, %v572_v0  ;;  %1532 = vmatmul.msk.bf16.gmra.mxu1 %vm693_vm0, %v580_v1 }
  0x90   : > { %1540 = vmatmul.msk.bf16.gmra.mxu2 %vm693_vm0, %v588_v2  ;;  %1548 = vmatmul.msk.bf16.gmra.mxu3 %vm693_vm0, %v596_v3 }
  0x9c   : > { %v799_v5 = vpop.f32.mrf.mxu0  ;;  %v839_v6 = vpop.f32.mrf.mxu1 }
  0x9d   : > { %v1158_v7 = vadd.f32 %v2023_v4, %v799_v5  ;;  %v1174_v8 = vadd.f32 %v2023_v4, %v839_v6 }
  0x9f   : > { %1754 = vtanh.f32 %v1158_v7 }
  0xa0   : > { %1756 = vtanh.f32 %v1174_v8 }
  0xa3   : > { %v879_v9 = vpop.f32.mrf.mxu2  ;;  %v919_v10 = vpop.f32.mrf.mxu3 }
  0xa4   : > { %v1190_v11 = vadd.f32 %v2023_v4, %v879_v9  ;;  %v1206_v12 = vadd.f32 %v2023_v4, %v919_v10  ;;  %v801_v13 = vpop.f32.mrf.mxu0  ;;  %v841_v14 = vpop.f32.mrf.mxu1 }
  0xa5   : > { %v1755_v15 = vpop.eup %1754  ;;  %v1159_v16 = vadd.f32 %v2023_v4, %v801_v13  ;;  %v1175_v17 = vadd.f32 %v2023_v4, %v841_v14 }
  0xa6   : > { %v1757_v18 = vpop.eup %1756  ;;  %1286 = vst [vmem:[%s2031_s29] sm:$0xff] %v1755_v15  ;;  %1758 = vtanh.f32 %v1190_v11 }
  0xa7   : > { %1302 = vst [vmem:[%s2031_s29 + $0x80] sm:$0xff] %v1757_v18  ;;  %1760 = vtanh.f32 %v1206_v12 }
  0xa8   : > { %1762 = vtanh.f32 %v1159_v16 }
  0xa9   : > { %1764 = vtanh.f32 %v1175_v17 }
  0xab   : > { %v881_v19 = vpop.f32.mrf.mxu2  ;;  %v921_v20 = vpop.f32.mrf.mxu3 }
  0xac   : > { %v1759_v21 = vpop.eup %1758  ;;  %v1191_v22 = vadd.f32 %v2023_v4, %v881_v19  ;;  %v1207_v23 = vadd.f32 %v2023_v4, %v921_v20  ;;  %v804_v24 = vpop.f32.mrf.mxu0 }
  0xad   : > { %v844_v25 = vpop.f32.mrf.mxu1  ;;  %v1761_v26 = vpop.eup %1760  ;;  %1318 = vst [vmem:[%s2031_s29 + $0x100] sm:$0xff] %v1759_v21  ;;  %v1160_v27 = vadd.f32 %v2023_v4, %v804_v24 }
  0xae   : > { %v1176_v28 = vadd.f32 %v2023_v4, %v844_v25  ;;  %v1763_v29 = vpop.eup %1762  ;;  %1334 = vst [vmem:[%s2031_s29 + $0x180] sm:$0xff] %v1761_v26  ;;  %1766 = vtanh.f32 %v1191_v22 }
  0xaf   : > { %v1765_v30 = vpop.eup %1764  ;;  %1287 = vst [vmem:[%s2031_s29 + $0x8] sm:$0xff] %v1763_v29  ;;  %1768 = vtanh.f32 %v1207_v23 }
  0xb0   : > { %1303 = vst [vmem:[%s2031_s29 + $0x88] sm:$0xff] %v1765_v30  ;;  %1770 = vtanh.f32 %v1160_v27 }
  0xb1   : > { %1772 = vtanh.f32 %v1176_v28 }
  0xb3   : > { %v884_v31 = vpop.f32.mrf.mxu2  ;;  %v924_v32 = vpop.f32.mrf.mxu3 }
  0xb4   : > { %v1767_v33 = vpop.eup %1766  ;;  %v1192_v34 = vadd.f32 %v2023_v4, %v884_v31  ;;  %v1208_v35 = vadd.f32 %v2023_v4, %v924_v32  ;;  %v806_v36 = vpop.f32.mrf.mxu0 }
  0xb5   : > { %v846_v37 = vpop.f32.mrf.mxu1  ;;  %v1769_v38 = vpop.eup %1768  ;;  %1319 = vst [vmem:[%s2031_s29 + $0x108] sm:$0xff] %v1767_v33  ;;  %v1161_v39 = vadd.f32 %v2023_v4, %v806_v36 }
  0xb6   : > { %v1177_v40 = vadd.f32 %v2023_v4, %v846_v37  ;;  %v1771_v41 = vpop.eup %1770  ;;  %1335 = vst [vmem:[%s2031_s29 + $0x188] sm:$0xff] %v1769_v38  ;;  %1774 = vtanh.f32 %v1192_v34 }
  0xb7   : > { %v1773_v42 = vpop.eup %1772  ;;  %1288 = vst [vmem:[%s2031_s29 + $0x10] sm:$0xff] %v1771_v41  ;;  %1776 = vtanh.f32 %v1208_v35 }
  0xb8   : > { %1304 = vst [vmem:[%s2031_s29 + $0x90] sm:$0xff] %v1773_v42  ;;  %1778 = vtanh.f32 %v1161_v39 }
  0xb9   : > { %1780 = vtanh.f32 %v1177_v40 }
  0xbb   : > { %v886_v43 = vpop.f32.mrf.mxu2  ;;  %v926_v44 = vpop.f32.mrf.mxu3 }
  0xbc   : > { %v1775_v45 = vpop.eup %1774  ;;  %v1193_v46 = vadd.f32 %v2023_v4, %v886_v43  ;;  %v1209_v47 = vadd.f32 %v2023_v4, %v926_v44  ;;  %v809_v48 = vpop.f32.mrf.mxu0 }
  0xbd   : > { %v849_v49 = vpop.f32.mrf.mxu1  ;;  %v1777_v50 = vpop.eup %1776  ;;  %1320 = vst [vmem:[%s2031_s29 + $0x110] sm:$0xff] %v1775_v45  ;;  %v1162_v51 = vadd.f32 %v2023_v4, %v809_v48 }
  0xbe   : > { %v1178_v52 = vadd.f32 %v2023_v4, %v849_v49  ;;  %v1779_v53 = vpop.eup %1778  ;;  %1336 = vst [vmem:[%s2031_s29 + $0x190] sm:$0xff] %v1777_v50  ;;  %1782 = vtanh.f32 %v1193_v46 }
  0xbf   : > { %v1781_v54 = vpop.eup %1780  ;;  %1289 = vst [vmem:[%s2031_s29 + $0x18] sm:$0xff] %v1779_v53  ;;  %1784 = vtanh.f32 %v1209_v47 }
  0xc0   : > { %1305 = vst [vmem:[%s2031_s29 + $0x98] sm:$0xff] %v1781_v54  ;;  %1786 = vtanh.f32 %v1162_v51 }
  0xc1   : > { %1788 = vtanh.f32 %v1178_v52 }
  0xc3   : > { %v889_v55 = vpop.f32.mrf.mxu2  ;;  %v929_v56 = vpop.f32.mrf.mxu3 }
  0xc4   : > { %v1783_v57 = vpop.eup %1782  ;;  %v1194_v58 = vadd.f32 %v2023_v4, %v889_v55  ;;  %v1210_v59 = vadd.f32 %v2023_v4, %v929_v56  ;;  %v811_v60 = vpop.f32.mrf.mxu0 }
  0xc5   : > { %v851_v61 = vpop.f32.mrf.mxu1  ;;  %v1785_v62 = vpop.eup %1784  ;;  %1321 = vst [vmem:[%s2031_s29 + $0x118] sm:$0xff] %v1783_v57  ;;  %v1163_v63 = vadd.f32 %v2023_v4, %v811_v60 }
  0xc6   : > { %v1179_v0 = vadd.f32 %v2023_v4, %v851_v61  ;;  %v1787_v1 = vpop.eup %1786  ;;  %1337 = vst [vmem:[%s2031_s29 + $0x198] sm:$0xff] %v1785_v62  ;;  %1790 = vtanh.f32 %v1194_v58 }
  0xc7   : > { %v1789_v2 = vpop.eup %1788  ;;  %1290 = vst [vmem:[%s2031_s29 + $0x20] sm:$0xff] %v1787_v1  ;;  %1792 = vtanh.f32 %v1210_v59 }
  0xc8   : > { %1306 = vst [vmem:[%s2031_s29 + $0xa0] sm:$0xff] %v1789_v2  ;;  %1794 = vtanh.f32 %v1163_v63 }
  0xc9   : > { %1796 = vtanh.f32 %v1179_v0 }
  0xcb   : > { %v891_v3 = vpop.f32.mrf.mxu2  ;;  %v931_v5 = vpop.f32.mrf.mxu3 }
  0xcc   : > { %v1791_v6 = vpop.eup %1790  ;;  %v1195_v7 = vadd.f32 %v2023_v4, %v891_v3  ;;  %v1211_v8 = vadd.f32 %v2023_v4, %v931_v5  ;;  %v814_v9 = vpop.f32.mrf.mxu0 }
  0xcd   : > { %v854_v10 = vpop.f32.mrf.mxu1  ;;  %v1793_v11 = vpop.eup %1792  ;;  %1322 = vst [vmem:[%s2031_s29 + $0x120] sm:$0xff] %v1791_v6  ;;  %v1164_v12 = vadd.f32 %v2023_v4, %v814_v9 }
  0xce   : > { %v1180_v13 = vadd.f32 %v2023_v4, %v854_v10  ;;  %v1795_v14 = vpop.eup %1794  ;;  %1338 = vst [vmem:[%s2031_s29 + $0x1a0] sm:$0xff] %v1793_v11  ;;  %1798 = vtanh.f32 %v1195_v7 }
  0xcf   : > { %v1797_v15 = vpop.eup %1796  ;;  %1291 = vst [vmem:[%s2031_s29 + $0x28] sm:$0xff] %v1795_v14  ;;  %1800 = vtanh.f32 %v1211_v8 }
  0xd0   : > { %1307 = vst [vmem:[%s2031_s29 + $0xa8] sm:$0xff] %v1797_v15  ;;  %1802 = vtanh.f32 %v1164_v12 }
  0xd1   : > { %1804 = vtanh.f32 %v1180_v13 }
  0xd3   : > { %v894_v16 = vpop.f32.mrf.mxu2  ;;  %v934_v17 = vpop.f32.mrf.mxu3 }
  0xd4   : > { %v1799_v18 = vpop.eup %1798  ;;  %v1196_v19 = vadd.f32 %v2023_v4, %v894_v16  ;;  %v1212_v20 = vadd.f32 %v2023_v4, %v934_v17  ;;  %v816_v21 = vpop.f32.mrf.mxu0 }
  0xd5   : > { %v856_v22 = vpop.f32.mrf.mxu1  ;;  %v1801_v23 = vpop.eup %1800  ;;  %1323 = vst [vmem:[%s2031_s29 + $0x128] sm:$0xff] %v1799_v18  ;;  %v1165_v24 = vadd.f32 %v2023_v4, %v816_v21 }
  0xd6   : > { %v1181_v25 = vadd.f32 %v2023_v4, %v856_v22  ;;  %v1803_v26 = vpop.eup %1802  ;;  %1339 = vst [vmem:[%s2031_s29 + $0x1a8] sm:$0xff] %v1801_v23  ;;  %1806 = vtanh.f32 %v1196_v19 }
  0xd7   : > { %v1805_v27 = vpop.eup %1804  ;;  %1292 = vst [vmem:[%s2031_s29 + $0x30] sm:$0xff] %v1803_v26  ;;  %1808 = vtanh.f32 %v1212_v20 }
  0xd8   : > { %1308 = vst [vmem:[%s2031_s29 + $0xb0] sm:$0xff] %v1805_v27  ;;  %1810 = vtanh.f32 %v1165_v24 }
  0xd9   : > { %1812 = vtanh.f32 %v1181_v25 }
  0xdb   : > { %v896_v28 = vpop.f32.mrf.mxu2  ;;  %v936_v29 = vpop.f32.mrf.mxu3 }
  0xdc   : > { %v1807_v30 = vpop.eup %1806  ;;  %v1197_v31 = vadd.f32 %v2023_v4, %v896_v28  ;;  %v1213_v32 = vadd.f32 %v2023_v4, %v936_v29  ;;  %v819_v33 = vpop.f32.mrf.mxu0 }
  0xdd   : > { %v859_v34 = vpop.f32.mrf.mxu1  ;;  %v1809_v35 = vpop.eup %1808  ;;  %1324 = vst [vmem:[%s2031_s29 + $0x130] sm:$0xff] %v1807_v30  ;;  %v1166_v36 = vadd.f32 %v2023_v4, %v819_v33 }
  0xde   : > { %v1182_v37 = vadd.f32 %v2023_v4, %v859_v34  ;;  %v1811_v38 = vpop.eup %1810  ;;  %1340 = vst [vmem:[%s2031_s29 + $0x1b0] sm:$0xff] %v1809_v35  ;;  %1814 = vtanh.f32 %v1197_v31 }
  0xdf   : > { %v1813_v39 = vpop.eup %1812  ;;  %1293 = vst [vmem:[%s2031_s29 + $0x38] sm:$0xff] %v1811_v38  ;;  %1816 = vtanh.f32 %v1213_v32 }
  0xe0   : > { %1309 = vst [vmem:[%s2031_s29 + $0xb8] sm:$0xff] %v1813_v39  ;;  %1818 = vtanh.f32 %v1166_v36 }
  0xe1   : > { %1820 = vtanh.f32 %v1182_v37 }
  0xe3   : > { %v899_v40 = vpop.f32.mrf.mxu2  ;;  %v939_v41 = vpop.f32.mrf.mxu3 }
  0xe4   : > { %v1815_v42 = vpop.eup %1814  ;;  %v1198_v43 = vadd.f32 %v2023_v4, %v899_v40  ;;  %v1214_v44 = vadd.f32 %v2023_v4, %v939_v41  ;;  %v821_v45 = vpop.f32.mrf.mxu0 }
  0xe5   : > { %v861_v46 = vpop.f32.mrf.mxu1  ;;  %v1817_v47 = vpop.eup %1816  ;;  %1325 = vst [vmem:[%s2031_s29 + $0x138] sm:$0xff] %v1815_v42  ;;  %v1167_v48 = vadd.f32 %v2023_v4, %v821_v45 }
  0xe6   : > { %v1183_v49 = vadd.f32 %v2023_v4, %v861_v46  ;;  %v1819_v50 = vpop.eup %1818  ;;  %1341 = vst [vmem:[%s2031_s29 + $0x1b8] sm:$0xff] %v1817_v47  ;;  %1822 = vtanh.f32 %v1198_v43 }
  0xe7   : > { %v1821_v51 = vpop.eup %1820  ;;  %1294 = vst [vmem:[%s2031_s29 + $0x40] sm:$0xff] %v1819_v50  ;;  %1824 = vtanh.f32 %v1214_v44 }
  0xe8   : > { %1310 = vst [vmem:[%s2031_s29 + $0xc0] sm:$0xff] %v1821_v51  ;;  %1826 = vtanh.f32 %v1167_v48 }
  0xe9   : > { %1828 = vtanh.f32 %v1183_v49 }
  0xeb   : > { %v901_v52 = vpop.f32.mrf.mxu2  ;;  %v941_v53 = vpop.f32.mrf.mxu3 }
  0xec   : > { %v1823_v54 = vpop.eup %1822  ;;  %v1199_v55 = vadd.f32 %v2023_v4, %v901_v52  ;;  %v1215_v56 = vadd.f32 %v2023_v4, %v941_v53  ;;  %v824_v57 = vpop.f32.mrf.mxu0 }
  0xed   : > { %v864_v58 = vpop.f32.mrf.mxu1  ;;  %v1825_v59 = vpop.eup %1824  ;;  %1326 = vst [vmem:[%s2031_s29 + $0x140] sm:$0xff] %v1823_v54  ;;  %v1168_v60 = vadd.f32 %v2023_v4, %v824_v57 }
  0xee   : > { %v1184_v61 = vadd.f32 %v2023_v4, %v864_v58  ;;  %v1827_v62 = vpop.eup %1826  ;;  %1342 = vst [vmem:[%s2031_s29 + $0x1c0] sm:$0xff] %v1825_v59  ;;  %1830 = vtanh.f32 %v1199_v55 }
  0xef   : > { %v1829_v63 = vpop.eup %1828  ;;  %1295 = vst [vmem:[%s2031_s29 + $0x48] sm:$0xff] %v1827_v62  ;;  %1832 = vtanh.f32 %v1215_v56 }
  0xf0   : > { %1311 = vst [vmem:[%s2031_s29 + $0xc8] sm:$0xff] %v1829_v63  ;;  %1834 = vtanh.f32 %v1168_v60 }
  0xf1   : > { %1836 = vtanh.f32 %v1184_v61 }
  0xf3   : > { %v904_v0 = vpop.f32.mrf.mxu2  ;;  %v944_v1 = vpop.f32.mrf.mxu3 }
  0xf4   : > { %v1831_v2 = vpop.eup %1830  ;;  %v1200_v3 = vadd.f32 %v2023_v4, %v904_v0  ;;  %v1216_v5 = vadd.f32 %v2023_v4, %v944_v1  ;;  %v826_v6 = vpop.f32.mrf.mxu0 }
  0xf5   : > { %v866_v7 = vpop.f32.mrf.mxu1  ;;  %v1833_v8 = vpop.eup %1832  ;;  %1327 = vst [vmem:[%s2031_s29 + $0x148] sm:$0xff] %v1831_v2  ;;  %v1169_v9 = vadd.f32 %v2023_v4, %v826_v6 }
  0xf6   : > { %v1185_v10 = vadd.f32 %v2023_v4, %v866_v7  ;;  %v1835_v11 = vpop.eup %1834  ;;  %1343 = vst [vmem:[%s2031_s29 + $0x1c8] sm:$0xff] %v1833_v8  ;;  %1838 = vtanh.f32 %v1200_v3 }
  0xf7   : > { %v1837_v12 = vpop.eup %1836  ;;  %1296 = vst [vmem:[%s2031_s29 + $0x50] sm:$0xff] %v1835_v11  ;;  %1840 = vtanh.f32 %v1216_v5 }
  0xf8   : > { %1312 = vst [vmem:[%s2031_s29 + $0xd0] sm:$0xff] %v1837_v12  ;;  %1842 = vtanh.f32 %v1169_v9 }
  0xf9   : > { %1844 = vtanh.f32 %v1185_v10 }
  0xfb   : > { %v906_v13 = vpop.f32.mrf.mxu2  ;;  %v946_v14 = vpop.f32.mrf.mxu3 }
  0xfc   : > { %v1839_v15 = vpop.eup %1838  ;;  %v1201_v16 = vadd.f32 %v2023_v4, %v906_v13  ;;  %v1217_v17 = vadd.f32 %v2023_v4, %v946_v14  ;;  %v829_v18 = vpop.f32.mrf.mxu0 }
  0xfd   : > { %v869_v19 = vpop.f32.mrf.mxu1  ;;  %v1841_v20 = vpop.eup %1840  ;;  %1328 = vst [vmem:[%s2031_s29 + $0x150] sm:$0xff] %v1839_v15  ;;  %v1170_v21 = vadd.f32 %v2023_v4, %v829_v18 }
  0xfe   : > { %v1186_v22 = vadd.f32 %v2023_v4, %v869_v19  ;;  %v1843_v23 = vpop.eup %1842  ;;  %1344 = vst [vmem:[%s2031_s29 + $0x1d0] sm:$0xff] %v1841_v20  ;;  %1846 = vtanh.f32 %v1201_v16 }
  0xff   : > { %v1845_v24 = vpop.eup %1844  ;;  %1297 = vst [vmem:[%s2031_s29 + $0x58] sm:$0xff] %v1843_v23  ;;  %1848 = vtanh.f32 %v1217_v17 }
 0x100   : > { %1313 = vst [vmem:[%s2031_s29 + $0xd8] sm:$0xff] %v1845_v24  ;;  %1850 = vtanh.f32 %v1170_v21 }
 0x101   : > { %1852 = vtanh.f32 %v1186_v22 }
 0x103   : > { %v909_v25 = vpop.f32.mrf.mxu2  ;;  %v949_v26 = vpop.f32.mrf.mxu3 }
 0x104   : > { %v1847_v27 = vpop.eup %1846  ;;  %v1202_v28 = vadd.f32 %v2023_v4, %v909_v25  ;;  %v1218_v29 = vadd.f32 %v2023_v4, %v949_v26  ;;  %v831_v30 = vpop.f32.mrf.mxu0 }
 0x105   : > { %v871_v31 = vpop.f32.mrf.mxu1  ;;  %v1849_v32 = vpop.eup %1848  ;;  %1329 = vst [vmem:[%s2031_s29 + $0x158] sm:$0xff] %v1847_v27  ;;  %v1171_v33 = vadd.f32 %v2023_v4, %v831_v30 }
 0x106   : > { %v1187_v34 = vadd.f32 %v2023_v4, %v871_v31  ;;  %v1851_v35 = vpop.eup %1850  ;;  %1345 = vst [vmem:[%s2031_s29 + $0x1d8] sm:$0xff] %v1849_v32  ;;  %1854 = vtanh.f32 %v1202_v28 }
 0x107   : > { %v1853_v36 = vpop.eup %1852  ;;  %1298 = vst [vmem:[%s2031_s29 + $0x60] sm:$0xff] %v1851_v35  ;;  %1856 = vtanh.f32 %v1218_v29 }
 0x108   : > { %1314 = vst [vmem:[%s2031_s29 + $0xe0] sm:$0xff] %v1853_v36  ;;  %1858 = vtanh.f32 %v1171_v33 }
 0x109   : > { %1860 = vtanh.f32 %v1187_v34 }
 0x10b   : > { %v911_v37 = vpop.f32.mrf.mxu2  ;;  %v951_v38 = vpop.f32.mrf.mxu3 }
 0x10c   : > { %v1855_v39 = vpop.eup %1854  ;;  %v1203_v40 = vadd.f32 %v2023_v4, %v911_v37  ;;  %v1219_v41 = vadd.f32 %v2023_v4, %v951_v38  ;;  %v834_v42 = vpop.f32.mrf.mxu0 }
 0x10d   : > { %v874_v43 = vpop.f32.mrf.mxu1  ;;  %v1857_v44 = vpop.eup %1856  ;;  %1330 = vst [vmem:[%s2031_s29 + $0x160] sm:$0xff] %v1855_v39  ;;  %v1172_v45 = vadd.f32 %v2023_v4, %v834_v42 }
 0x10e   : > { %v1188_v46 = vadd.f32 %v2023_v4, %v874_v43  ;;  %v1859_v47 = vpop.eup %1858  ;;  %1346 = vst [vmem:[%s2031_s29 + $0x1e0] sm:$0xff] %v1857_v44  ;;  %1862 = vtanh.f32 %v1203_v40 }
 0x10f   : > { %v1861_v48 = vpop.eup %1860  ;;  %1299 = vst [vmem:[%s2031_s29 + $0x68] sm:$0xff] %v1859_v47  ;;  %1864 = vtanh.f32 %v1219_v41 }
 0x110   : > { %1315 = vst [vmem:[%s2031_s29 + $0xe8] sm:$0xff] %v1861_v48  ;;  %1866 = vtanh.f32 %v1172_v45 }
 0x111   : > { %1868 = vtanh.f32 %v1188_v46 }
 0x113   : > { %v914_v49 = vpop.f32.mrf.mxu2  ;;  %v954_v50 = vpop.f32.mrf.mxu3 }
 0x114   : > { %v1863_v51 = vpop.eup %1862  ;;  %v1204_v52 = vadd.f32 %v2023_v4, %v914_v49  ;;  %v1220_v53 = vadd.f32 %v2023_v4, %v954_v50  ;;  %v836_v54 = vpop.f32.mrf.mxu0 }
 0x115   : > { %v876_v55 = vpop.f32.mrf.mxu1  ;;  %v1865_v56 = vpop.eup %1864  ;;  %1331 = vst [vmem:[%s2031_s29 + $0x168] sm:$0xff] %v1863_v51  ;;  %v1173_v57 = vadd.f32 %v2023_v4, %v836_v54 }
 0x116   : > { %v1189_v58 = vadd.f32 %v2023_v4, %v876_v55  ;;  %v1867_v59 = vpop.eup %1866  ;;  %1347 = vst [vmem:[%s2031_s29 + $0x1e8] sm:$0xff] %v1865_v56  ;;  %1870 = vtanh.f32 %v1204_v52 }
 0x117   : > { %v1869_v60 = vpop.eup %1868  ;;  %1300 = vst [vmem:[%s2031_s29 + $0x70] sm:$0xff] %v1867_v59  ;;  %1872 = vtanh.f32 %v1220_v53 }
 0x118   : > { %1316 = vst [vmem:[%s2031_s29 + $0xf0] sm:$0xff] %v1869_v60  ;;  %1874 = vtanh.f32 %v1173_v57 }
 0x119   : > { %1876 = vtanh.f32 %v1189_v58 }
 0x11b   : > { %v916_v61 = vpop.f32.mrf.mxu2  ;;  %v956_v62 = vpop.f32.mrf.mxu3 }
 0x11c   : > { %v1871_v63 = vpop.eup %1870  ;;  %v1205_v0 = vadd.f32 %v2023_v4, %v916_v61  ;;  %v1221_v1 = vadd.f32 %v2023_v4, %v956_v62 }
 0x11d   : > { %v1873_v2 = vpop.eup %1872  ;;  %1332 = vst [vmem:[%s2031_s29 + $0x170] sm:$0xff] %v1871_v63 }
 0x11e   : > { %v1875_v3 = vpop.eup %1874  ;;  %1348 = vst [vmem:[%s2031_s29 + $0x1f0] sm:$0xff] %v1873_v2  ;;  %1878 = vtanh.f32 %v1205_v0 }
 0x11f   : > { %v1877_v5 = vpop.eup %1876  ;;  %1301 = vst [vmem:[%s2031_s29 + $0x78] sm:$0xff] %v1875_v3  ;;  %1880 = vtanh.f32 %v1221_v1 }
 0x120   : > { %1317 = vst [vmem:[%s2031_s29 + $0xf8] sm:$0xff] %v1877_v5 }
 0x124   : > { %v1879_v6 = vpop.eup %1878 }
 0x125   : > { %v1881_v7 = vpop.eup %1880  ;;  %1333 = vst [vmem:[%s2031_s29 + $0x178] sm:$0xff] %v1879_v6 }
 0x126   : > { %1349 = vst [vmem:[%s2031_s29 + $0x1f8] sm:$0xff] %v1881_v7 }
 0x127 PF: > { %s13_s14 = sadd.s32 1, %s1904_s14   ;;  %s2172_s12 = smov %s1900_s13 }
 0x128   : > { %p10_p5 = scmp.ge.s32.totalorder %s13_s14, 6   ;;  %s2173_s13 = smov %s2175_s15 }
 0x12a   :  { %12 = sbr.rel (!%p10_p5) target bundleno = 2 (0x2), region = 76 }

</bundles_post_ra>
